<compile_context>
chip_gen: v5e
topology: v5e:2x2
jax: 0.10.0
libtpu: 0.0.40
codegen_flags: <defaults>
</compile_context>

<pallas_src>
import functools

import jax
import jax.numpy as jnp
from jax.experimental import pallas as pl
from jax.experimental.pallas import tpu as pltpu

# ---------------------------------------------------------------------------
# Model hyper-parameters (small, consistent with the PyTorch module's forward)
# ---------------------------------------------------------------------------
NUM_QUEST = 100
INPUT_SIZE = 16      # E
HIDDEN_SIZE = 32     # H
NUM_LAYERS = 2       # L
BATCH = 2            # B
SEQ = 8              # S


# ---------------------------------------------------------------------------
# Pallas kernel: whole-sequence GRU + head in one invocation
# ---------------------------------------------------------------------------
def _gru_seq_kernel(S, B, E, H, L,
                    q_ref, r_ref, pe_ref, ql_ref, mpe_ref, mql_ref,
                    wih0_ref, whh0_ref, wbig_ref, bias_ref, wd_ref, head_ref,
                    out_ref,
                    h_ref, gi0_ref, hs_ref):
    f32 = jnp.float32

    # ---- feature composition for the whole sequence ------------------------
    # src_t = q_emb + resp_emb + log(pe+1)*m_pe + log(ql+1)*m_ql     (S, B, E)
    src = (q_ref[...] + r_ref[...]
           + pe_ref[...] * mpe_ref[...]          # (S,B,1) * (1,E) -> (S,B,E)
           + ql_ref[...] * mql_ref[...]).astype(f32)

    # ---- hoisted layer-0 input projection (one matmul for all timesteps) ---
    b0 = bias_ref[0]                                           # (1, 6H)
    gi0_all = (jnp.dot(src.reshape(S * B, E), wih0_ref[...],
                       preferred_element_type=f32) + b0[:, :3 * H])
    gi0_ref[...] = gi0_all.reshape(S, B, 3 * H)

    # ---- hoist weight / bias loads out of the recurrence --------------------
    w_hh0 = whh0_ref[...]                                      # (H, 3H)
    b0_hh = b0[:, 3 * H:]                                      # (1, 3H)
    w_big = [wbig_ref[l - 1] for l in range(1, L)]             # (2H, 6H) each
    b_big = [bias_ref[l] for l in range(1, L)]                 # (1, 6H) each

    h_ref[...] = jnp.zeros_like(h_ref)

    # ---- sequential recurrence over time (unrolled fori_loop) ---------------
    def step(t, carry):
        # layer 0: only the recurrent matmul sits on the critical path
        h0 = h_ref[0]                                          # (B, H)
        gi = gi0_ref[t]                                        # (B, 3H)
        gh = jnp.dot(h0, w_hh0, preferred_element_type=f32) + b0_hh
        r_g = jax.nn.sigmoid(gi[:, :H] + gh[:, :H])
        z_g = jax.nn.sigmoid(gi[:, H:2 * H] + gh[:, H:2 * H])
        n_g = jnp.tanh(gi[:, 2 * H:] + r_g * gh[:, 2 * H:])
        x = (1.0 - z_g) * n_g + z_g * h0
        h_ref[0] = x

        # layers 1..L-1: one fused MXU push per layer per step
        #   [x | h_prev] @ [[W_ih, 0], [0, W_hh]] = [gi | gh]
        for l in range(1, L):
            h_prev = h_ref[l]                                  # (B, H)
            xh = jnp.concatenate([x, h_prev], axis=-1)         # (B, 2H)
            g = (jnp.dot(xh, w_big[l - 1], preferred_element_type=f32)
                 + b_big[l - 1])                               # (B, 6H)
            gi_l, gh_l = g[:, :3 * H], g[:, 3 * H:]
            r_l = jax.nn.sigmoid(gi_l[:, :H] + gh_l[:, :H])
            z_l = jax.nn.sigmoid(gi_l[:, H:2 * H] + gh_l[:, H:2 * H])
            n_l = jnp.tanh(gi_l[:, 2 * H:] + r_l * gh_l[:, 2 * H:])
            x = (1.0 - z_l) * n_l + z_l * h_prev
            h_ref[l] = x

        hs_ref[t] = x                                          # last layer out
        return carry

    jax.lax.fori_loop(0, S, step, 0, unroll=True)

    # ---- hoisted MLP head over all timesteps at once -------------------------
    hs = hs_ref[...].reshape(S * B, H)
    d = jnp.maximum(jnp.dot(hs, wd_ref[...], preferred_element_type=f32)
                    + head_ref[0:1], 0.0)                      # (S*B, H/2)
    # classifier (H/2 -> 1): VPU multiply + lane reduce instead of N=1 matmul
    o = jnp.sum(d * head_ref[1:2], axis=-1)                    # (S*B,)
    out_ref[...] = (o.reshape(1, S * B)
                    + head_ref[2:3, 0:1]).astype(out_ref.dtype)


# ---------------------------------------------------------------------------
# Wrapper: embedding gathers + parameter packing + pallas_call
# ---------------------------------------------------------------------------
def saint_nikola_gru_forward(params, quest_ids, prior_elapsed, quest_lag, response):
    B, S = quest_ids.shape
    E, H, L = INPUT_SIZE, HIDDEN_SIZE, NUM_LAYERS
    Hd = H // 2

    # Embedding lookups (glue, plain JAX gather).
    q_emb = params["quest_embedd"][quest_ids]        # (B, S, E)
    r_emb = params["response_embedd"][response]      # (B, S, E)
    pe = jnp.log(prior_elapsed + 1.0)[..., None]     # (B, S, 1)
    ql = jnp.log(quest_lag + 1.0)[..., None]         # (B, S, 1)

    # Time-major for the kernel.
    q_t = jnp.transpose(q_emb, (1, 0, 2)).astype(jnp.float32)   # (S, B, E)
    r_t = jnp.transpose(r_emb, (1, 0, 2)).astype(jnp.float32)   # (S, B, E)
    pe_t = jnp.transpose(pe, (1, 0, 2)).astype(jnp.float32)     # (S, B, 1)
    ql_t = jnp.transpose(ql, (1, 0, 2)).astype(jnp.float32)     # (S, B, 1)

    # ---- parameter packing (wrapper-side) ----------------------------------
    lay0 = params["layers"][0]
    w_ih0 = lay0["w_ih"]                                        # (E, 3H)
    w_hh0 = lay0["w_hh"]                                        # (H, 3H)
    bias_rows = [jnp.concatenate([lay0["b_ih"], lay0["b_hh"]], axis=-1)]
    wbig_rows = []
    for l in range(1, L):
        lay = params["layers"][l]
        z = jnp.zeros((H, 3 * H), jnp.float32)
        top = jnp.concatenate([lay["w_ih"], z], axis=1)         # (H, 6H)
        bot = jnp.concatenate([z, lay["w_hh"]], axis=1)         # (H, 6H)
        wbig_rows.append(jnp.concatenate([top, bot], axis=0))   # (2H, 6H)
        bias_rows.append(jnp.concatenate([lay["b_ih"], lay["b_hh"]], axis=-1))
    wbig = (jnp.stack(wbig_rows) if L > 1
            else jnp.zeros((1, 2 * H, 6 * H), jnp.float32))     # (L-1, 2H, 6H)
    bias_pack = jnp.stack(bias_rows)                            # (L, 1, 6H)

    head_pack = jnp.stack([
        params["b_dense"][0],                                   # (Hd,)
        params["w_clf"][:, 0],                                  # (Hd,)
        jnp.pad(params["b_clf"][0], (0, Hd - 1)),               # (Hd,)
    ])                                                          # (3, Hd)

    inputs = [q_t, r_t, pe_t, ql_t, params["m_pe"], params["m_ql"],
              w_ih0, w_hh0, wbig, bias_pack, params["w_dense"], head_pack]

    def full_spec(arr):
        nd = arr.ndim
        return pl.BlockSpec(arr.shape, lambda i, nd=nd: (0,) * nd)

    out_flat = pl.pallas_call(
        functools.partial(_gru_seq_kernel, S, B, E, H, L),
        out_shape=jax.ShapeDtypeStruct((1, S * B), jnp.float32),
        grid_spec=pltpu.PrefetchScalarGridSpec(
            num_scalar_prefetch=0,
            grid=(1,),                                   # single invocation
            in_specs=[full_spec(a) for a in inputs],
            out_specs=pl.BlockSpec((1, S * B), lambda i: (0, 0)),
            scratch_shapes=[
                pltpu.VMEM((L, B, H), jnp.float32),      # hidden state
                pltpu.VMEM((S, B, 3 * H), jnp.float32),  # hoisted gi0
                pltpu.VMEM((S, B, H), jnp.float32),      # last-layer outputs
            ]),
        compiler_params=pltpu.CompilerParams(
            dimension_semantics=("arbitrary",)),          # recurrence is serial
    )(*inputs)

    # (1, S*B) lane-dense slab -> (B, S, 1) batch-first
    return jnp.transpose(out_flat.reshape(S, B), (1, 0))[..., None]


# ---------------------------------------------------------------------------
# Pure-JAX reference (same math) for a correctness check
# ---------------------------------------------------------------------------
def reference_forward(params, quest_ids, prior_elapsed, quest_lag, response):
    B, S = quest_ids.shape
    H = HIDDEN_SIZE
    q = params["quest_embedd"][quest_ids]
    r = params["response_embedd"][response]
    pe = jnp.log(prior_elapsed + 1.0)[..., None] * params["m_pe"]
    ql = jnp.log(quest_lag + 1.0)[..., None] * params["m_ql"]
    src = (q + r + pe + ql).astype(jnp.float32)       # (B, S, E)
    x = jnp.transpose(src, (1, 0, 2))                 # (S, B, E)

    for layer in params["layers"]:
        w_ih, w_hh = layer["w_ih"], layer["w_hh"]
        b_ih, b_hh = layer["b_ih"], layer["b_hh"]

        def step(h, x_t):
            gi = x_t @ w_ih + b_ih
            gh = h @ w_hh + b_hh
            rg = jax.nn.sigmoid(gi[:, :H] + gh[:, :H])
            zg = jax.nn.sigmoid(gi[:, H:2 * H] + gh[:, H:2 * H])
            ng = jnp.tanh(gi[:, 2 * H:] + rg * gh[:, 2 * H:])
            h_new = (1.0 - zg) * ng + zg * h
            return h_new, h_new

        _, x = jax.lax.scan(step, jnp.zeros((B, H), jnp.float32), x)

    d = jnp.maximum(x @ params["w_dense"] + params["b_dense"], 0.0)
    o = d @ params["w_clf"] + params["b_clf"]
    return jnp.transpose(o, (1, 0, 2))                # (B, S, 1)


# ---------------------------------------------------------------------------
# Deterministic synthetic parameter init (xavier-uniform-ish)
# ---------------------------------------------------------------------------
def _xavier(key, shape):
    fan_in, fan_out = shape[-2], shape[-1]
    lim = (6.0 / (fan_in + fan_out)) ** 0.5
    return jax.random.uniform(key, shape, jnp.float32, -lim, lim)


def init_params(key):
    E, H, L = INPUT_SIZE, HIDDEN_SIZE, NUM_LAYERS
    keys = jax.random.split(key, 16 + 4 * L)
    ki = iter(keys)

    quest_embedd = _xavier(next(ki), (NUM_QUEST + 1, E))
    quest_embedd = quest_embedd.at[NUM_QUEST].set(0.0)        # padding_idx row
    response_embedd = _xavier(next(ki), (4, E))
    m_pe = _xavier(next(ki), (1, E))                          # minute_prior_elapsed_embedd(0)
    m_ql = _xavier(next(ki), (1, E))                          # minute_quest_lag_embedd(0)

    layers = []
    for l in range(L):
        in_l = E if l == 0 else H
        layers.append(dict(
            w_ih=_xavier(next(ki), (in_l, 3 * H)),            # gate order [r|z|n]
            w_hh=_xavier(next(ki), (H, 3 * H)),
            b_ih=0.01 * _xavier(next(ki), (1, 3 * H)),
            b_hh=0.01 * _xavier(next(ki), (1, 3 * H)),
        ))

    w_dense = _xavier(next(ki), (H, H // 2))
    b_dense = 0.01 * _xavier(next(ki), (1, H // 2))
    w_clf = _xavier(next(ki), (H // 2, 1))
    b_clf = 0.01 * _xavier(next(ki), (1, 1))

    return dict(quest_embedd=quest_embedd, response_embedd=response_embedd,
                m_pe=m_pe, m_ql=m_ql, layers=layers,
                w_dense=w_dense, b_dense=b_dense, w_clf=w_clf, b_clf=b_clf)


# ---------------------------------------------------------------------------
if __name__ == "__main__":
    key = jax.random.PRNGKey(0)
    kp, kq, kr, ke, kl = jax.random.split(key, 5)

    params = init_params(kp)

    quest_ids = jax.random.randint(kq, (BATCH, SEQ), 0, NUM_QUEST)
    response = jax.random.randint(kr, (BATCH, SEQ), 0, 4)
    prior_elapsed = jax.random.uniform(ke, (BATCH, SEQ), jnp.float32, 0.0, 300.0)
    quest_lag = jax.random.uniform(kl, (BATCH, SEQ), jnp.float32, 0.0, 600.0)

    out = saint_nikola_gru_forward(params, quest_ids, prior_elapsed,
                                   quest_lag, response)
    out = jax.block_until_ready(out)

    ref = reference_forward(params, quest_ids, prior_elapsed, quest_lag, response)
    assert out.shape == (BATCH, SEQ, 1)
    assert jnp.allclose(out, ref, atol=1e-4, rtol=1e-4), (
        f"max abs diff {jnp.max(jnp.abs(out - ref))}")

    print("KERNEL_OK")
</pallas_src>

<mosaic_0001>
module attributes {stable_mosaic.version = 11 : i64} {
  func.func @_gru_seq_kernel(%arg0: i32, %arg1: memref<8x2x16xf32, #tpu.memory_space<vmem>>, %arg2: memref<8x2x16xf32, #tpu.memory_space<vmem>>, %arg3: memref<8x2x1xf32, #tpu.memory_space<vmem>>, %arg4: memref<8x2x1xf32, #tpu.memory_space<vmem>>, %arg5: memref<1x16xf32, #tpu.memory_space<vmem>>, %arg6: memref<1x16xf32, #tpu.memory_space<vmem>>, %arg7: memref<16x96xf32, #tpu.memory_space<vmem>>, %arg8: memref<32x96xf32, #tpu.memory_space<vmem>>, %arg9: memref<1x64x192xf32, #tpu.memory_space<vmem>>, %arg10: memref<2x1x192xf32, #tpu.memory_space<vmem>>, %arg11: memref<32x16xf32, #tpu.memory_space<vmem>>, %arg12: memref<3x16xf32, #tpu.memory_space<vmem>>, %arg13: memref<1x16xf32, #tpu.memory_space<vmem>>, %arg14: memref<2x2x32xf32, #tpu.memory_space<vmem>>, %arg15: memref<8x2x96xf32, #tpu.memory_space<vmem>>, %arg16: memref<8x2x32xf32, #tpu.memory_space<vmem>>) attributes {dimension_semantics = [#tpu.dimension_semantics<arbitrary>], iteration_bounds = array<i64: 1>, scalar_prefetch = 0 : i64, scratch_operands = 3 : i64, tpu.core_type = #tpu.core_type<tc>, window_params = [{pipeline_mode = #tpu.pipeline_mode<synchronous>, transform_indices = @transform_0, window_bounds = array<i64: 8, 2, 16>}, {pipeline_mode = #tpu.pipeline_mode<synchronous>, transform_indices = @transform_1, window_bounds = array<i64: 8, 2, 16>}, {pipeline_mode = #tpu.pipeline_mode<synchronous>, transform_indices = @transform_2, window_bounds = array<i64: 8, 2, 1>}, {pipeline_mode = #tpu.pipeline_mode<synchronous>, transform_indices = @transform_3, window_bounds = array<i64: 8, 2, 1>}, {pipeline_mode = #tpu.pipeline_mode<synchronous>, transform_indices = @transform_4, window_bounds = array<i64: 1, 16>}, {pipeline_mode = #tpu.pipeline_mode<synchronous>, transform_indices = @transform_5, window_bounds = array<i64: 1, 16>}, {pipeline_mode = #tpu.pipeline_mode<synchronous>, transform_indices = @transform_6, window_bounds = array<i64: 16, 96>}, {pipeline_mode = #tpu.pipeline_mode<synchronous>, transform_indices = @transform_7, window_bounds = array<i64: 32, 96>}, {pipeline_mode = #tpu.pipeline_mode<synchronous>, transform_indices = @transform_8, window_bounds = array<i64: 1, 64, 192>}, {pipeline_mode = #tpu.pipeline_mode<synchronous>, transform_indices = @transform_9, window_bounds = array<i64: 2, 1, 192>}, {pipeline_mode = #tpu.pipeline_mode<synchronous>, transform_indices = @transform_10, window_bounds = array<i64: 32, 16>}, {pipeline_mode = #tpu.pipeline_mode<synchronous>, transform_indices = @transform_11, window_bounds = array<i64: 3, 16>}, {pipeline_mode = #tpu.pipeline_mode<synchronous>, transform_indices = @transform_12, window_bounds = array<i64: 1, 16>}]} {
    %c0 = arith.constant 0 : index
    %c0_0 = arith.constant 0 : index
    %c0_1 = arith.constant 0 : index
    %0 = vector.load %arg1[%c0, %c0_0, %c0_1] : memref<8x2x16xf32, #tpu.memory_space<vmem>>, vector<8x2x16xf32>
    %c0_2 = arith.constant 0 : index
    %c0_3 = arith.constant 0 : index
    %c0_4 = arith.constant 0 : index
    %1 = vector.load %arg2[%c0_2, %c0_3, %c0_4] : memref<8x2x16xf32, #tpu.memory_space<vmem>>, vector<8x2x16xf32>
    %2 = arith.addf %0, %1 : vector<8x2x16xf32>
    %c0_5 = arith.constant 0 : index
    %c0_6 = arith.constant 0 : index
    %c0_7 = arith.constant 0 : index
    %3 = vector.load %arg3[%c0_5, %c0_6, %c0_7] : memref<8x2x1xf32, #tpu.memory_space<vmem>>, vector<8x2x1xf32>
    %c0_8 = arith.constant 0 : index
    %c0_9 = arith.constant 0 : index
    %4 = vector.load %arg5[%c0_8, %c0_9] : memref<1x16xf32, #tpu.memory_space<vmem>>, vector<1x16xf32>
    %5 = vector.shape_cast %4 : vector<1x16xf32> to vector<1x1x16xf32>
    %6 = vector.broadcast %3 : vector<8x2x1xf32> to vector<8x2x16xf32>
    %7 = vector.broadcast %5 : vector<1x1x16xf32> to vector<8x2x16xf32>
    %8 = arith.mulf %6, %7 : vector<8x2x16xf32>
    %9 = arith.addf %2, %8 : vector<8x2x16xf32>
    %c0_10 = arith.constant 0 : index
    %c0_11 = arith.constant 0 : index
    %c0_12 = arith.constant 0 : index
    %10 = vector.load %arg4[%c0_10, %c0_11, %c0_12] : memref<8x2x1xf32, #tpu.memory_space<vmem>>, vector<8x2x1xf32>
    %c0_13 = arith.constant 0 : index
    %c0_14 = arith.constant 0 : index
    %11 = vector.load %arg6[%c0_13, %c0_14] : memref<1x16xf32, #tpu.memory_space<vmem>>, vector<1x16xf32>
    %12 = vector.shape_cast %11 : vector<1x16xf32> to vector<1x1x16xf32>
    %13 = vector.broadcast %10 : vector<8x2x1xf32> to vector<8x2x16xf32>
    %14 = vector.broadcast %12 : vector<1x1x16xf32> to vector<8x2x16xf32>
    %15 = arith.mulf %13, %14 : vector<8x2x16xf32>
    %16 = arith.addf %9, %15 : vector<8x2x16xf32>
    %c0_15 = arith.constant 0 : index
    %c0_16 = arith.constant 0 : index
    %c0_17 = arith.constant 0 : index
    %17 = vector.load %arg10[%c0_15, %c0_16, %c0_17] : memref<2x1x192xf32, #tpu.memory_space<vmem>>, vector<1x1x192xf32>
    %18 = vector.shape_cast %17 : vector<1x1x192xf32> to vector<1x192xf32>
    %19 = vector.shape_cast %16 : vector<8x2x16xf32> to vector<16x16xf32>
    %c0_18 = arith.constant 0 : index
    %c0_19 = arith.constant 0 : index
    %20 = vector.load %arg7[%c0_18, %c0_19] : memref<16x96xf32, #tpu.memory_space<vmem>>, vector<16x96xf32>
    %cst = arith.constant dense<0.000000e+00> : vector<16x96xf32>
    %21 = tpu.matmul %19, %20, %cst {dimension_numbers = #tpu.dot_dimension_numbers<[1], [0], [0], [1], [0, 0, 1, 1], [], []>} : vector<16x16xf32>, vector<16x96xf32>, vector<16x96xf32> -> vector<16x96xf32>
    %22 = vector.extract_strided_slice %18 {offsets = [0, 0], sizes = [1, 96], strides = [1, 1]} : vector<1x192xf32> to vector<1x96xf32>
    %23 = vector.broadcast %22 : vector<1x96xf32> to vector<16x96xf32>
    %24 = arith.addf %21, %23 : vector<16x96xf32>
    %25 = vector.shape_cast %24 : vector<16x96xf32> to vector<8x2x96xf32>
    %c0_20 = arith.constant 0 : index
    %c0_21 = arith.constant 0 : index
    %c0_22 = arith.constant 0 : index
    %26 = vector.load %arg15[%c0_20, %c0_21, %c0_22] : memref<8x2x96xf32, #tpu.memory_space<vmem>>, vector<8x2x96xf32>
    tpu.vector_store %arg15[%c0_20, %c0_21, %c0_22], %25 {strides = array<i32>} : memref<8x2x96xf32, #tpu.memory_space<vmem>>, vector<8x2x96xf32>,
    %c0_23 = arith.constant 0 : index
    %c0_24 = arith.constant 0 : index
    %27 = vector.load %arg8[%c0_23, %c0_24] : memref<32x96xf32, #tpu.memory_space<vmem>>, vector<32x96xf32>
    %28 = vector.extract_strided_slice %18 {offsets = [0, 96], sizes = [1, 96], strides = [1, 1]} : vector<1x192xf32> to vector<1x96xf32>
    %c0_25 = arith.constant 0 : index
    %c0_26 = arith.constant 0 : index
    %c0_27 = arith.constant 0 : index
    %29 = vector.load %arg9[%c0_25, %c0_26, %c0_27] : memref<1x64x192xf32, #tpu.memory_space<vmem>>, vector<1x64x192xf32>
    %30 = vector.shape_cast %29 : vector<1x64x192xf32> to vector<64x192xf32>
    %c1 = arith.constant 1 : index
    %c0_28 = arith.constant 0 : index
    %c0_29 = arith.constant 0 : index
    %31 = vector.load %arg10[%c1, %c0_28, %c0_29] : memref<2x1x192xf32, #tpu.memory_space<vmem>>, vector<1x1x192xf32>
    %32 = vector.shape_cast %31 : vector<1x1x192xf32> to vector<1x192xf32>
    %cst_30 = arith.constant 0.000000e+00 : f32
    %33 = vector.broadcast %cst_30 : f32 to vector<2x2x32xf32>
    %c0_31 = arith.constant 0 : index
    %c0_32 = arith.constant 0 : index
    %c0_33 = arith.constant 0 : index
    %34 = vector.load %arg14[%c0_31, %c0_32, %c0_33] : memref<2x2x32xf32, #tpu.memory_space<vmem>>, vector<2x2x32xf32>
    tpu.vector_store %arg14[%c0_31, %c0_32, %c0_33], %33 {strides = array<i32>} : memref<2x2x32xf32, #tpu.memory_space<vmem>>, vector<2x2x32xf32>,
    %c0_i32 = arith.constant 0 : i32
    %c0_34 = arith.constant 0 : index
    %c0_35 = arith.constant 0 : index
    %c0_36 = arith.constant 0 : index
    %35 = vector.load %arg14[%c0_34, %c0_35, %c0_36] : memref<2x2x32xf32, #tpu.memory_space<vmem>>, vector<1x2x32xf32>
    %36 = vector.shape_cast %35 : vector<1x2x32xf32> to vector<2x32xf32>
    %37 = arith.index_cast %c0_i32 : i32 to index
    %c0_37 = arith.constant 0 : index
    %c0_38 = arith.constant 0 : index
    %38 = vector.load %arg15[%37, %c0_37, %c0_38] : memref<8x2x96xf32, #tpu.memory_space<vmem>>, vector<1x2x96xf32>
    %39 = vector.shape_cast %38 : vector<1x2x96xf32> to vector<2x96xf32>
    %cst_39 = arith.constant dense<0.000000e+00> : vector<2x96xf32>
    %40 = tpu.matmul %36, %27, %cst_39 {dimension_numbers = #tpu.dot_dimension_numbers<[1], [0], [0], [1], [0, 0, 1, 1], [], []>} : vector<2x32xf32>, vector<32x96xf32>, vector<2x96xf32> -> vector<2x96xf32>
    %41 = vector.broadcast %28 : vector<1x96xf32> to vector<2x96xf32>
    %42 = arith.addf %40, %41 : vector<2x96xf32>
    %43 = vector.extract_strided_slice %39 {offsets = [0, 0], sizes = [2, 32], strides = [1, 1]} : vector<2x96xf32> to vector<2x32xf32>
    %44 = vector.extract_strided_slice %42 {offsets = [0, 0], sizes = [2, 32], strides = [1, 1]} : vector<2x96xf32> to vector<2x32xf32>
    %45 = arith.addf %43, %44 : vector<2x32xf32>
    %46 = arith.negf %45 : vector<2x32xf32>
    %47 = math.exp %46 : vector<2x32xf32>
    %cst_40 = arith.constant 1.000000e+00 : f32
    %48 = vector.broadcast %cst_40 : f32 to vector<2x32xf32>
    %49 = arith.addf %48, %47 : vector<2x32xf32>
    %50 = arith.divf %48, %49 : vector<2x32xf32>
    %51 = vector.extract_strided_slice %39 {offsets = [0, 32], sizes = [2, 32], strides = [1, 1]} : vector<2x96xf32> to vector<2x32xf32>
    %52 = vector.extract_strided_slice %42 {offsets = [0, 32], sizes = [2, 32], strides = [1, 1]} : vector<2x96xf32> to vector<2x32xf32>
    %53 = arith.addf %51, %52 : vector<2x32xf32>
    %54 = arith.negf %53 : vector<2x32xf32>
    %55 = math.exp %54 : vector<2x32xf32>
    %cst_41 = arith.constant 1.000000e+00 : f32
    %56 = vector.broadcast %cst_41 : f32 to vector<2x32xf32>
    %57 = arith.addf %56, %55 : vector<2x32xf32>
    %58 = arith.divf %56, %57 : vector<2x32xf32>
    %59 = vector.extract_strided_slice %39 {offsets = [0, 64], sizes = [2, 32], strides = [1, 1]} : vector<2x96xf32> to vector<2x32xf32>
    %60 = vector.extract_strided_slice %42 {offsets = [0, 64], sizes = [2, 32], strides = [1, 1]} : vector<2x96xf32> to vector<2x32xf32>
    %61 = arith.mulf %50, %60 : vector<2x32xf32>
    %62 = arith.addf %59, %61 : vector<2x32xf32>
    %63 = math.tanh %62 : vector<2x32xf32>
    %cst_42 = arith.constant 1.000000e+00 : f32
    %64 = vector.broadcast %cst_42 : f32 to vector<2x32xf32>
    %65 = arith.subf %64, %58 : vector<2x32xf32>
    %66 = arith.mulf %65, %63 : vector<2x32xf32>
    %67 = arith.mulf %58, %36 : vector<2x32xf32>
    %68 = arith.addf %66, %67 : vector<2x32xf32>
    %c0_43 = arith.constant 0 : index
    %c0_44 = arith.constant 0 : index
    %c0_45 = arith.constant 0 : index
    %69 = vector.load %arg14[%c0_43, %c0_44, %c0_45] : memref<2x2x32xf32, #tpu.memory_space<vmem>>, vector<1x2x32xf32>
    %70 = vector.shape_cast %69 : vector<1x2x32xf32> to vector<2x32xf32>
    %71 = vector.shape_cast %68 : vector<2x32xf32> to vector<1x2x32xf32>
    tpu.vector_store %arg14[%c0_43, %c0_44, %c0_45], %71 {strides = array<i32>} : memref<2x2x32xf32, #tpu.memory_space<vmem>>, vector<1x2x32xf32>,
    %c1_46 = arith.constant 1 : index
    %c0_47 = arith.constant 0 : index
    %c0_48 = arith.constant 0 : index
    %72 = vector.load %arg14[%c1_46, %c0_47, %c0_48] : memref<2x2x32xf32, #tpu.memory_space<vmem>>, vector<1x2x32xf32>
    %73 = vector.shape_cast %72 : vector<1x2x32xf32> to vector<2x32xf32>
    %74 = tpu.concatenate %68, %73 in 1 : vector<2x32xf32>, vector<2x32xf32> -> vector<2x64xf32>
    %cst_49 = arith.constant dense<0.000000e+00> : vector<2x192xf32>
    %75 = tpu.matmul %74, %30, %cst_49 {dimension_numbers = #tpu.dot_dimension_numbers<[1], [0], [0], [1], [0, 0, 1, 1], [], []>} : vector<2x64xf32>, vector<64x192xf32>, vector<2x192xf32> -> vector<2x192xf32>
    %76 = vector.broadcast %32 : vector<1x192xf32> to vector<2x192xf32>
    %77 = arith.addf %75, %76 : vector<2x192xf32>
    %78 = vector.extract_strided_slice %77 {offsets = [0, 0], sizes = [2, 96], strides = [1, 1]} : vector<2x192xf32> to vector<2x96xf32>
    %79 = vector.extract_strided_slice %77 {offsets = [0, 96], sizes = [2, 96], strides = [1, 1]} : vector<2x192xf32> to vector<2x96xf32>
    %80 = vector.extract_strided_slice %78 {offsets = [0, 0], sizes = [2, 32], strides = [1, 1]} : vector<2x96xf32> to vector<2x32xf32>
    %81 = vector.extract_strided_slice %79 {offsets = [0, 0], sizes = [2, 32], strides = [1, 1]} : vector<2x96xf32> to vector<2x32xf32>
    %82 = arith.addf %80, %81 : vector<2x32xf32>
    %83 = arith.negf %82 : vector<2x32xf32>
    %84 = math.exp %83 : vector<2x32xf32>
    %cst_50 = arith.constant 1.000000e+00 : f32
    %85 = vector.broadcast %cst_50 : f32 to vector<2x32xf32>
    %86 = arith.addf %85, %84 : vector<2x32xf32>
    %87 = arith.divf %85, %86 : vector<2x32xf32>
    %88 = vector.extract_strided_slice %78 {offsets = [0, 32], sizes = [2, 32], strides = [1, 1]} : vector<2x96xf32> to vector<2x32xf32>
    %89 = vector.extract_strided_slice %79 {offsets = [0, 32], sizes = [2, 32], strides = [1, 1]} : vector<2x96xf32> to vector<2x32xf32>
    %90 = arith.addf %88, %89 : vector<2x32xf32>
    %91 = arith.negf %90 : vector<2x32xf32>
    %92 = math.exp %91 : vector<2x32xf32>
    %cst_51 = arith.constant 1.000000e+00 : f32
    %93 = vector.broadcast %cst_51 : f32 to vector<2x32xf32>
    %94 = arith.addf %93, %92 : vector<2x32xf32>
    %95 = arith.divf %93, %94 : vector<2x32xf32>
    %96 = vector.extract_strided_slice %78 {offsets = [0, 64], sizes = [2, 32], strides = [1, 1]} : vector<2x96xf32> to vector<2x32xf32>
    %97 = vector.extract_strided_slice %79 {offsets = [0, 64], sizes = [2, 32], strides = [1, 1]} : vector<2x96xf32> to vector<2x32xf32>
    %98 = arith.mulf %87, %97 : vector<2x32xf32>
    %99 = arith.addf %96, %98 : vector<2x32xf32>
    %100 = math.tanh %99 : vector<2x32xf32>
    %cst_52 = arith.constant 1.000000e+00 : f32
    %101 = vector.broadcast %cst_52 : f32 to vector<2x32xf32>
    %102 = arith.subf %101, %95 : vector<2x32xf32>
    %103 = arith.mulf %102, %100 : vector<2x32xf32>
    %104 = arith.mulf %95, %73 : vector<2x32xf32>
    %105 = arith.addf %103, %104 : vector<2x32xf32>
    %c1_53 = arith.constant 1 : index
    %c0_54 = arith.constant 0 : index
    %c0_55 = arith.constant 0 : index
    %106 = vector.load %arg14[%c1_53, %c0_54, %c0_55] : memref<2x2x32xf32, #tpu.memory_space<vmem>>, vector<1x2x32xf32>
    %107 = vector.shape_cast %106 : vector<1x2x32xf32> to vector<2x32xf32>
    %108 = vector.shape_cast %105 : vector<2x32xf32> to vector<1x2x32xf32>
    tpu.vector_store %arg14[%c1_53, %c0_54, %c0_55], %108 {strides = array<i32>} : memref<2x2x32xf32, #tpu.memory_space<vmem>>, vector<1x2x32xf32>,
    %109 = arith.index_cast %c0_i32 : i32 to index
    %c0_56 = arith.constant 0 : index
    %c0_57 = arith.constant 0 : index
    %110 = vector.load %arg16[%109, %c0_56, %c0_57] : memref<8x2x32xf32, #tpu.memory_space<vmem>>, vector<1x2x32xf32>
    %111 = vector.shape_cast %110 : vector<1x2x32xf32> to vector<2x32xf32>
    %112 = vector.shape_cast %105 : vector<2x32xf32> to vector<1x2x32xf32>
    tpu.vector_store %arg16[%109, %c0_56, %c0_57], %112 {strides = array<i32>} : memref<8x2x32xf32, #tpu.memory_space<vmem>>, vector<1x2x32xf32>,
    %c1_i32 = arith.constant 1 : i32
    %c0_58 = arith.constant 0 : index
    %c0_59 = arith.constant 0 : index
    %c0_60 = arith.constant 0 : index
    %113 = vector.load %arg14[%c0_58, %c0_59, %c0_60] : memref<2x2x32xf32, #tpu.memory_space<vmem>>, vector<1x2x32xf32>
    %114 = vector.shape_cast %113 : vector<1x2x32xf32> to vector<2x32xf32>
    %115 = arith.index_cast %c1_i32 : i32 to index
    %c0_61 = arith.constant 0 : index
    %c0_62 = arith.constant 0 : index
    %116 = vector.load %arg15[%115, %c0_61, %c0_62] : memref<8x2x96xf32, #tpu.memory_space<vmem>>, vector<1x2x96xf32>
    %117 = vector.shape_cast %116 : vector<1x2x96xf32> to vector<2x96xf32>
    %cst_63 = arith.constant dense<0.000000e+00> : vector<2x96xf32>
    %118 = tpu.matmul %114, %27, %cst_63 {dimension_numbers = #tpu.dot_dimension_numbers<[1], [0], [0], [1], [0, 0, 1, 1], [], []>} : vector<2x32xf32>, vector<32x96xf32>, vector<2x96xf32> -> vector<2x96xf32>
    %119 = vector.broadcast %28 : vector<1x96xf32> to vector<2x96xf32>
    %120 = arith.addf %118, %119 : vector<2x96xf32>
    %121 = vector.extract_strided_slice %117 {offsets = [0, 0], sizes = [2, 32], strides = [1, 1]} : vector<2x96xf32> to vector<2x32xf32>
    %122 = vector.extract_strided_slice %120 {offsets = [0, 0], sizes = [2, 32], strides = [1, 1]} : vector<2x96xf32> to vector<2x32xf32>
    %123 = arith.addf %121, %122 : vector<2x32xf32>
    %124 = arith.negf %123 : vector<2x32xf32>
    %125 = math.exp %124 : vector<2x32xf32>
    %cst_64 = arith.constant 1.000000e+00 : f32
    %126 = vector.broadcast %cst_64 : f32 to vector<2x32xf32>
    %127 = arith.addf %126, %125 : vector<2x32xf32>
    %128 = arith.divf %126, %127 : vector<2x32xf32>
    %129 = vector.extract_strided_slice %117 {offsets = [0, 32], sizes = [2, 32], strides = [1, 1]} : vector<2x96xf32> to vector<2x32xf32>
    %130 = vector.extract_strided_slice %120 {offsets = [0, 32], sizes = [2, 32], strides = [1, 1]} : vector<2x96xf32> to vector<2x32xf32>
    %131 = arith.addf %129, %130 : vector<2x32xf32>
    %132 = arith.negf %131 : vector<2x32xf32>
    %133 = math.exp %132 : vector<2x32xf32>
    %cst_65 = arith.constant 1.000000e+00 : f32
    %134 = vector.broadcast %cst_65 : f32 to vector<2x32xf32>
    %135 = arith.addf %134, %133 : vector<2x32xf32>
    %136 = arith.divf %134, %135 : vector<2x32xf32>
    %137 = vector.extract_strided_slice %117 {offsets = [0, 64], sizes = [2, 32], strides = [1, 1]} : vector<2x96xf32> to vector<2x32xf32>
    %138 = vector.extract_strided_slice %120 {offsets = [0, 64], sizes = [2, 32], strides = [1, 1]} : vector<2x96xf32> to vector<2x32xf32>
    %139 = arith.mulf %128, %138 : vector<2x32xf32>
    %140 = arith.addf %137, %139 : vector<2x32xf32>
    %141 = math.tanh %140 : vector<2x32xf32>
    %cst_66 = arith.constant 1.000000e+00 : f32
    %142 = vector.broadcast %cst_66 : f32 to vector<2x32xf32>
    %143 = arith.subf %142, %136 : vector<2x32xf32>
    %144 = arith.mulf %143, %141 : vector<2x32xf32>
    %145 = arith.mulf %136, %114 : vector<2x32xf32>
    %146 = arith.addf %144, %145 : vector<2x32xf32>
    %c0_67 = arith.constant 0 : index
    %c0_68 = arith.constant 0 : index
    %c0_69 = arith.constant 0 : index
    %147 = vector.load %arg14[%c0_67, %c0_68, %c0_69] : memref<2x2x32xf32, #tpu.memory_space<vmem>>, vector<1x2x32xf32>
    %148 = vector.shape_cast %147 : vector<1x2x32xf32> to vector<2x32xf32>
    %149 = vector.shape_cast %146 : vector<2x32xf32> to vector<1x2x32xf32>
    tpu.vector_store %arg14[%c0_67, %c0_68, %c0_69], %149 {strides = array<i32>} : memref<2x2x32xf32, #tpu.memory_space<vmem>>, vector<1x2x32xf32>,
    %c1_70 = arith.constant 1 : index
    %c0_71 = arith.constant 0 : index
    %c0_72 = arith.constant 0 : index
    %150 = vector.load %arg14[%c1_70, %c0_71, %c0_72] : memref<2x2x32xf32, #tpu.memory_space<vmem>>, vector<1x2x32xf32>
    %151 = vector.shape_cast %150 : vector<1x2x32xf32> to vector<2x32xf32>
    %152 = tpu.concatenate %146, %151 in 1 : vector<2x32xf32>, vector<2x32xf32> -> vector<2x64xf32>
    %cst_73 = arith.constant dense<0.000000e+00> : vector<2x192xf32>
    %153 = tpu.matmul %152, %30, %cst_73 {dimension_numbers = #tpu.dot_dimension_numbers<[1], [0], [0], [1], [0, 0, 1, 1], [], []>} : vector<2x64xf32>, vector<64x192xf32>, vector<2x192xf32> -> vector<2x192xf32>
    %154 = vector.broadcast %32 : vector<1x192xf32> to vector<2x192xf32>
    %155 = arith.addf %153, %154 : vector<2x192xf32>
    %156 = vector.extract_strided_slice %155 {offsets = [0, 0], sizes = [2, 96], strides = [1, 1]} : vector<2x192xf32> to vector<2x96xf32>
    %157 = vector.extract_strided_slice %155 {offsets = [0, 96], sizes = [2, 96], strides = [1, 1]} : vector<2x192xf32> to vector<2x96xf32>
    %158 = vector.extract_strided_slice %156 {offsets = [0, 0], sizes = [2, 32], strides = [1, 1]} : vector<2x96xf32> to vector<2x32xf32>
    %159 = vector.extract_strided_slice %157 {offsets = [0, 0], sizes = [2, 32], strides = [1, 1]} : vector<2x96xf32> to vector<2x32xf32>
    %160 = arith.addf %158, %159 : vector<2x32xf32>
    %161 = arith.negf %160 : vector<2x32xf32>
    %162 = math.exp %161 : vector<2x32xf32>
    %cst_74 = arith.constant 1.000000e+00 : f32
    %163 = vector.broadcast %cst_74 : f32 to vector<2x32xf32>
    %164 = arith.addf %163, %162 : vector<2x32xf32>
    %165 = arith.divf %163, %164 : vector<2x32xf32>
    %166 = vector.extract_strided_slice %156 {offsets = [0, 32], sizes = [2, 32], strides = [1, 1]} : vector<2x96xf32> to vector<2x32xf32>
    %167 = vector.extract_strided_slice %157 {offsets = [0, 32], sizes = [2, 32], strides = [1, 1]} : vector<2x96xf32> to vector<2x32xf32>
    %168 = arith.addf %166, %167 : vector<2x32xf32>
    %169 = arith.negf %168 : vector<2x32xf32>
    %170 = math.exp %169 : vector<2x32xf32>
    %cst_75 = arith.constant 1.000000e+00 : f32
    %171 = vector.broadcast %cst_75 : f32 to vector<2x32xf32>
    %172 = arith.addf %171, %170 : vector<2x32xf32>
    %173 = arith.divf %171, %172 : vector<2x32xf32>
    %174 = vector.extract_strided_slice %156 {offsets = [0, 64], sizes = [2, 32], strides = [1, 1]} : vector<2x96xf32> to vector<2x32xf32>
    %175 = vector.extract_strided_slice %157 {offsets = [0, 64], sizes = [2, 32], strides = [1, 1]} : vector<2x96xf32> to vector<2x32xf32>
    %176 = arith.mulf %165, %175 : vector<2x32xf32>
    %177 = arith.addf %174, %176 : vector<2x32xf32>
    %178 = math.tanh %177 : vector<2x32xf32>
    %cst_76 = arith.constant 1.000000e+00 : f32
    %179 = vector.broadcast %cst_76 : f32 to vector<2x32xf32>
    %180 = arith.subf %179, %173 : vector<2x32xf32>
    %181 = arith.mulf %180, %178 : vector<2x32xf32>
    %182 = arith.mulf %173, %151 : vector<2x32xf32>
    %183 = arith.addf %181, %182 : vector<2x32xf32>
    %c1_77 = arith.constant 1 : index
    %c0_78 = arith.constant 0 : index
    %c0_79 = arith.constant 0 : index
    %184 = vector.load %arg14[%c1_77, %c0_78, %c0_79] : memref<2x2x32xf32, #tpu.memory_space<vmem>>, vector<1x2x32xf32>
    %185 = vector.shape_cast %184 : vector<1x2x32xf32> to vector<2x32xf32>
    %186 = vector.shape_cast %183 : vector<2x32xf32> to vector<1x2x32xf32>
    tpu.vector_store %arg14[%c1_77, %c0_78, %c0_79], %186 {strides = array<i32>} : memref<2x2x32xf32, #tpu.memory_space<vmem>>, vector<1x2x32xf32>,
    %187 = arith.index_cast %c1_i32 : i32 to index
    %c0_80 = arith.constant 0 : index
    %c0_81 = arith.constant 0 : index
    %188 = vector.load %arg16[%187, %c0_80, %c0_81] : memref<8x2x32xf32, #tpu.memory_space<vmem>>, vector<1x2x32xf32>
    %189 = vector.shape_cast %188 : vector<1x2x32xf32> to vector<2x32xf32>
    %190 = vector.shape_cast %183 : vector<2x32xf32> to vector<1x2x32xf32>
    tpu.vector_store %arg16[%187, %c0_80, %c0_81], %190 {strides = array<i32>} : memref<8x2x32xf32, #tpu.memory_space<vmem>>, vector<1x2x32xf32>,
    %c2_i32 = arith.constant 2 : i32
    %c0_82 = arith.constant 0 : index
    %c0_83 = arith.constant 0 : index
    %c0_84 = arith.constant 0 : index
    %191 = vector.load %arg14[%c0_82, %c0_83, %c0_84] : memref<2x2x32xf32, #tpu.memory_space<vmem>>, vector<1x2x32xf32>
    %192 = vector.shape_cast %191 : vector<1x2x32xf32> to vector<2x32xf32>
    %193 = arith.index_cast %c2_i32 : i32 to index
    %c0_85 = arith.constant 0 : index
    %c0_86 = arith.constant 0 : index
    %194 = vector.load %arg15[%193, %c0_85, %c0_86] : memref<8x2x96xf32, #tpu.memory_space<vmem>>, vector<1x2x96xf32>
    %195 = vector.shape_cast %194 : vector<1x2x96xf32> to vector<2x96xf32>
    %cst_87 = arith.constant dense<0.000000e+00> : vector<2x96xf32>
    %196 = tpu.matmul %192, %27, %cst_87 {dimension_numbers = #tpu.dot_dimension_numbers<[1], [0], [0], [1], [0, 0, 1, 1], [], []>} : vector<2x32xf32>, vector<32x96xf32>, vector<2x96xf32> -> vector<2x96xf32>
    %197 = vector.broadcast %28 : vector<1x96xf32> to vector<2x96xf32>
    %198 = arith.addf %196, %197 : vector<2x96xf32>
    %199 = vector.extract_strided_slice %195 {offsets = [0, 0], sizes = [2, 32], strides = [1, 1]} : vector<2x96xf32> to vector<2x32xf32>
    %200 = vector.extract_strided_slice %198 {offsets = [0, 0], sizes = [2, 32], strides = [1, 1]} : vector<2x96xf32> to vector<2x32xf32>
    %201 = arith.addf %199, %200 : vector<2x32xf32>
    %202 = arith.negf %201 : vector<2x32xf32>
    %203 = math.exp %202 : vector<2x32xf32>
    %cst_88 = arith.constant 1.000000e+00 : f32
    %204 = vector.broadcast %cst_88 : f32 to vector<2x32xf32>
    %205 = arith.addf %204, %203 : vector<2x32xf32>
    %206 = arith.divf %204, %205 : vector<2x32xf32>
    %207 = vector.extract_strided_slice %195 {offsets = [0, 32], sizes = [2, 32], strides = [1, 1]} : vector<2x96xf32> to vector<2x32xf32>
    %208 = vector.extract_strided_slice %198 {offsets = [0, 32], sizes = [2, 32], strides = [1, 1]} : vector<2x96xf32> to vector<2x32xf32>
    %209 = arith.addf %207, %208 : vector<2x32xf32>
    %210 = arith.negf %209 : vector<2x32xf32>
    %211 = math.exp %210 : vector<2x32xf32>
    %cst_89 = arith.constant 1.000000e+00 : f32
    %212 = vector.broadcast %cst_89 : f32 to vector<2x32xf32>
    %213 = arith.addf %212, %211 : vector<2x32xf32>
    %214 = arith.divf %212, %213 : vector<2x32xf32>
    %215 = vector.extract_strided_slice %195 {offsets = [0, 64], sizes = [2, 32], strides = [1, 1]} : vector<2x96xf32> to vector<2x32xf32>
    %216 = vector.extract_strided_slice %198 {offsets = [0, 64], sizes = [2, 32], strides = [1, 1]} : vector<2x96xf32> to vector<2x32xf32>
    %217 = arith.mulf %206, %216 : vector<2x32xf32>
    %218 = arith.addf %215, %217 : vector<2x32xf32>
    %219 = math.tanh %218 : vector<2x32xf32>
    %cst_90 = arith.constant 1.000000e+00 : f32
    %220 = vector.broadcast %cst_90 : f32 to vector<2x32xf32>
    %221 = arith.subf %220, %214 : vector<2x32xf32>
    %222 = arith.mulf %221, %219 : vector<2x32xf32>
    %223 = arith.mulf %214, %192 : vector<2x32xf32>
    %224 = arith.addf %222, %223 : vector<2x32xf32>
    %c0_91 = arith.constant 0 : index
    %c0_92 = arith.constant 0 : index
    %c0_93 = arith.constant 0 : index
    %225 = vector.load %arg14[%c0_91, %c0_92, %c0_93] : memref<2x2x32xf32, #tpu.memory_space<vmem>>, vector<1x2x32xf32>
    %226 = vector.shape_cast %225 : vector<1x2x32xf32> to vector<2x32xf32>
    %227 = vector.shape_cast %224 : vector<2x32xf32> to vector<1x2x32xf32>
    tpu.vector_store %arg14[%c0_91, %c0_92, %c0_93], %227 {strides = array<i32>} : memref<2x2x32xf32, #tpu.memory_space<vmem>>, vector<1x2x32xf32>,
    %c1_94 = arith.constant 1 : index
    %c0_95 = arith.constant 0 : index
    %c0_96 = arith.constant 0 : index
    %228 = vector.load %arg14[%c1_94, %c0_95, %c0_96] : memref<2x2x32xf32, #tpu.memory_space<vmem>>, vector<1x2x32xf32>
    %229 = vector.shape_cast %228 : vector<1x2x32xf32> to vector<2x32xf32>
    %230 = tpu.concatenate %224, %229 in 1 : vector<2x32xf32>, vector<2x32xf32> -> vector<2x64xf32>
    %cst_97 = arith.constant dense<0.000000e+00> : vector<2x192xf32>
    %231 = tpu.matmul %230, %30, %cst_97 {dimension_numbers = #tpu.dot_dimension_numbers<[1], [0], [0], [1], [0, 0, 1, 1], [], []>} : vector<2x64xf32>, vector<64x192xf32>, vector<2x192xf32> -> vector<2x192xf32>
    %232 = vector.broadcast %32 : vector<1x192xf32> to vector<2x192xf32>
    %233 = arith.addf %231, %232 : vector<2x192xf32>
    %234 = vector.extract_strided_slice %233 {offsets = [0, 0], sizes = [2, 96], strides = [1, 1]} : vector<2x192xf32> to vector<2x96xf32>
    %235 = vector.extract_strided_slice %233 {offsets = [0, 96], sizes = [2, 96], strides = [1, 1]} : vector<2x192xf32> to vector<2x96xf32>
    %236 = vector.extract_strided_slice %234 {offsets = [0, 0], sizes = [2, 32], strides = [1, 1]} : vector<2x96xf32> to vector<2x32xf32>
    %237 = vector.extract_strided_slice %235 {offsets = [0, 0], sizes = [2, 32], strides = [1, 1]} : vector<2x96xf32> to vector<2x32xf32>
    %238 = arith.addf %236, %237 : vector<2x32xf32>
    %239 = arith.negf %238 : vector<2x32xf32>
    %240 = math.exp %239 : vector<2x32xf32>
    %cst_98 = arith.constant 1.000000e+00 : f32
    %241 = vector.broadcast %cst_98 : f32 to vector<2x32xf32>
    %242 = arith.addf %241, %240 : vector<2x32xf32>
    %243 = arith.divf %241, %242 : vector<2x32xf32>
    %244 = vector.extract_strided_slice %234 {offsets = [0, 32], sizes = [2, 32], strides = [1, 1]} : vector<2x96xf32> to vector<2x32xf32>
    %245 = vector.extract_strided_slice %235 {offsets = [0, 32], sizes = [2, 32], strides = [1, 1]} : vector<2x96xf32> to vector<2x32xf32>
    %246 = arith.addf %244, %245 : vector<2x32xf32>
    %247 = arith.negf %246 : vector<2x32xf32>
    %248 = math.exp %247 : vector<2x32xf32>
    %cst_99 = arith.constant 1.000000e+00 : f32
    %249 = vector.broadcast %cst_99 : f32 to vector<2x32xf32>
    %250 = arith.addf %249, %248 : vector<2x32xf32>
    %251 = arith.divf %249, %250 : vector<2x32xf32>
    %252 = vector.extract_strided_slice %234 {offsets = [0, 64], sizes = [2, 32], strides = [1, 1]} : vector<2x96xf32> to vector<2x32xf32>
    %253 = vector.extract_strided_slice %235 {offsets = [0, 64], sizes = [2, 32], strides = [1, 1]} : vector<2x96xf32> to vector<2x32xf32>
    %254 = arith.mulf %243, %253 : vector<2x32xf32>
    %255 = arith.addf %252, %254 : vector<2x32xf32>
    %256 = math.tanh %255 : vector<2x32xf32>
    %cst_100 = arith.constant 1.000000e+00 : f32
    %257 = vector.broadcast %cst_100 : f32 to vector<2x32xf32>
    %258 = arith.subf %257, %251 : vector<2x32xf32>
    %259 = arith.mulf %258, %256 : vector<2x32xf32>
    %260 = arith.mulf %251, %229 : vector<2x32xf32>
    %261 = arith.addf %259, %260 : vector<2x32xf32>
    %c1_101 = arith.constant 1 : index
    %c0_102 = arith.constant 0 : index
    %c0_103 = arith.constant 0 : index
    %262 = vector.load %arg14[%c1_101, %c0_102, %c0_103] : memref<2x2x32xf32, #tpu.memory_space<vmem>>, vector<1x2x32xf32>
    %263 = vector.shape_cast %262 : vector<1x2x32xf32> to vector<2x32xf32>
    %264 = vector.shape_cast %261 : vector<2x32xf32> to vector<1x2x32xf32>
    tpu.vector_store %arg14[%c1_101, %c0_102, %c0_103], %264 {strides = array<i32>} : memref<2x2x32xf32, #tpu.memory_space<vmem>>, vector<1x2x32xf32>,
    %265 = arith.index_cast %c2_i32 : i32 to index
    %c0_104 = arith.constant 0 : index
    %c0_105 = arith.constant 0 : index
    %266 = vector.load %arg16[%265, %c0_104, %c0_105] : memref<8x2x32xf32, #tpu.memory_space<vmem>>, vector<1x2x32xf32>
    %267 = vector.shape_cast %266 : vector<1x2x32xf32> to vector<2x32xf32>
    %268 = vector.shape_cast %261 : vector<2x32xf32> to vector<1x2x32xf32>
    tpu.vector_store %arg16[%265, %c0_104, %c0_105], %268 {strides = array<i32>} : memref<8x2x32xf32, #tpu.memory_space<vmem>>, vector<1x2x32xf32>,
    %c3_i32 = arith.constant 3 : i32
    %c0_106 = arith.constant 0 : index
    %c0_107 = arith.constant 0 : index
    %c0_108 = arith.constant 0 : index
    %269 = vector.load %arg14[%c0_106, %c0_107, %c0_108] : memref<2x2x32xf32, #tpu.memory_space<vmem>>, vector<1x2x32xf32>
    %270 = vector.shape_cast %269 : vector<1x2x32xf32> to vector<2x32xf32>
    %271 = arith.index_cast %c3_i32 : i32 to index
    %c0_109 = arith.constant 0 : index
    %c0_110 = arith.constant 0 : index
    %272 = vector.load %arg15[%271, %c0_109, %c0_110] : memref<8x2x96xf32, #tpu.memory_space<vmem>>, vector<1x2x96xf32>
    %273 = vector.shape_cast %272 : vector<1x2x96xf32> to vector<2x96xf32>
    %cst_111 = arith.constant dense<0.000000e+00> : vector<2x96xf32>
    %274 = tpu.matmul %270, %27, %cst_111 {dimension_numbers = #tpu.dot_dimension_numbers<[1], [0], [0], [1], [0, 0, 1, 1], [], []>} : vector<2x32xf32>, vector<32x96xf32>, vector<2x96xf32> -> vector<2x96xf32>
    %275 = vector.broadcast %28 : vector<1x96xf32> to vector<2x96xf32>
    %276 = arith.addf %274, %275 : vector<2x96xf32>
    %277 = vector.extract_strided_slice %273 {offsets = [0, 0], sizes = [2, 32], strides = [1, 1]} : vector<2x96xf32> to vector<2x32xf32>
    %278 = vector.extract_strided_slice %276 {offsets = [0, 0], sizes = [2, 32], strides = [1, 1]} : vector<2x96xf32> to vector<2x32xf32>
    %279 = arith.addf %277, %278 : vector<2x32xf32>
    %280 = arith.negf %279 : vector<2x32xf32>
    %281 = math.exp %280 : vector<2x32xf32>
    %cst_112 = arith.constant 1.000000e+00 : f32
    %282 = vector.broadcast %cst_112 : f32 to vector<2x32xf32>
    %283 = arith.addf %282, %281 : vector<2x32xf32>
    %284 = arith.divf %282, %283 : vector<2x32xf32>
    %285 = vector.extract_strided_slice %273 {offsets = [0, 32], sizes = [2, 32], strides = [1, 1]} : vector<2x96xf32> to vector<2x32xf32>
    %286 = vector.extract_strided_slice %276 {offsets = [0, 32], sizes = [2, 32], strides = [1, 1]} : vector<2x96xf32> to vector<2x32xf32>
    %287 = arith.addf %285, %286 : vector<2x32xf32>
    %288 = arith.negf %287 : vector<2x32xf32>
    %289 = math.exp %288 : vector<2x32xf32>
    %cst_113 = arith.constant 1.000000e+00 : f32
    %290 = vector.broadcast %cst_113 : f32 to vector<2x32xf32>
    %291 = arith.addf %290, %289 : vector<2x32xf32>
    %292 = arith.divf %290, %291 : vector<2x32xf32>
    %293 = vector.extract_strided_slice %273 {offsets = [0, 64], sizes = [2, 32], strides = [1, 1]} : vector<2x96xf32> to vector<2x32xf32>
    %294 = vector.extract_strided_slice %276 {offsets = [0, 64], sizes = [2, 32], strides = [1, 1]} : vector<2x96xf32> to vector<2x32xf32>
    %295 = arith.mulf %284, %294 : vector<2x32xf32>
    %296 = arith.addf %293, %295 : vector<2x32xf32>
    %297 = math.tanh %296 : vector<2x32xf32>
    %cst_114 = arith.constant 1.000000e+00 : f32
    %298 = vector.broadcast %cst_114 : f32 to vector<2x32xf32>
    %299 = arith.subf %298, %292 : vector<2x32xf32>
    %300 = arith.mulf %299, %297 : vector<2x32xf32>
    %301 = arith.mulf %292, %270 : vector<2x32xf32>
    %302 = arith.addf %300, %301 : vector<2x32xf32>
    %c0_115 = arith.constant 0 : index
    %c0_116 = arith.constant 0 : index
    %c0_117 = arith.constant 0 : index
    %303 = vector.load %arg14[%c0_115, %c0_116, %c0_117] : memref<2x2x32xf32, #tpu.memory_space<vmem>>, vector<1x2x32xf32>
    %304 = vector.shape_cast %303 : vector<1x2x32xf32> to vector<2x32xf32>
    %305 = vector.shape_cast %302 : vector<2x32xf32> to vector<1x2x32xf32>
    tpu.vector_store %arg14[%c0_115, %c0_116, %c0_117], %305 {strides = array<i32>} : memref<2x2x32xf32, #tpu.memory_space<vmem>>, vector<1x2x32xf32>,
    %c1_118 = arith.constant 1 : index
    %c0_119 = arith.constant 0 : index
    %c0_120 = arith.constant 0 : index
    %306 = vector.load %arg14[%c1_118, %c0_119, %c0_120] : memref<2x2x32xf32, #tpu.memory_space<vmem>>, vector<1x2x32xf32>
    %307 = vector.shape_cast %306 : vector<1x2x32xf32> to vector<2x32xf32>
    %308 = tpu.concatenate %302, %307 in 1 : vector<2x32xf32>, vector<2x32xf32> -> vector<2x64xf32>
    %cst_121 = arith.constant dense<0.000000e+00> : vector<2x192xf32>
    %309 = tpu.matmul %308, %30, %cst_121 {dimension_numbers = #tpu.dot_dimension_numbers<[1], [0], [0], [1], [0, 0, 1, 1], [], []>} : vector<2x64xf32>, vector<64x192xf32>, vector<2x192xf32> -> vector<2x192xf32>
    %310 = vector.broadcast %32 : vector<1x192xf32> to vector<2x192xf32>
    %311 = arith.addf %309, %310 : vector<2x192xf32>
    %312 = vector.extract_strided_slice %311 {offsets = [0, 0], sizes = [2, 96], strides = [1, 1]} : vector<2x192xf32> to vector<2x96xf32>
    %313 = vector.extract_strided_slice %311 {offsets = [0, 96], sizes = [2, 96], strides = [1, 1]} : vector<2x192xf32> to vector<2x96xf32>
    %314 = vector.extract_strided_slice %312 {offsets = [0, 0], sizes = [2, 32], strides = [1, 1]} : vector<2x96xf32> to vector<2x32xf32>
    %315 = vector.extract_strided_slice %313 {offsets = [0, 0], sizes = [2, 32], strides = [1, 1]} : vector<2x96xf32> to vector<2x32xf32>
    %316 = arith.addf %314, %315 : vector<2x32xf32>
    %317 = arith.negf %316 : vector<2x32xf32>
    %318 = math.exp %317 : vector<2x32xf32>
    %cst_122 = arith.constant 1.000000e+00 : f32
    %319 = vector.broadcast %cst_122 : f32 to vector<2x32xf32>
    %320 = arith.addf %319, %318 : vector<2x32xf32>
    %321 = arith.divf %319, %320 : vector<2x32xf32>
    %322 = vector.extract_strided_slice %312 {offsets = [0, 32], sizes = [2, 32], strides = [1, 1]} : vector<2x96xf32> to vector<2x32xf32>
    %323 = vector.extract_strided_slice %313 {offsets = [0, 32], sizes = [2, 32], strides = [1, 1]} : vector<2x96xf32> to vector<2x32xf32>
    %324 = arith.addf %322, %323 : vector<2x32xf32>
    %325 = arith.negf %324 : vector<2x32xf32>
    %326 = math.exp %325 : vector<2x32xf32>
    %cst_123 = arith.constant 1.000000e+00 : f32
    %327 = vector.broadcast %cst_123 : f32 to vector<2x32xf32>
    %328 = arith.addf %327, %326 : vector<2x32xf32>
    %329 = arith.divf %327, %328 : vector<2x32xf32>
    %330 = vector.extract_strided_slice %312 {offsets = [0, 64], sizes = [2, 32], strides = [1, 1]} : vector<2x96xf32> to vector<2x32xf32>
    %331 = vector.extract_strided_slice %313 {offsets = [0, 64], sizes = [2, 32], strides = [1, 1]} : vector<2x96xf32> to vector<2x32xf32>
    %332 = arith.mulf %321, %331 : vector<2x32xf32>
    %333 = arith.addf %330, %332 : vector<2x32xf32>
    %334 = math.tanh %333 : vector<2x32xf32>
    %cst_124 = arith.constant 1.000000e+00 : f32
    %335 = vector.broadcast %cst_124 : f32 to vector<2x32xf32>
    %336 = arith.subf %335, %329 : vector<2x32xf32>
    %337 = arith.mulf %336, %334 : vector<2x32xf32>
    %338 = arith.mulf %329, %307 : vector<2x32xf32>
    %339 = arith.addf %337, %338 : vector<2x32xf32>
    %c1_125 = arith.constant 1 : index
    %c0_126 = arith.constant 0 : index
    %c0_127 = arith.constant 0 : index
    %340 = vector.load %arg14[%c1_125, %c0_126, %c0_127] : memref<2x2x32xf32, #tpu.memory_space<vmem>>, vector<1x2x32xf32>
    %341 = vector.shape_cast %340 : vector<1x2x32xf32> to vector<2x32xf32>
    %342 = vector.shape_cast %339 : vector<2x32xf32> to vector<1x2x32xf32>
    tpu.vector_store %arg14[%c1_125, %c0_126, %c0_127], %342 {strides = array<i32>} : memref<2x2x32xf32, #tpu.memory_space<vmem>>, vector<1x2x32xf32>,
    %343 = arith.index_cast %c3_i32 : i32 to index
    %c0_128 = arith.constant 0 : index
    %c0_129 = arith.constant 0 : index
    %344 = vector.load %arg16[%343, %c0_128, %c0_129] : memref<8x2x32xf32, #tpu.memory_space<vmem>>, vector<1x2x32xf32>
    %345 = vector.shape_cast %344 : vector<1x2x32xf32> to vector<2x32xf32>
    %346 = vector.shape_cast %339 : vector<2x32xf32> to vector<1x2x32xf32>
    tpu.vector_store %arg16[%343, %c0_128, %c0_129], %346 {strides = array<i32>} : memref<8x2x32xf32, #tpu.memory_space<vmem>>, vector<1x2x32xf32>,
    %c4_i32 = arith.constant 4 : i32
    %c0_130 = arith.constant 0 : index
    %c0_131 = arith.constant 0 : index
    %c0_132 = arith.constant 0 : index
    %347 = vector.load %arg14[%c0_130, %c0_131, %c0_132] : memref<2x2x32xf32, #tpu.memory_space<vmem>>, vector<1x2x32xf32>
    %348 = vector.shape_cast %347 : vector<1x2x32xf32> to vector<2x32xf32>
    %349 = arith.index_cast %c4_i32 : i32 to index
    %c0_133 = arith.constant 0 : index
    %c0_134 = arith.constant 0 : index
    %350 = vector.load %arg15[%349, %c0_133, %c0_134] : memref<8x2x96xf32, #tpu.memory_space<vmem>>, vector<1x2x96xf32>
    %351 = vector.shape_cast %350 : vector<1x2x96xf32> to vector<2x96xf32>
    %cst_135 = arith.constant dense<0.000000e+00> : vector<2x96xf32>
    %352 = tpu.matmul %348, %27, %cst_135 {dimension_numbers = #tpu.dot_dimension_numbers<[1], [0], [0], [1], [0, 0, 1, 1], [], []>} : vector<2x32xf32>, vector<32x96xf32>, vector<2x96xf32> -> vector<2x96xf32>
    %353 = vector.broadcast %28 : vector<1x96xf32> to vector<2x96xf32>
    %354 = arith.addf %352, %353 : vector<2x96xf32>
    %355 = vector.extract_strided_slice %351 {offsets = [0, 0], sizes = [2, 32], strides = [1, 1]} : vector<2x96xf32> to vector<2x32xf32>
    %356 = vector.extract_strided_slice %354 {offsets = [0, 0], sizes = [2, 32], strides = [1, 1]} : vector<2x96xf32> to vector<2x32xf32>
    %357 = arith.addf %355, %356 : vector<2x32xf32>
    %358 = arith.negf %357 : vector<2x32xf32>
    %359 = math.exp %358 : vector<2x32xf32>
    %cst_136 = arith.constant 1.000000e+00 : f32
    %360 = vector.broadcast %cst_136 : f32 to vector<2x32xf32>
    %361 = arith.addf %360, %359 : vector<2x32xf32>
    %362 = arith.divf %360, %361 : vector<2x32xf32>
    %363 = vector.extract_strided_slice %351 {offsets = [0, 32], sizes = [2, 32], strides = [1, 1]} : vector<2x96xf32> to vector<2x32xf32>
    %364 = vector.extract_strided_slice %354 {offsets = [0, 32], sizes = [2, 32], strides = [1, 1]} : vector<2x96xf32> to vector<2x32xf32>
    %365 = arith.addf %363, %364 : vector<2x32xf32>
    %366 = arith.negf %365 : vector<2x32xf32>
    %367 = math.exp %366 : vector<2x32xf32>
    %cst_137 = arith.constant 1.000000e+00 : f32
    %368 = vector.broadcast %cst_137 : f32 to vector<2x32xf32>
    %369 = arith.addf %368, %367 : vector<2x32xf32>
    %370 = arith.divf %368, %369 : vector<2x32xf32>
    %371 = vector.extract_strided_slice %351 {offsets = [0, 64], sizes = [2, 32], strides = [1, 1]} : vector<2x96xf32> to vector<2x32xf32>
    %372 = vector.extract_strided_slice %354 {offsets = [0, 64], sizes = [2, 32], strides = [1, 1]} : vector<2x96xf32> to vector<2x32xf32>
    %373 = arith.mulf %362, %372 : vector<2x32xf32>
    %374 = arith.addf %371, %373 : vector<2x32xf32>
    %375 = math.tanh %374 : vector<2x32xf32>
    %cst_138 = arith.constant 1.000000e+00 : f32
    %376 = vector.broadcast %cst_138 : f32 to vector<2x32xf32>
    %377 = arith.subf %376, %370 : vector<2x32xf32>
    %378 = arith.mulf %377, %375 : vector<2x32xf32>
    %379 = arith.mulf %370, %348 : vector<2x32xf32>
    %380 = arith.addf %378, %379 : vector<2x32xf32>
    %c0_139 = arith.constant 0 : index
    %c0_140 = arith.constant 0 : index
    %c0_141 = arith.constant 0 : index
    %381 = vector.load %arg14[%c0_139, %c0_140, %c0_141] : memref<2x2x32xf32, #tpu.memory_space<vmem>>, vector<1x2x32xf32>
    %382 = vector.shape_cast %381 : vector<1x2x32xf32> to vector<2x32xf32>
    %383 = vector.shape_cast %380 : vector<2x32xf32> to vector<1x2x32xf32>
    tpu.vector_store %arg14[%c0_139, %c0_140, %c0_141], %383 {strides = array<i32>} : memref<2x2x32xf32, #tpu.memory_space<vmem>>, vector<1x2x32xf32>,
    %c1_142 = arith.constant 1 : index
    %c0_143 = arith.constant 0 : index
    %c0_144 = arith.constant 0 : index
    %384 = vector.load %arg14[%c1_142, %c0_143, %c0_144] : memref<2x2x32xf32, #tpu.memory_space<vmem>>, vector<1x2x32xf32>
    %385 = vector.shape_cast %384 : vector<1x2x32xf32> to vector<2x32xf32>
    %386 = tpu.concatenate %380, %385 in 1 : vector<2x32xf32>, vector<2x32xf32> -> vector<2x64xf32>
    %cst_145 = arith.constant dense<0.000000e+00> : vector<2x192xf32>
    %387 = tpu.matmul %386, %30, %cst_145 {dimension_numbers = #tpu.dot_dimension_numbers<[1], [0], [0], [1], [0, 0, 1, 1], [], []>} : vector<2x64xf32>, vector<64x192xf32>, vector<2x192xf32> -> vector<2x192xf32>
    %388 = vector.broadcast %32 : vector<1x192xf32> to vector<2x192xf32>
    %389 = arith.addf %387, %388 : vector<2x192xf32>
    %390 = vector.extract_strided_slice %389 {offsets = [0, 0], sizes = [2, 96], strides = [1, 1]} : vector<2x192xf32> to vector<2x96xf32>
    %391 = vector.extract_strided_slice %389 {offsets = [0, 96], sizes = [2, 96], strides = [1, 1]} : vector<2x192xf32> to vector<2x96xf32>
    %392 = vector.extract_strided_slice %390 {offsets = [0, 0], sizes = [2, 32], strides = [1, 1]} : vector<2x96xf32> to vector<2x32xf32>
    %393 = vector.extract_strided_slice %391 {offsets = [0, 0], sizes = [2, 32], strides = [1, 1]} : vector<2x96xf32> to vector<2x32xf32>
    %394 = arith.addf %392, %393 : vector<2x32xf32>
    %395 = arith.negf %394 : vector<2x32xf32>
    %396 = math.exp %395 : vector<2x32xf32>
    %cst_146 = arith.constant 1.000000e+00 : f32
    %397 = vector.broadcast %cst_146 : f32 to vector<2x32xf32>
    %398 = arith.addf %397, %396 : vector<2x32xf32>
    %399 = arith.divf %397, %398 : vector<2x32xf32>
    %400 = vector.extract_strided_slice %390 {offsets = [0, 32], sizes = [2, 32], strides = [1, 1]} : vector<2x96xf32> to vector<2x32xf32>
    %401 = vector.extract_strided_slice %391 {offsets = [0, 32], sizes = [2, 32], strides = [1, 1]} : vector<2x96xf32> to vector<2x32xf32>
    %402 = arith.addf %400, %401 : vector<2x32xf32>
    %403 = arith.negf %402 : vector<2x32xf32>
    %404 = math.exp %403 : vector<2x32xf32>
    %cst_147 = arith.constant 1.000000e+00 : f32
    %405 = vector.broadcast %cst_147 : f32 to vector<2x32xf32>
    %406 = arith.addf %405, %404 : vector<2x32xf32>
    %407 = arith.divf %405, %406 : vector<2x32xf32>
    %408 = vector.extract_strided_slice %390 {offsets = [0, 64], sizes = [2, 32], strides = [1, 1]} : vector<2x96xf32> to vector<2x32xf32>
    %409 = vector.extract_strided_slice %391 {offsets = [0, 64], sizes = [2, 32], strides = [1, 1]} : vector<2x96xf32> to vector<2x32xf32>
    %410 = arith.mulf %399, %409 : vector<2x32xf32>
    %411 = arith.addf %408, %410 : vector<2x32xf32>
    %412 = math.tanh %411 : vector<2x32xf32>
    %cst_148 = arith.constant 1.000000e+00 : f32
    %413 = vector.broadcast %cst_148 : f32 to vector<2x32xf32>
    %414 = arith.subf %413, %407 : vector<2x32xf32>
    %415 = arith.mulf %414, %412 : vector<2x32xf32>
    %416 = arith.mulf %407, %385 : vector<2x32xf32>
    %417 = arith.addf %415, %416 : vector<2x32xf32>
    %c1_149 = arith.constant 1 : index
    %c0_150 = arith.constant 0 : index
    %c0_151 = arith.constant 0 : index
    %418 = vector.load %arg14[%c1_149, %c0_150, %c0_151] : memref<2x2x32xf32, #tpu.memory_space<vmem>>, vector<1x2x32xf32>
    %419 = vector.shape_cast %418 : vector<1x2x32xf32> to vector<2x32xf32>
    %420 = vector.shape_cast %417 : vector<2x32xf32> to vector<1x2x32xf32>
    tpu.vector_store %arg14[%c1_149, %c0_150, %c0_151], %420 {strides = array<i32>} : memref<2x2x32xf32, #tpu.memory_space<vmem>>, vector<1x2x32xf32>,
    %421 = arith.index_cast %c4_i32 : i32 to index
    %c0_152 = arith.constant 0 : index
    %c0_153 = arith.constant 0 : index
    %422 = vector.load %arg16[%421, %c0_152, %c0_153] : memref<8x2x32xf32, #tpu.memory_space<vmem>>, vector<1x2x32xf32>
    %423 = vector.shape_cast %422 : vector<1x2x32xf32> to vector<2x32xf32>
    %424 = vector.shape_cast %417 : vector<2x32xf32> to vector<1x2x32xf32>
    tpu.vector_store %arg16[%421, %c0_152, %c0_153], %424 {strides = array<i32>} : memref<8x2x32xf32, #tpu.memory_space<vmem>>, vector<1x2x32xf32>,
    %c5_i32 = arith.constant 5 : i32
    %c0_154 = arith.constant 0 : index
    %c0_155 = arith.constant 0 : index
    %c0_156 = arith.constant 0 : index
    %425 = vector.load %arg14[%c0_154, %c0_155, %c0_156] : memref<2x2x32xf32, #tpu.memory_space<vmem>>, vector<1x2x32xf32>
    %426 = vector.shape_cast %425 : vector<1x2x32xf32> to vector<2x32xf32>
    %427 = arith.index_cast %c5_i32 : i32 to index
    %c0_157 = arith.constant 0 : index
    %c0_158 = arith.constant 0 : index
    %428 = vector.load %arg15[%427, %c0_157, %c0_158] : memref<8x2x96xf32, #tpu.memory_space<vmem>>, vector<1x2x96xf32>
    %429 = vector.shape_cast %428 : vector<1x2x96xf32> to vector<2x96xf32>
    %cst_159 = arith.constant dense<0.000000e+00> : vector<2x96xf32>
    %430 = tpu.matmul %426, %27, %cst_159 {dimension_numbers = #tpu.dot_dimension_numbers<[1], [0], [0], [1], [0, 0, 1, 1], [], []>} : vector<2x32xf32>, vector<32x96xf32>, vector<2x96xf32> -> vector<2x96xf32>
    %431 = vector.broadcast %28 : vector<1x96xf32> to vector<2x96xf32>
    %432 = arith.addf %430, %431 : vector<2x96xf32>
    %433 = vector.extract_strided_slice %429 {offsets = [0, 0], sizes = [2, 32], strides = [1, 1]} : vector<2x96xf32> to vector<2x32xf32>
    %434 = vector.extract_strided_slice %432 {offsets = [0, 0], sizes = [2, 32], strides = [1, 1]} : vector<2x96xf32> to vector<2x32xf32>
    %435 = arith.addf %433, %434 : vector<2x32xf32>
    %436 = arith.negf %435 : vector<2x32xf32>
    %437 = math.exp %436 : vector<2x32xf32>
    %cst_160 = arith.constant 1.000000e+00 : f32
    %438 = vector.broadcast %cst_160 : f32 to vector<2x32xf32>
    %439 = arith.addf %438, %437 : vector<2x32xf32>
    %440 = arith.divf %438, %439 : vector<2x32xf32>
    %441 = vector.extract_strided_slice %429 {offsets = [0, 32], sizes = [2, 32], strides = [1, 1]} : vector<2x96xf32> to vector<2x32xf32>
    %442 = vector.extract_strided_slice %432 {offsets = [0, 32], sizes = [2, 32], strides = [1, 1]} : vector<2x96xf32> to vector<2x32xf32>
    %443 = arith.addf %441, %442 : vector<2x32xf32>
    %444 = arith.negf %443 : vector<2x32xf32>
    %445 = math.exp %444 : vector<2x32xf32>
    %cst_161 = arith.constant 1.000000e+00 : f32
    %446 = vector.broadcast %cst_161 : f32 to vector<2x32xf32>
    %447 = arith.addf %446, %445 : vector<2x32xf32>
    %448 = arith.divf %446, %447 : vector<2x32xf32>
    %449 = vector.extract_strided_slice %429 {offsets = [0, 64], sizes = [2, 32], strides = [1, 1]} : vector<2x96xf32> to vector<2x32xf32>
    %450 = vector.extract_strided_slice %432 {offsets = [0, 64], sizes = [2, 32], strides = [1, 1]} : vector<2x96xf32> to vector<2x32xf32>
    %451 = arith.mulf %440, %450 : vector<2x32xf32>
    %452 = arith.addf %449, %451 : vector<2x32xf32>
    %453 = math.tanh %452 : vector<2x32xf32>
    %cst_162 = arith.constant 1.000000e+00 : f32
    %454 = vector.broadcast %cst_162 : f32 to vector<2x32xf32>
    %455 = arith.subf %454, %448 : vector<2x32xf32>
    %456 = arith.mulf %455, %453 : vector<2x32xf32>
    %457 = arith.mulf %448, %426 : vector<2x32xf32>
    %458 = arith.addf %456, %457 : vector<2x32xf32>
    %c0_163 = arith.constant 0 : index
    %c0_164 = arith.constant 0 : index
    %c0_165 = arith.constant 0 : index
    %459 = vector.load %arg14[%c0_163, %c0_164, %c0_165] : memref<2x2x32xf32, #tpu.memory_space<vmem>>, vector<1x2x32xf32>
    %460 = vector.shape_cast %459 : vector<1x2x32xf32> to vector<2x32xf32>
    %461 = vector.shape_cast %458 : vector<2x32xf32> to vector<1x2x32xf32>
    tpu.vector_store %arg14[%c0_163, %c0_164, %c0_165], %461 {strides = array<i32>} : memref<2x2x32xf32, #tpu.memory_space<vmem>>, vector<1x2x32xf32>,
    %c1_166 = arith.constant 1 : index
    %c0_167 = arith.constant 0 : index
    %c0_168 = arith.constant 0 : index
    %462 = vector.load %arg14[%c1_166, %c0_167, %c0_168] : memref<2x2x32xf32, #tpu.memory_space<vmem>>, vector<1x2x32xf32>
    %463 = vector.shape_cast %462 : vector<1x2x32xf32> to vector<2x32xf32>
    %464 = tpu.concatenate %458, %463 in 1 : vector<2x32xf32>, vector<2x32xf32> -> vector<2x64xf32>
    %cst_169 = arith.constant dense<0.000000e+00> : vector<2x192xf32>
    %465 = tpu.matmul %464, %30, %cst_169 {dimension_numbers = #tpu.dot_dimension_numbers<[1], [0], [0], [1], [0, 0, 1, 1], [], []>} : vector<2x64xf32>, vector<64x192xf32>, vector<2x192xf32> -> vector<2x192xf32>
    %466 = vector.broadcast %32 : vector<1x192xf32> to vector<2x192xf32>
    %467 = arith.addf %465, %466 : vector<2x192xf32>
    %468 = vector.extract_strided_slice %467 {offsets = [0, 0], sizes = [2, 96], strides = [1, 1]} : vector<2x192xf32> to vector<2x96xf32>
    %469 = vector.extract_strided_slice %467 {offsets = [0, 96], sizes = [2, 96], strides = [1, 1]} : vector<2x192xf32> to vector<2x96xf32>
    %470 = vector.extract_strided_slice %468 {offsets = [0, 0], sizes = [2, 32], strides = [1, 1]} : vector<2x96xf32> to vector<2x32xf32>
    %471 = vector.extract_strided_slice %469 {offsets = [0, 0], sizes = [2, 32], strides = [1, 1]} : vector<2x96xf32> to vector<2x32xf32>
    %472 = arith.addf %470, %471 : vector<2x32xf32>
    %473 = arith.negf %472 : vector<2x32xf32>
    %474 = math.exp %473 : vector<2x32xf32>
    %cst_170 = arith.constant 1.000000e+00 : f32
    %475 = vector.broadcast %cst_170 : f32 to vector<2x32xf32>
    %476 = arith.addf %475, %474 : vector<2x32xf32>
    %477 = arith.divf %475, %476 : vector<2x32xf32>
    %478 = vector.extract_strided_slice %468 {offsets = [0, 32], sizes = [2, 32], strides = [1, 1]} : vector<2x96xf32> to vector<2x32xf32>
    %479 = vector.extract_strided_slice %469 {offsets = [0, 32], sizes = [2, 32], strides = [1, 1]} : vector<2x96xf32> to vector<2x32xf32>
    %480 = arith.addf %478, %479 : vector<2x32xf32>
    %481 = arith.negf %480 : vector<2x32xf32>
    %482 = math.exp %481 : vector<2x32xf32>
    %cst_171 = arith.constant 1.000000e+00 : f32
    %483 = vector.broadcast %cst_171 : f32 to vector<2x32xf32>
    %484 = arith.addf %483, %482 : vector<2x32xf32>
    %485 = arith.divf %483, %484 : vector<2x32xf32>
    %486 = vector.extract_strided_slice %468 {offsets = [0, 64], sizes = [2, 32], strides = [1, 1]} : vector<2x96xf32> to vector<2x32xf32>
    %487 = vector.extract_strided_slice %469 {offsets = [0, 64], sizes = [2, 32], strides = [1, 1]} : vector<2x96xf32> to vector<2x32xf32>
    %488 = arith.mulf %477, %487 : vector<2x32xf32>
    %489 = arith.addf %486, %488 : vector<2x32xf32>
    %490 = math.tanh %489 : vector<2x32xf32>
    %cst_172 = arith.constant 1.000000e+00 : f32
    %491 = vector.broadcast %cst_172 : f32 to vector<2x32xf32>
    %492 = arith.subf %491, %485 : vector<2x32xf32>
    %493 = arith.mulf %492, %490 : vector<2x32xf32>
    %494 = arith.mulf %485, %463 : vector<2x32xf32>
    %495 = arith.addf %493, %494 : vector<2x32xf32>
    %c1_173 = arith.constant 1 : index
    %c0_174 = arith.constant 0 : index
    %c0_175 = arith.constant 0 : index
    %496 = vector.load %arg14[%c1_173, %c0_174, %c0_175] : memref<2x2x32xf32, #tpu.memory_space<vmem>>, vector<1x2x32xf32>
    %497 = vector.shape_cast %496 : vector<1x2x32xf32> to vector<2x32xf32>
    %498 = vector.shape_cast %495 : vector<2x32xf32> to vector<1x2x32xf32>
    tpu.vector_store %arg14[%c1_173, %c0_174, %c0_175], %498 {strides = array<i32>} : memref<2x2x32xf32, #tpu.memory_space<vmem>>, vector<1x2x32xf32>,
    %499 = arith.index_cast %c5_i32 : i32 to index
    %c0_176 = arith.constant 0 : index
    %c0_177 = arith.constant 0 : index
    %500 = vector.load %arg16[%499, %c0_176, %c0_177] : memref<8x2x32xf32, #tpu.memory_space<vmem>>, vector<1x2x32xf32>
    %501 = vector.shape_cast %500 : vector<1x2x32xf32> to vector<2x32xf32>
    %502 = vector.shape_cast %495 : vector<2x32xf32> to vector<1x2x32xf32>
    tpu.vector_store %arg16[%499, %c0_176, %c0_177], %502 {strides = array<i32>} : memref<8x2x32xf32, #tpu.memory_space<vmem>>, vector<1x2x32xf32>,
    %c6_i32 = arith.constant 6 : i32
    %c0_178 = arith.constant 0 : index
    %c0_179 = arith.constant 0 : index
    %c0_180 = arith.constant 0 : index
    %503 = vector.load %arg14[%c0_178, %c0_179, %c0_180] : memref<2x2x32xf32, #tpu.memory_space<vmem>>, vector<1x2x32xf32>
    %504 = vector.shape_cast %503 : vector<1x2x32xf32> to vector<2x32xf32>
    %505 = arith.index_cast %c6_i32 : i32 to index
    %c0_181 = arith.constant 0 : index
    %c0_182 = arith.constant 0 : index
    %506 = vector.load %arg15[%505, %c0_181, %c0_182] : memref<8x2x96xf32, #tpu.memory_space<vmem>>, vector<1x2x96xf32>
    %507 = vector.shape_cast %506 : vector<1x2x96xf32> to vector<2x96xf32>
    %cst_183 = arith.constant dense<0.000000e+00> : vector<2x96xf32>
    %508 = tpu.matmul %504, %27, %cst_183 {dimension_numbers = #tpu.dot_dimension_numbers<[1], [0], [0], [1], [0, 0, 1, 1], [], []>} : vector<2x32xf32>, vector<32x96xf32>, vector<2x96xf32> -> vector<2x96xf32>
    %509 = vector.broadcast %28 : vector<1x96xf32> to vector<2x96xf32>
    %510 = arith.addf %508, %509 : vector<2x96xf32>
    %511 = vector.extract_strided_slice %507 {offsets = [0, 0], sizes = [2, 32], strides = [1, 1]} : vector<2x96xf32> to vector<2x32xf32>
    %512 = vector.extract_strided_slice %510 {offsets = [0, 0], sizes = [2, 32], strides = [1, 1]} : vector<2x96xf32> to vector<2x32xf32>
    %513 = arith.addf %511, %512 : vector<2x32xf32>
    %514 = arith.negf %513 : vector<2x32xf32>
    %515 = math.exp %514 : vector<2x32xf32>
    %cst_184 = arith.constant 1.000000e+00 : f32
    %516 = vector.broadcast %cst_184 : f32 to vector<2x32xf32>
    %517 = arith.addf %516, %515 : vector<2x32xf32>
    %518 = arith.divf %516, %517 : vector<2x32xf32>
    %519 = vector.extract_strided_slice %507 {offsets = [0, 32], sizes = [2, 32], strides = [1, 1]} : vector<2x96xf32> to vector<2x32xf32>
    %520 = vector.extract_strided_slice %510 {offsets = [0, 32], sizes = [2, 32], strides = [1, 1]} : vector<2x96xf32> to vector<2x32xf32>
    %521 = arith.addf %519, %520 : vector<2x32xf32>
    %522 = arith.negf %521 : vector<2x32xf32>
    %523 = math.exp %522 : vector<2x32xf32>
    %cst_185 = arith.constant 1.000000e+00 : f32
    %524 = vector.broadcast %cst_185 : f32 to vector<2x32xf32>
    %525 = arith.addf %524, %523 : vector<2x32xf32>
    %526 = arith.divf %524, %525 : vector<2x32xf32>
    %527 = vector.extract_strided_slice %507 {offsets = [0, 64], sizes = [2, 32], strides = [1, 1]} : vector<2x96xf32> to vector<2x32xf32>
    %528 = vector.extract_strided_slice %510 {offsets = [0, 64], sizes = [2, 32], strides = [1, 1]} : vector<2x96xf32> to vector<2x32xf32>
    %529 = arith.mulf %518, %528 : vector<2x32xf32>
    %530 = arith.addf %527, %529 : vector<2x32xf32>
    %531 = math.tanh %530 : vector<2x32xf32>
    %cst_186 = arith.constant 1.000000e+00 : f32
    %532 = vector.broadcast %cst_186 : f32 to vector<2x32xf32>
    %533 = arith.subf %532, %526 : vector<2x32xf32>
    %534 = arith.mulf %533, %531 : vector<2x32xf32>
    %535 = arith.mulf %526, %504 : vector<2x32xf32>
    %536 = arith.addf %534, %535 : vector<2x32xf32>
    %c0_187 = arith.constant 0 : index
    %c0_188 = arith.constant 0 : index
    %c0_189 = arith.constant 0 : index
    %537 = vector.load %arg14[%c0_187, %c0_188, %c0_189] : memref<2x2x32xf32, #tpu.memory_space<vmem>>, vector<1x2x32xf32>
    %538 = vector.shape_cast %537 : vector<1x2x32xf32> to vector<2x32xf32>
    %539 = vector.shape_cast %536 : vector<2x32xf32> to vector<1x2x32xf32>
    tpu.vector_store %arg14[%c0_187, %c0_188, %c0_189], %539 {strides = array<i32>} : memref<2x2x32xf32, #tpu.memory_space<vmem>>, vector<1x2x32xf32>,
    %c1_190 = arith.constant 1 : index
    %c0_191 = arith.constant 0 : index
    %c0_192 = arith.constant 0 : index
    %540 = vector.load %arg14[%c1_190, %c0_191, %c0_192] : memref<2x2x32xf32, #tpu.memory_space<vmem>>, vector<1x2x32xf32>
    %541 = vector.shape_cast %540 : vector<1x2x32xf32> to vector<2x32xf32>
    %542 = tpu.concatenate %536, %541 in 1 : vector<2x32xf32>, vector<2x32xf32> -> vector<2x64xf32>
    %cst_193 = arith.constant dense<0.000000e+00> : vector<2x192xf32>
    %543 = tpu.matmul %542, %30, %cst_193 {dimension_numbers = #tpu.dot_dimension_numbers<[1], [0], [0], [1], [0, 0, 1, 1], [], []>} : vector<2x64xf32>, vector<64x192xf32>, vector<2x192xf32> -> vector<2x192xf32>
    %544 = vector.broadcast %32 : vector<1x192xf32> to vector<2x192xf32>
    %545 = arith.addf %543, %544 : vector<2x192xf32>
    %546 = vector.extract_strided_slice %545 {offsets = [0, 0], sizes = [2, 96], strides = [1, 1]} : vector<2x192xf32> to vector<2x96xf32>
    %547 = vector.extract_strided_slice %545 {offsets = [0, 96], sizes = [2, 96], strides = [1, 1]} : vector<2x192xf32> to vector<2x96xf32>
    %548 = vector.extract_strided_slice %546 {offsets = [0, 0], sizes = [2, 32], strides = [1, 1]} : vector<2x96xf32> to vector<2x32xf32>
    %549 = vector.extract_strided_slice %547 {offsets = [0, 0], sizes = [2, 32], strides = [1, 1]} : vector<2x96xf32> to vector<2x32xf32>
    %550 = arith.addf %548, %549 : vector<2x32xf32>
    %551 = arith.negf %550 : vector<2x32xf32>
    %552 = math.exp %551 : vector<2x32xf32>
    %cst_194 = arith.constant 1.000000e+00 : f32
    %553 = vector.broadcast %cst_194 : f32 to vector<2x32xf32>
    %554 = arith.addf %553, %552 : vector<2x32xf32>
    %555 = arith.divf %553, %554 : vector<2x32xf32>
    %556 = vector.extract_strided_slice %546 {offsets = [0, 32], sizes = [2, 32], strides = [1, 1]} : vector<2x96xf32> to vector<2x32xf32>
    %557 = vector.extract_strided_slice %547 {offsets = [0, 32], sizes = [2, 32], strides = [1, 1]} : vector<2x96xf32> to vector<2x32xf32>
    %558 = arith.addf %556, %557 : vector<2x32xf32>
    %559 = arith.negf %558 : vector<2x32xf32>
    %560 = math.exp %559 : vector<2x32xf32>
    %cst_195 = arith.constant 1.000000e+00 : f32
    %561 = vector.broadcast %cst_195 : f32 to vector<2x32xf32>
    %562 = arith.addf %561, %560 : vector<2x32xf32>
    %563 = arith.divf %561, %562 : vector<2x32xf32>
    %564 = vector.extract_strided_slice %546 {offsets = [0, 64], sizes = [2, 32], strides = [1, 1]} : vector<2x96xf32> to vector<2x32xf32>
    %565 = vector.extract_strided_slice %547 {offsets = [0, 64], sizes = [2, 32], strides = [1, 1]} : vector<2x96xf32> to vector<2x32xf32>
    %566 = arith.mulf %555, %565 : vector<2x32xf32>
    %567 = arith.addf %564, %566 : vector<2x32xf32>
    %568 = math.tanh %567 : vector<2x32xf32>
    %cst_196 = arith.constant 1.000000e+00 : f32
    %569 = vector.broadcast %cst_196 : f32 to vector<2x32xf32>
    %570 = arith.subf %569, %563 : vector<2x32xf32>
    %571 = arith.mulf %570, %568 : vector<2x32xf32>
    %572 = arith.mulf %563, %541 : vector<2x32xf32>
    %573 = arith.addf %571, %572 : vector<2x32xf32>
    %c1_197 = arith.constant 1 : index
    %c0_198 = arith.constant 0 : index
    %c0_199 = arith.constant 0 : index
    %574 = vector.load %arg14[%c1_197, %c0_198, %c0_199] : memref<2x2x32xf32, #tpu.memory_space<vmem>>, vector<1x2x32xf32>
    %575 = vector.shape_cast %574 : vector<1x2x32xf32> to vector<2x32xf32>
    %576 = vector.shape_cast %573 : vector<2x32xf32> to vector<1x2x32xf32>
    tpu.vector_store %arg14[%c1_197, %c0_198, %c0_199], %576 {strides = array<i32>} : memref<2x2x32xf32, #tpu.memory_space<vmem>>, vector<1x2x32xf32>,
    %577 = arith.index_cast %c6_i32 : i32 to index
    %c0_200 = arith.constant 0 : index
    %c0_201 = arith.constant 0 : index
    %578 = vector.load %arg16[%577, %c0_200, %c0_201] : memref<8x2x32xf32, #tpu.memory_space<vmem>>, vector<1x2x32xf32>
    %579 = vector.shape_cast %578 : vector<1x2x32xf32> to vector<2x32xf32>
    %580 = vector.shape_cast %573 : vector<2x32xf32> to vector<1x2x32xf32>
    tpu.vector_store %arg16[%577, %c0_200, %c0_201], %580 {strides = array<i32>} : memref<8x2x32xf32, #tpu.memory_space<vmem>>, vector<1x2x32xf32>,
    %c7_i32 = arith.constant 7 : i32
    %c0_202 = arith.constant 0 : index
    %c0_203 = arith.constant 0 : index
    %c0_204 = arith.constant 0 : index
    %581 = vector.load %arg14[%c0_202, %c0_203, %c0_204] : memref<2x2x32xf32, #tpu.memory_space<vmem>>, vector<1x2x32xf32>
    %582 = vector.shape_cast %581 : vector<1x2x32xf32> to vector<2x32xf32>
    %583 = arith.index_cast %c7_i32 : i32 to index
    %c0_205 = arith.constant 0 : index
    %c0_206 = arith.constant 0 : index
    %584 = vector.load %arg15[%583, %c0_205, %c0_206] : memref<8x2x96xf32, #tpu.memory_space<vmem>>, vector<1x2x96xf32>
    %585 = vector.shape_cast %584 : vector<1x2x96xf32> to vector<2x96xf32>
    %cst_207 = arith.constant dense<0.000000e+00> : vector<2x96xf32>
    %586 = tpu.matmul %582, %27, %cst_207 {dimension_numbers = #tpu.dot_dimension_numbers<[1], [0], [0], [1], [0, 0, 1, 1], [], []>} : vector<2x32xf32>, vector<32x96xf32>, vector<2x96xf32> -> vector<2x96xf32>
    %587 = vector.broadcast %28 : vector<1x96xf32> to vector<2x96xf32>
    %588 = arith.addf %586, %587 : vector<2x96xf32>
    %589 = vector.extract_strided_slice %585 {offsets = [0, 0], sizes = [2, 32], strides = [1, 1]} : vector<2x96xf32> to vector<2x32xf32>
    %590 = vector.extract_strided_slice %588 {offsets = [0, 0], sizes = [2, 32], strides = [1, 1]} : vector<2x96xf32> to vector<2x32xf32>
    %591 = arith.addf %589, %590 : vector<2x32xf32>
    %592 = arith.negf %591 : vector<2x32xf32>
    %593 = math.exp %592 : vector<2x32xf32>
    %cst_208 = arith.constant 1.000000e+00 : f32
    %594 = vector.broadcast %cst_208 : f32 to vector<2x32xf32>
    %595 = arith.addf %594, %593 : vector<2x32xf32>
    %596 = arith.divf %594, %595 : vector<2x32xf32>
    %597 = vector.extract_strided_slice %585 {offsets = [0, 32], sizes = [2, 32], strides = [1, 1]} : vector<2x96xf32> to vector<2x32xf32>
    %598 = vector.extract_strided_slice %588 {offsets = [0, 32], sizes = [2, 32], strides = [1, 1]} : vector<2x96xf32> to vector<2x32xf32>
    %599 = arith.addf %597, %598 : vector<2x32xf32>
    %600 = arith.negf %599 : vector<2x32xf32>
    %601 = math.exp %600 : vector<2x32xf32>
    %cst_209 = arith.constant 1.000000e+00 : f32
    %602 = vector.broadcast %cst_209 : f32 to vector<2x32xf32>
    %603 = arith.addf %602, %601 : vector<2x32xf32>
    %604 = arith.divf %602, %603 : vector<2x32xf32>
    %605 = vector.extract_strided_slice %585 {offsets = [0, 64], sizes = [2, 32], strides = [1, 1]} : vector<2x96xf32> to vector<2x32xf32>
    %606 = vector.extract_strided_slice %588 {offsets = [0, 64], sizes = [2, 32], strides = [1, 1]} : vector<2x96xf32> to vector<2x32xf32>
    %607 = arith.mulf %596, %606 : vector<2x32xf32>
    %608 = arith.addf %605, %607 : vector<2x32xf32>
    %609 = math.tanh %608 : vector<2x32xf32>
    %cst_210 = arith.constant 1.000000e+00 : f32
    %610 = vector.broadcast %cst_210 : f32 to vector<2x32xf32>
    %611 = arith.subf %610, %604 : vector<2x32xf32>
    %612 = arith.mulf %611, %609 : vector<2x32xf32>
    %613 = arith.mulf %604, %582 : vector<2x32xf32>
    %614 = arith.addf %612, %613 : vector<2x32xf32>
    %c0_211 = arith.constant 0 : index
    %c0_212 = arith.constant 0 : index
    %c0_213 = arith.constant 0 : index
    %615 = vector.load %arg14[%c0_211, %c0_212, %c0_213] : memref<2x2x32xf32, #tpu.memory_space<vmem>>, vector<1x2x32xf32>
    %616 = vector.shape_cast %615 : vector<1x2x32xf32> to vector<2x32xf32>
    %617 = vector.shape_cast %614 : vector<2x32xf32> to vector<1x2x32xf32>
    tpu.vector_store %arg14[%c0_211, %c0_212, %c0_213], %617 {strides = array<i32>} : memref<2x2x32xf32, #tpu.memory_space<vmem>>, vector<1x2x32xf32>,
    %c1_214 = arith.constant 1 : index
    %c0_215 = arith.constant 0 : index
    %c0_216 = arith.constant 0 : index
    %618 = vector.load %arg14[%c1_214, %c0_215, %c0_216] : memref<2x2x32xf32, #tpu.memory_space<vmem>>, vector<1x2x32xf32>
    %619 = vector.shape_cast %618 : vector<1x2x32xf32> to vector<2x32xf32>
    %620 = tpu.concatenate %614, %619 in 1 : vector<2x32xf32>, vector<2x32xf32> -> vector<2x64xf32>
    %cst_217 = arith.constant dense<0.000000e+00> : vector<2x192xf32>
    %621 = tpu.matmul %620, %30, %cst_217 {dimension_numbers = #tpu.dot_dimension_numbers<[1], [0], [0], [1], [0, 0, 1, 1], [], []>} : vector<2x64xf32>, vector<64x192xf32>, vector<2x192xf32> -> vector<2x192xf32>
    %622 = vector.broadcast %32 : vector<1x192xf32> to vector<2x192xf32>
    %623 = arith.addf %621, %622 : vector<2x192xf32>
    %624 = vector.extract_strided_slice %623 {offsets = [0, 0], sizes = [2, 96], strides = [1, 1]} : vector<2x192xf32> to vector<2x96xf32>
    %625 = vector.extract_strided_slice %623 {offsets = [0, 96], sizes = [2, 96], strides = [1, 1]} : vector<2x192xf32> to vector<2x96xf32>
    %626 = vector.extract_strided_slice %624 {offsets = [0, 0], sizes = [2, 32], strides = [1, 1]} : vector<2x96xf32> to vector<2x32xf32>
    %627 = vector.extract_strided_slice %625 {offsets = [0, 0], sizes = [2, 32], strides = [1, 1]} : vector<2x96xf32> to vector<2x32xf32>
    %628 = arith.addf %626, %627 : vector<2x32xf32>
    %629 = arith.negf %628 : vector<2x32xf32>
    %630 = math.exp %629 : vector<2x32xf32>
    %cst_218 = arith.constant 1.000000e+00 : f32
    %631 = vector.broadcast %cst_218 : f32 to vector<2x32xf32>
    %632 = arith.addf %631, %630 : vector<2x32xf32>
    %633 = arith.divf %631, %632 : vector<2x32xf32>
    %634 = vector.extract_strided_slice %624 {offsets = [0, 32], sizes = [2, 32], strides = [1, 1]} : vector<2x96xf32> to vector<2x32xf32>
    %635 = vector.extract_strided_slice %625 {offsets = [0, 32], sizes = [2, 32], strides = [1, 1]} : vector<2x96xf32> to vector<2x32xf32>
    %636 = arith.addf %634, %635 : vector<2x32xf32>
    %637 = arith.negf %636 : vector<2x32xf32>
    %638 = math.exp %637 : vector<2x32xf32>
    %cst_219 = arith.constant 1.000000e+00 : f32
    %639 = vector.broadcast %cst_219 : f32 to vector<2x32xf32>
    %640 = arith.addf %639, %638 : vector<2x32xf32>
    %641 = arith.divf %639, %640 : vector<2x32xf32>
    %642 = vector.extract_strided_slice %624 {offsets = [0, 64], sizes = [2, 32], strides = [1, 1]} : vector<2x96xf32> to vector<2x32xf32>
    %643 = vector.extract_strided_slice %625 {offsets = [0, 64], sizes = [2, 32], strides = [1, 1]} : vector<2x96xf32> to vector<2x32xf32>
    %644 = arith.mulf %633, %643 : vector<2x32xf32>
    %645 = arith.addf %642, %644 : vector<2x32xf32>
    %646 = math.tanh %645 : vector<2x32xf32>
    %cst_220 = arith.constant 1.000000e+00 : f32
    %647 = vector.broadcast %cst_220 : f32 to vector<2x32xf32>
    %648 = arith.subf %647, %641 : vector<2x32xf32>
    %649 = arith.mulf %648, %646 : vector<2x32xf32>
    %650 = arith.mulf %641, %619 : vector<2x32xf32>
    %651 = arith.addf %649, %650 : vector<2x32xf32>
    %c1_221 = arith.constant 1 : index
    %c0_222 = arith.constant 0 : index
    %c0_223 = arith.constant 0 : index
    %652 = vector.load %arg14[%c1_221, %c0_222, %c0_223] : memref<2x2x32xf32, #tpu.memory_space<vmem>>, vector<1x2x32xf32>
    %653 = vector.shape_cast %652 : vector<1x2x32xf32> to vector<2x32xf32>
    %654 = vector.shape_cast %651 : vector<2x32xf32> to vector<1x2x32xf32>
    tpu.vector_store %arg14[%c1_221, %c0_222, %c0_223], %654 {strides = array<i32>} : memref<2x2x32xf32, #tpu.memory_space<vmem>>, vector<1x2x32xf32>,
    %655 = arith.index_cast %c7_i32 : i32 to index
    %c0_224 = arith.constant 0 : index
    %c0_225 = arith.constant 0 : index
    %656 = vector.load %arg16[%655, %c0_224, %c0_225] : memref<8x2x32xf32, #tpu.memory_space<vmem>>, vector<1x2x32xf32>
    %657 = vector.shape_cast %656 : vector<1x2x32xf32> to vector<2x32xf32>
    %658 = vector.shape_cast %651 : vector<2x32xf32> to vector<1x2x32xf32>
    tpu.vector_store %arg16[%655, %c0_224, %c0_225], %658 {strides = array<i32>} : memref<8x2x32xf32, #tpu.memory_space<vmem>>, vector<1x2x32xf32>,
    %c8_i32 = arith.constant 8 : i32
    %c0_226 = arith.constant 0 : index
    %c0_227 = arith.constant 0 : index
    %c0_228 = arith.constant 0 : index
    %659 = vector.load %arg16[%c0_226, %c0_227, %c0_228] : memref<8x2x32xf32, #tpu.memory_space<vmem>>, vector<8x2x32xf32>
    %660 = vector.shape_cast %659 : vector<8x2x32xf32> to vector<16x32xf32>
    %c0_229 = arith.constant 0 : index
    %c0_230 = arith.constant 0 : index
    %661 = vector.load %arg11[%c0_229, %c0_230] : memref<32x16xf32, #tpu.memory_space<vmem>>, vector<32x16xf32>
    %cst_231 = arith.constant dense<0.000000e+00> : vector<16x16xf32>
    %662 = tpu.matmul %660, %661, %cst_231 {dimension_numbers = #tpu.dot_dimension_numbers<[1], [0], [0], [1], [0, 0, 1, 1], [], []>} : vector<16x32xf32>, vector<32x16xf32>, vector<16x16xf32> -> vector<16x16xf32>
    %c0_232 = arith.constant 0 : index
    %c0_233 = arith.constant 0 : index
    %663 = vector.load %arg12[%c0_232, %c0_233] : memref<3x16xf32, #tpu.memory_space<vmem>>, vector<1x16xf32>
    %664 = vector.broadcast %663 : vector<1x16xf32> to vector<16x16xf32>
    %665 = arith.addf %662, %664 : vector<16x16xf32>
    %cst_234 = arith.constant 0.000000e+00 : f32
    %666 = vector.broadcast %cst_234 : f32 to vector<16x16xf32>
    %667 = arith.maximumf %665, %666 : vector<16x16xf32>
    %c1_235 = arith.constant 1 : index
    %c0_236 = arith.constant 0 : index
    %668 = vector.load %arg12[%c1_235, %c0_236] : memref<3x16xf32, #tpu.memory_space<vmem>>, vector<1x16xf32>
    %669 = vector.broadcast %668 : vector<1x16xf32> to vector<16x16xf32>
    %670 = arith.mulf %667, %669 : vector<16x16xf32>
    %cst_237 = arith.constant dense<0.000000e+00> : vector<16xf32>
    %671 = vector.multi_reduction <add>, %670, %cst_237 [1] : vector<16x16xf32> to vector<16xf32>
    %672 = vector.shape_cast %671 : vector<16xf32> to vector<1x16xf32>
    %c2 = arith.constant 2 : index
    %c0_238 = arith.constant 0 : index
    %673 = vector.load %arg12[%c2, %c0_238] : memref<3x16xf32, #tpu.memory_space<vmem>>, vector<1x1xf32>
    %674 = vector.broadcast %673 : vector<1x1xf32> to vector<1x16xf32>
    %675 = arith.addf %672, %674 : vector<1x16xf32>
    %c0_239 = arith.constant 0 : index
    %c0_240 = arith.constant 0 : index
    %676 = vector.load %arg13[%c0_239, %c0_240] : memref<1x16xf32, #tpu.memory_space<vmem>>, vector<1x16xf32>
    tpu.vector_store %arg13[%c0_239, %c0_240], %675 {strides = array<i32>} : memref<1x16xf32, #tpu.memory_space<vmem>>, vector<1x16xf32>,
    return
  }
  func.func @transform_0(%arg0: i32) -> (i32, i32, i32) {
    %c0_i32 = arith.constant 0 : i32
    %c0_i32_0 = arith.constant 0 : i32
    %c0_i32_1 = arith.constant 0 : i32
    %c0_i32_2 = arith.constant 0 : i32
    return %c0_i32, %c0_i32_0, %c0_i32_1 : i32, i32, i32
  }
  func.func @transform_1(%arg0: i32) -> (i32, i32, i32) {
    %c0_i32 = arith.constant 0 : i32
    %c0_i32_0 = arith.constant 0 : i32
    %c0_i32_1 = arith.constant 0 : i32
    %c0_i32_2 = arith.constant 0 : i32
    return %c0_i32, %c0_i32_0, %c0_i32_1 : i32, i32, i32
  }
  func.func @transform_2(%arg0: i32) -> (i32, i32, i32) {
    %c0_i32 = arith.constant 0 : i32
    %c0_i32_0 = arith.constant 0 : i32
    %c0_i32_1 = arith.constant 0 : i32
    %c0_i32_2 = arith.constant 0 : i32
    return %c0_i32, %c0_i32_0, %c0_i32_1 : i32, i32, i32
  }
  func.func @transform_3(%arg0: i32) -> (i32, i32, i32) {
    %c0_i32 = arith.constant 0 : i32
    %c0_i32_0 = arith.constant 0 : i32
    %c0_i32_1 = arith.constant 0 : i32
    %c0_i32_2 = arith.constant 0 : i32
    return %c0_i32, %c0_i32_0, %c0_i32_1 : i32, i32, i32
  }
  func.func @transform_4(%arg0: i32) -> (i32, i32) {
    %c0_i32 = arith.constant 0 : i32
    %c0_i32_0 = arith.constant 0 : i32
    %c0_i32_1 = arith.constant 0 : i32
    return %c0_i32, %c0_i32_0 : i32, i32
  }
  func.func @transform_5(%arg0: i32) -> (i32, i32) {
    %c0_i32 = arith.constant 0 : i32
    %c0_i32_0 = arith.constant 0 : i32
    %c0_i32_1 = arith.constant 0 : i32
    return %c0_i32, %c0_i32_0 : i32, i32
  }
  func.func @transform_6(%arg0: i32) -> (i32, i32) {
    %c0_i32 = arith.constant 0 : i32
    %c0_i32_0 = arith.constant 0 : i32
    %c0_i32_1 = arith.constant 0 : i32
    return %c0_i32, %c0_i32_0 : i32, i32
  }
  func.func @transform_7(%arg0: i32) -> (i32, i32) {
    %c0_i32 = arith.constant 0 : i32
    %c0_i32_0 = arith.constant 0 : i32
    %c0_i32_1 = arith.constant 0 : i32
    return %c0_i32, %c0_i32_0 : i32, i32
  }
  func.func @transform_8(%arg0: i32) -> (i32, i32, i32) {
    %c0_i32 = arith.constant 0 : i32
    %c0_i32_0 = arith.constant 0 : i32
    %c0_i32_1 = arith.constant 0 : i32
    %c0_i32_2 = arith.constant 0 : i32
    return %c0_i32, %c0_i32_0, %c0_i32_1 : i32, i32, i32
  }
  func.func @transform_9(%arg0: i32) -> (i32, i32, i32) {
    %c0_i32 = arith.constant 0 : i32
    %c0_i32_0 = arith.constant 0 : i32
    %c0_i32_1 = arith.constant 0 : i32
    %c0_i32_2 = arith.constant 0 : i32
    return %c0_i32, %c0_i32_0, %c0_i32_1 : i32, i32, i32
  }
  func.func @transform_10(%arg0: i32) -> (i32, i32) {
    %c0_i32 = arith.constant 0 : i32
    %c0_i32_0 = arith.constant 0 : i32
    %c0_i32_1 = arith.constant 0 : i32
    return %c0_i32, %c0_i32_0 : i32, i32
  }
  func.func @transform_11(%arg0: i32) -> (i32, i32) {
    %c0_i32 = arith.constant 0 : i32
    %c0_i32_0 = arith.constant 0 : i32
    %c0_i32_1 = arith.constant 0 : i32
    return %c0_i32, %c0_i32_0 : i32, i32
  }
  func.func @transform_12(%arg0: i32) -> (i32, i32) {
    %c0_i32 = arith.constant 0 : i32
    %c0_i32_0 = arith.constant 0 : i32
    %c0_i32_1 = arith.constant 0 : i32
    return %c0_i32, %c0_i32_0 : i32, i32
  }
}

</mosaic_0001>

<bundles_post_ra>
// kernel: tpu_custom_call.1
= control target key start
LH: loop header
LB: loop body
LE: loop exit
PB: predicated region body
PF: predicated region fallthrough
CT: control target
= control target key end

     0   :  { %17 = vsyncpa [#allocation6], 0  ;;  %s3130_s0 = inlined_call_operand.vmem [shape: f32[8,2,16], index: 0, kind: input, shape index: {}]   ;;  %s3131_s1 = inlined_call_operand.vmem [shape: f32[8,2,16], index: 1, kind: input, shape index: {}]   ;;  %s3132_s2 = inlined_call_operand.vmem [shape: f32[8,2,1], index: 2, kind: input, shape index: {}]   ;;  %s3133_s3 = inlined_call_operand.vmem [shape: f32[8,2,1], index: 3, kind: input, shape index: {}]   ;;  %s3134_s4 = inlined_call_operand.vmem [shape: f32[1,16], index: 4, kind: input, shape index: {}]   ;;  %s3135_s5 = inlined_call_operand.vmem [shape: f32[1,16], index: 5, kind: input, shape index: {}]   ;;  %s3136_s6 = inlined_call_operand.hbm [shape: f32[16,96], index: 6, kind: input, shape index: {}]   ;;  %s3137_s7 = inlined_call_operand.vmem [shape: f32[32,96], index: 7, kind: input, shape index: {}]   ;;  %s3138_s8 = inlined_call_operand.hbm [shape: f32[1,64,192], index: 8, kind: input, shape index: {}]   ;;  %s3139_s9 = inlined_call_operand.vmem [shape: f32[2,1,192], index: 9, kind: input, shape index: {}]   ;;  %s3140_s10 = inlined_call_operand.vmem [shape: f32[32,16], index: 10, kind: input, shape index: {}]   ;;  %s3141_s11 = inlined_call_operand.vmem [shape: f32[3,16], index: 11, kind: input, shape index: {}]   ;;  %s3142_s12 = inlined_call_operand.hbm [shape: f32[1,16], index: 12, kind: output, shape index: {}]  }
   0x1   :  { %18 = vsyncpa [#allocation9], 0 }
   0x2   :  { %19 = vsyncpa [#allocation7], 0  ;;  %s36_s23 = sshll.u32 %s3136_s6, 4  ;;  %s2335_s24 = smov [#allocation5]   ;;  %s37_s23 = int_to_ptr.hbm [resolvable:$true] %s36_s23 }
   0x3   :  { %s38_s25 = sshll.u32 %s2335_s24, 4  ;;  %s51_s28 = sshll.u32 %s3138_s8, 4  ;;  %s39_s25 = int_to_ptr.vmem [resolvable:$true] %s38_s25  ;;  %s52_s28 = int_to_ptr.hbm [resolvable:$true] %s51_s28 }
   0x4   :  { %s2336_s29 = smov 128   ;;  %s2337_s30 = smov 8  }
   0x5   :  { %44 = dma.hbm_to_vmem [thread:$0]  %s37_s23, 256, %s39_s25, [#allocation6], %s2336_s29, %s2336_s29, %s2337_s30  }
   0x6   :  { %s2338_s13 = smov [#allocation8]   ;;  %s2339_s15 = smov 256  }
   0x7   :  { %s53_s14 = sshll.u32 %s2338_s13, 4  ;;  %s2340_s16 = smov 16   ;;  %s54_s14 = int_to_ptr.vmem [resolvable:$true] %s53_s14 }
   0x8   :  { %59 = dma.hbm_to_vmem [thread:$0]  %s52_s28, 2048, %s54_s14, [#allocation9], %s2339_s15, %s2339_s15, %s2340_s16  }
   0x9   :  { %2329 = dma.done.wait [#allocation6], 256  }
   0xa   :  { %2330 = vsyncadd [#allocation6], 4294967040 }
   0xb   :  { %2331 = dma.done.wait [#allocation9], 2048  }
   0xc   :  { %2332 = vsyncadd [#allocation9], 4294965248  ;;  %vm338_vm0 = vcmask 254976   ;;  %v2341_v0 = vmov 0   ;;  %v2342_v1 = vmov 0.0   ;;  %v2432_v5 = vld [vmem:[%s3137_s7 + $0x18] sm:$0xff] }
   0xd   :  { %2103 = vset.pattern.permute.xlu1 %v2341_v0  ;;  %2102 = vset.pattern.permute.xlu0 %v2341_v0  ;;  %339 = vst.msk [vmem:[#allocation2] sm:$0x3] %vm338_vm0, %v2342_v1  ;;  %v100_v2 = vld [vmem:[%s3132_s2 + $0x4] sm:$0x3]  ;;  %v98_v3 = vld [vmem:[%s3132_s2] sm:$0x3] }
   0xe   :  { %2104 = vset.pattern.permute.xlu2 %v2341_v0  ;;  %340 = vst.msk [vmem:[#allocation2 + $0x2] sm:$0x3] %vm338_vm0, %v2342_v1  ;;  %119 = vperm.xlu1 %2103, %v100_v2   ;;  %v166_v4 = vld [vmem:[%s3133_s3] sm:$0x3]  ;;  %v2438_v6 = vld [vmem:[%s3137_s7 + $0x10] sm:$0xff]  ;;  %v2443_v7 = vld [vmem:[%s3137_s7 + $0x8] sm:$0xff] }
   0xf   :  { %109 = vperm.xlu0 %2102, %v98_v3   ;;  %177 = vperm.xlu2 %2104, %v166_v4   ;;  %v101_v8 = vld [vmem:[%s3132_s2 + $0x6] sm:$0x3]  ;;  %v99_v9 = vld [vmem:[%s3132_s2 + $0x2] sm:$0x3]  ;;  %vm348_vm1 = vcmask 261120   ;;  %s2343_s21 = smov 32  }
  0x10   :  { %366 = vmatpush.msra.mxu1 %v2432_v5  ;;  %v2456_v10 = vld [vmem:[%s3137_s7] sm:$0xff]  ;;  %v236_v18 = vld [vmem:[#allocation5 + $0x8] sm:$0xff]  ;;  %v235_v19 = vld [vmem:[#allocation5] sm:$0xff]  ;;  %vm265_vm2 = vcmask 130048   ;;  %s2344_s20 = smov 64   ;;  %vm307_vm3 = vcmask 779264  }
  0x11   :  { %v167_v11 = vld [vmem:[%s3133_s3 + $0x2] sm:$0x3]  ;;  %v169_v13 = vld [vmem:[%s3133_s3 + $0x6] sm:$0x3]  ;;  %v168_v14 = vld [vmem:[%s3133_s3 + $0x4] sm:$0x3]  ;;  %284 = vmatpush.msra.mxu0 %v236_v18 }
  0x12   :  { %367 = vmatpush.msra.mxu1 %v2438_v6  ;;  %v234_v15 = vld [vmem:[%s3139_s9] sm:$0x3]  ;;  %v75_v31 = vld [vmem:[%s3130_s0 + $0x2] sm:$0x3]  ;;  %v76_v38 = vld [vmem:[%s3130_s0 + $0x4] sm:$0x3] }
  0x13   :  { %v2477_v16 = vperm.slane %v234_v15, 0  ;;  %v343_v17 = vperm.slane %v234_v15, 1  ;;  %285 = vmatpush.msra.mxu0 %v235_v19  ;;  %v74_v20 = vld [vmem:[%s3130_s0] sm:$0x3]  ;;  %v83_v32 = vld [vmem:[%s3131_s1 + $0x2] sm:$0x3] }
  0x14   :  { %368 = vmatpush.msra.mxu1 %v2443_v7  ;;  %v2461_v12 = vld [vmem:[#allocation2] sm:$0x3]  ;;  %v82_v21 = vld [vmem:[%s3131_s1] sm:$0x3]  ;;  %v91_v35 = vadd.f32 %v83_v32, %v75_v31  ;;  %v84_v39 = vld [vmem:[%s3131_s1 + $0x4] sm:$0x3] }
  0x15   :  { %v2493_v22 = vld [vmem:[%s3135_s5] ss:$0 sm:$0xff]  ;;  %v90_v25 = vadd.f32 %v82_v21, %v74_v20  ;;  %v77_v41 = vld [vmem:[%s3130_s0 + $0x6] sm:$0x3]  ;;  %v92_v45 = vadd.f32 %v84_v39, %v76_v38  ;;  %s2345_s22 = smov 96   ;;  %v2554_v38 = vld [vmem:[#allocation8 + $0x58] sm:$0xff] }
  0x16   :  { %124 = vperm.xlu1 %2103, %v101_v8   ;;  %369 = vmatpush.msra.mxu1 %v2456_v10  ;;  %v2498_v24 = vld [vmem:[%s3134_s4] ss:$0 sm:$0xff]  ;;  %v85_v42 = vld [vmem:[%s3131_s1 + $0x6] sm:$0x3]  ;;  %v422_v32 = vld [vmem:[#allocation2 + $0x2] sm:$0x3] }
  0x17   :  { %114 = vperm.xlu0 %2102, %v99_v9   ;;  %182 = vperm.xlu2 %2104, %v167_v11   ;;  %v93_v47 = vadd.f32 %v85_v42, %v77_v41  ;;  %v2560_v39 = vld [vmem:[#allocation8 + $0x40] sm:$0xff]  ;;  %v2568_v41 = vld [vmem:[#allocation8 + $0x30] sm:$0xff]  ;;  %v2570_v42 = vld [vmem:[#allocation8 + $0x38] sm:$0xff]  ;;  %vm433_vm8 = vcmask 523264   ;;  %s2026_s30 = sshll.u32 %s3142_s12, 4  ;;  %s2027_s30 = int_to_ptr.hbm [resolvable:$true] %s2026_s30 }
  0x18   :  { %2040 = vmatmul.msk.f32.vlgmr.msra.gmra.mxu1 %vm348_vm1, %v2461_v12 }
  0x19   :  { %567 = vmatpush.msrb.mxu1 %v2432_v5 }
  0x1b   :  { %568 = vmatpush.msrb.mxu1 %v2438_v6 }
  0x1d   :  { %569 = vmatpush.msrb.mxu1 %v2443_v7 }
  0x1e   :  { %192 = vperm.xlu1 %2103, %v169_v13  }
  0x1f   :  { %187 = vperm.xlu0 %2102, %v168_v14   ;;  %570 = vmatpush.msrb.mxu1 %v2456_v10 }
  0x20   :  { %344 = vrot.lane.b32.xlu2 %v2477_v16, %s2343_s21 }
  0x27   :  { %346 = vrot.lane.b32.xlu0 %v343_v17, %s2343_s21 }
  0x69   :  { %v178_v23 = vpop.permute.xlu2 %177 }
  0x6a   :  { %v218_v28 = vmul.f32 %v2493_v22, %v178_v23 }
  0x71   :  { %v183_v34 = vpop.permute.xlu2 %182 }
  0x72   :  { %v219_v43 = vmul.f32 %v2493_v22, %v183_v34  ;;  %v2544_v34 = vld [vmem:[#allocation8 + $0x78] sm:$0xff] }
  0x73   :  { %465 = vmatpush.msra.mxu3 %v2544_v34  ;;  %659 = vmatpush.msra.mxu1 %v2544_v34 }
  0x7a   :  { %v345_v58 = vpop.permute.xlu2 %344 }
  0x80   :  { %v120_v26 = vpop.permute.xlu1 %119 }
  0x81   :  { %v110_v27 = vpop.permute.xlu0 %109  ;;  %v152_v46 = vmul.f32 %v2498_v24, %v120_v26 }
  0x82   :  { %v150_v29 = vmul.f32 %v2498_v24, %v110_v27 }
  0x83   :  { %v160_v52 = vadd.f32 %v152_v46, %v92_v45  ;;  %v2584_v45 = vld [vmem:[#allocation8 + $0x10] sm:$0xff]  ;;  %v2586_v46 = vld [vmem:[#allocation8 + $0x18] sm:$0xff] }
  0x84   :  { %v158_v30 = vadd.f32 %v150_v29, %v90_v25 }
  0x86   :  { %v226_v33 = vadd.f32 %v218_v28, %v158_v30 }
  0x88   :  { %248 = vst [vmem:[#allocation1] ss:$4 sm:$0xff] %v226_v33  ;;  %v125_v36 = vpop.permute.xlu1 %124  ;;  %v2542_v33 = vld [vmem:[#allocation8 + $0x70] sm:$0xff] }
  0x89   :  { %v115_v37 = vpop.permute.xlu0 %114  ;;  %v153_v48 = vmul.f32 %v2498_v24, %v125_v36  ;;  %445 = vmatpush.msra.mxu2 %v2542_v33  ;;  %v2550_v36 = vld [vmem:[#allocation8 + $0x68] sm:$0xff]  ;;  %639 = vmatpush.msrb.mxu0 %v2542_v33 }
  0x8a   :  { %v151_v40 = vmul.f32 %v2498_v24, %v115_v37  ;;  %v2552_v37 = vld [vmem:[#allocation8 + $0x50] sm:$0xff]  ;;  %466 = vmatpush.msra.mxu3 %v2550_v36  ;;  %660 = vmatpush.msra.mxu1 %v2550_v36 }
  0x8b   :  { %v161_v53 = vadd.f32 %v153_v48, %v93_v47 }
  0x8c   :  { %v159_v44 = vadd.f32 %v151_v40, %v91_v35  ;;  %v2546_v35 = vld [vmem:[#allocation8 + $0x60] sm:$0xff]  ;;  %v2562_v40 = vld [vmem:[#allocation8 + $0x48] sm:$0xff]  ;;  %467 = vmatpush.msra.mxu3 %v2554_v38  ;;  %661 = vmatpush.msra.mxu1 %v2554_v38 }
  0x8d   :  { %446 = vmatpush.msra.mxu2 %v2546_v35  ;;  %640 = vmatpush.msrb.mxu0 %v2546_v35 }
  0x8e   :  { %v227_v49 = vadd.f32 %v219_v43, %v159_v44  ;;  %468 = vmatpush.msra.mxu3 %v2562_v40  ;;  %v2576_v43 = vld [vmem:[#allocation8 + $0x20] sm:$0xff]  ;;  %v2578_v44 = vld [vmem:[#allocation8 + $0x28] sm:$0xff]  ;;  %662 = vmatpush.msra.mxu1 %v2562_v40 }
  0x8f   :  { %447 = vmatpush.msra.mxu2 %v2552_v37  ;;  %641 = vmatpush.msrb.mxu0 %v2552_v37 }
  0x90   :  { %250 = vst [vmem:[#allocation1 + $0x1] ss:$4 sm:$0xff] %v227_v49  ;;  %v193_v50 = vpop.permute.xlu1 %192  ;;  %469 = vmatpush.msra.mxu3 %v2570_v42  ;;  %663 = vmatpush.msra.mxu1 %v2570_v42 }
  0x91   :  { %v188_v51 = vpop.permute.xlu0 %187  ;;  %v221_v54 = vmul.f32 %v2493_v22, %v193_v50  ;;  %448 = vmatpush.msra.mxu2 %v2560_v39  ;;  %642 = vmatpush.msrb.mxu0 %v2560_v39 }
  0x92   :  { %v220_v55 = vmul.f32 %v2493_v22, %v188_v51  ;;  %470 = vmatpush.msra.mxu3 %v2578_v44  ;;  %664 = vmatpush.msra.mxu1 %v2578_v44 }
  0x93   :  { %v229_v56 = vadd.f32 %v221_v54, %v161_v53  ;;  %449 = vmatpush.msra.mxu2 %v2568_v41  ;;  %643 = vmatpush.msrb.mxu0 %v2568_v41  ;;  %v2599_v53 = vld [vmem:[#allocation8] sm:$0xff]  ;;  %v2601_v54 = vld [vmem:[#allocation8 + $0x8] sm:$0xff] }
  0x94   :  { %v228_v57 = vadd.f32 %v220_v55, %v160_v52  ;;  %471 = vmatpush.msra.mxu3 %v2586_v46  ;;  %665 = vmatpush.msra.mxu1 %v2586_v46 }
  0x95   :  { %254 = vst [vmem:[#allocation1 + $0x3] ss:$4 sm:$0xff] %v229_v56  ;;  %v371_v59 = vpop.f32.mrf.mxu1  ;;  %450 = vmatpush.msra.mxu2 %v2576_v43  ;;  %644 = vmatpush.msrb.mxu0 %v2576_v43 }
  0x96   :  { %252 = vst [vmem:[#allocation1 + $0x2] ss:$4 sm:$0xff] %v228_v57  ;;  %472 = vmatpush.msra.mxu3 %v2601_v54  ;;  %666 = vmatpush.msra.mxu1 %v2601_v54 }
  0x97   :  { %451 = vmatpush.msra.mxu2 %v2584_v45  ;;  %645 = vmatpush.msrb.mxu0 %v2584_v45 }
  0x98   :  { %834 = vmatpush.msrb.mxu3 %v2542_v33 }
  0x99   :  { %v347_v60 = vpop.permute.xlu0 %346  ;;  %452 = vmatpush.msra.mxu2 %v2599_v53  ;;  %646 = vmatpush.msrb.mxu0 %v2599_v53 }
  0x9a   :  { %v2527_v61 = vsel %vm348_vm1, %v345_v58, %v347_v60  ;;  %835 = vmatpush.msrb.mxu3 %v2546_v35 }
  0x9b   :  { %v372_v62 = vadd.f32 %v371_v59, %v2527_v61  ;;  %762 = vmatpush.msrb.mxu2 %v2432_v5  ;;  %v2039_v59 = vld [vmem:[%s3139_s9 + $0x2] sm:$0x3] }
  0x9c   :  { %836 = vmatpush.msrb.mxu3 %v2552_v37  ;;  %v2657_v60 = vperm.slane %v2039_v59, 0 }
  0x9d   :  { %395 = vrot.lane.b32.xlu1 %v372_v62, %s2344_s20  ;;  %v263_v63 = vld.sshfl [vmem:[#allocation1] sm:$0xff pattern:$0x73625140]  ;;  %763 = vmatpush.msrb.mxu2 %v2438_v6 }
  0x9e   :  { %2037 = vmatmul.msk.f32.vlgmr.msra.gmra.mxu0 %vm265_vm2, %v263_v63  ;;  %837 = vmatpush.msrb.mxu3 %v2560_v39 }
  0x9f   :  { %854 = vmatpush.msra.mxu0 %v2544_v34  ;;  %764 = vmatpush.msrb.mxu2 %v2443_v7 }
  0xa0   :  { %838 = vmatpush.msrb.mxu3 %v2568_v41 }
  0xa1   :  { %855 = vmatpush.msra.mxu0 %v2550_v36  ;;  %765 = vmatpush.msrb.mxu2 %v2456_v10 }
  0xa2   :  { %839 = vmatpush.msrb.mxu3 %v2576_v43 }
  0xa3   :  { %856 = vmatpush.msra.mxu0 %v2554_v38 }
  0xa4   :  { %840 = vmatpush.msrb.mxu3 %v2584_v45 }
  0xa5   :  { %411 = vrot.lane.b32.xlu1 %v2461_v12, %s2343_s21  ;;  %857 = vmatpush.msra.mxu0 %v2562_v40 }
  0xa6   :  { %841 = vmatpush.msrb.mxu3 %v2599_v53 }
  0xa7   :  { %858 = vmatpush.msra.mxu0 %v2570_v42 }
  0xa9   :  { %859 = vmatpush.msra.mxu0 %v2578_v44 }
  0xab   :  { %860 = vmatpush.msra.mxu0 %v2586_v46 }
  0xad   :  { %861 = vmatpush.msra.mxu0 %v2601_v54 }
 0x10f   :  { %v396_v26 = vpop.permute.xlu1 %395 }
 0x117   :  { %v412_v47 = vpop.permute.xlu1 %411 }
 0x11b   :  { %v287_v0 = vpop.f32.mrf.mxu0 }
 0x11c   :  { %v288_v1 = vadd.f32 %v287_v0, %v2477_v16 }
 0x11e   :  { %v295_v2 = vrot.slane %v288_v1, 2  ;;  %v296_v3 = vrot.slane %v288_v1, 4  ;;  %v297_v4 = vrot.slane %v288_v1, 6  ;;  %308 = vst.msk [vmem:[#allocation3] sm:$0x3] %vm307_vm3, %v288_v1 }
 0x120   :  { %309 = vst.msk [vmem:[#allocation3 + $0x2] sm:$0x3] %vm307_vm3, %v295_v2 }
 0x121   :  { %310 = vst.msk [vmem:[#allocation3 + $0x4] sm:$0x3] %vm307_vm3, %v296_v3 }
 0x122   :  { %311 = vst.msk [vmem:[#allocation3 + $0x6] sm:$0x3] %vm307_vm3, %v297_v4 }
 0x125   :  { %v342_v8 = vld [vmem:[#allocation3] sm:$0x3] }
 0x126   :  { %v374_v9 = vadd.f32 %v372_v62, %v342_v8  ;;  %v2659_v62 = vperm.slane %v2039_v59, 1 }
 0x128   :  { %v2041_v11 = vmul.f32 -1.442695, %v374_v9 }
 0x12a   :  { %2109 = vpow2.f32 %v2041_v11 }
 0x130   :  { %v2110_v12 = vpop.eup %2109 }
 0x131   :  { %v378_v13 = vadd.f32 1.0, %v2110_v12 }
 0x133   :  { %2111 = vrcp.f32 %v378_v13  ;;  %v390_v18 = vand.u32 2147483648, %v378_v13  ;;  %v388_v20 = vand.u32 2147483647, %v378_v13  ;;  %vm384_vm5 = vweird.f32 %v378_v13 }
 0x135   :  { %v391_v23 = vor.u32 1.1754944e-38, %v390_v18  ;;  %vm389_vm7 = vcmp.eq.f32.partialorder %v388_v20, 8.507059e+37 }
 0x139   :  { %v2112_v14 = vpop.eup %2111 }
 0x13a   :  { %v380_v15 = vmul.f32 %v2112_v14, %v378_v13  ;;  %vm385_vm4 = vweird.f32 %v2112_v14 }
 0x13b   :  { %vm386_vm6 = vmor %vm384_vm5, %vm385_vm4 }
 0x13c   :  { %v381_v17 = vsub.f32 1.0, %v380_v15 }
 0x13e   :  { %v382_v19 = vmul.f32 %v2112_v14, %v381_v17 }
 0x140   :  { %v383_v21 = vadd.f32 %v2112_v14, %v382_v19 }
 0x142   :  { %v387_v25 = vsel %vm386_vm6, %v2112_v14, %v383_v21 }
 0x143   :  { %v392_v27 = vsel %vm389_vm7, %v391_v23, %v387_v25 }
 0x144   :  { %v398_v28 = vmul.f32 %v396_v26, %v392_v27  ;;  %v405_v48 = vsub.f32 1.0, %v392_v27  ;;  %v414_v50 = vmul.f32 %v412_v47, %v392_v27 }
 0x146   :  { %400 = vrot.lane.b32.xlu2 %v398_v28, %s2344_s20 }
 0x1a0   :  { %v401_v29 = vpop.permute.xlu2 %400 }
 0x1a1   :  { %v403_v30 = vadd.f32 %v401_v29, %v342_v8  ;;  %v551_v8 = vld [vmem:[#allocation3 + $0x2] sm:$0x3] }
 0x1a3   :  { %2113 = vtanh.f32 %v403_v30 }
 0x1a9   :  { %v2114_v31 = vpop.eup %2113 }
 0x1aa   :  { %407 = vrot.lane.b32.xlu0 %v2114_v31, %s2345_s22 }
 0x1b2   :  { %424 = vrot.lane.b32.xlu0 %v422_v32, %s2343_s21 }
 0x21c   :  { %v408_v49 = vpop.permute.xlu0 %407 }
 0x21d   :  { %v410_v51 = vmul.f32 %v408_v49, %v405_v48 }
 0x21f   :  { %v415_v52 = vadd.f32 %v414_v50, %v410_v51 }
 0x221   :  { %417 = vrot.lane.b32.xlu2 %v415_v52, %s2345_s22 }
 0x224   :  { %v2627_v55 = vpop.permute.xlu0 %424 }
 0x27b   :  { %v418_v56 = vpop.permute.xlu2 %417 }
 0x27c   :  { %420 = vst.msk [vmem:[#allocation2] sm:$0x3] %vm338_vm0, %v418_v56  ;;  %v427_v57 = vsel %vm348_vm1, %v418_v56, %v2627_v55 }
 0x27d   :  { %2042 = vmatmul.msk.f32.vlgmr.msra.gmra.mxu2 %vm433_vm8, %v427_v57  ;;  %2043 = vmatmul.msk.f32.vlgmr.msra.gmra.mxu3 %vm433_vm8, %v427_v57 }
 0x27e   :  { %957 = vmatpush.msra.mxu2 %v2432_v5  ;;  %1152 = vmatpush.msra.mxu3 %v2432_v5 }
 0x280   :  { %958 = vmatpush.msra.mxu2 %v2438_v6  ;;  %1153 = vmatpush.msra.mxu3 %v2438_v6 }
 0x282   :  { %959 = vmatpush.msra.mxu2 %v2443_v7  ;;  %1154 = vmatpush.msra.mxu3 %v2443_v7 }
 0x283   :  { %v2640_v58 = vld [vmem:[#allocation2] sm:$0x3] }
 0x284   :  { %2046 = vmatmul.msk.f32.vlgmr.msrb.gmra.mxu1 %vm348_vm1, %v2640_v58  ;;  %960 = vmatpush.msra.mxu2 %v2456_v10 }
 0x285   :  { %1155 = vmatpush.msra.mxu3 %v2456_v10  ;;  %1029 = vmatpush.msrb.mxu1 %v2542_v33 }
 0x287   :  { %1030 = vmatpush.msrb.mxu1 %v2546_v35 }
 0x289   :  { %1031 = vmatpush.msrb.mxu1 %v2552_v37 }
 0x28b   :  { %1032 = vmatpush.msrb.mxu1 %v2560_v39 }
 0x28d   :  { %1033 = vmatpush.msrb.mxu1 %v2568_v41 }
 0x28f   :  { %1034 = vmatpush.msrb.mxu1 %v2576_v43 }
 0x291   :  { %1035 = vmatpush.msrb.mxu1 %v2584_v45 }
 0x293   :  { %1036 = vmatpush.msrb.mxu1 %v2599_v53 }
 0x300   :  { %v454_v63 = vpop.f32.mrf.mxu2  ;;  %v474_v0 = vpop.f32.mrf.mxu3 }
 0x301   :  { %v2662_v1 = vadd.f32 %v454_v63, %v2657_v60  ;;  %v475_v2 = vadd.f32 %v474_v0, %v2659_v62  ;;  %v572_v3 = vpop.f32.mrf.mxu1 }
 0x302   :  { %v573_v4 = vadd.f32 %v572_v3, %v2527_v61 }
 0x303   :  { %525 = vrot.lane.b32.xlu2 %v475_v2, %s2345_s22  ;;  %478 = vrot.lane.b32.xlu1 %v2662_v1, %s2343_s21 }
 0x304   :  { %v575_v9 = vadd.f32 %v573_v4, %v551_v8 }
 0x306   :  { %v2047_v11 = vmul.f32 -1.442695, %v575_v9 }
 0x308   :  { %2115 = vpow2.f32 %v2047_v11 }
 0x30b   :  { %502 = vrot.lane.b32.xlu2 %v475_v2, %s2343_s21  ;;  %596 = vrot.lane.b32.xlu1 %v573_v4, %s2344_s20 }
 0x30e   :  { %v2116_v14 = vpop.eup %2115 }
 0x30f   :  { %v579_v17 = vadd.f32 1.0, %v2116_v14 }
 0x311   :  { %v591_v56 = vand.u32 2147483648, %v579_v17  ;;  %vm585_vm14 = vweird.f32 %v579_v17  ;;  %v589_v57 = vand.u32 2147483647, %v579_v17 }
 0x313   :  { %v592_v0 = vor.u32 1.1754944e-38, %v591_v56  ;;  %vm590_vm4 = vcmp.eq.f32.partialorder %v589_v57, 8.507059e+37 }
 0x35d   :  { %v526_v49 = vpop.permute.xlu2 %525 }
 0x375   :  { %v479_v12 = vpop.permute.xlu1 %478 }
 0x376   :  { %v481_v13 = vadd.f32 %v479_v12, %v2662_v1 }
 0x378   :  { %v2044_v15 = vmul.f32 -1.442695, %v481_v13 }
 0x37a   :  { %2117 = vpow2.f32 %v2044_v15  ;;  %v104_v15 = vld [vmem:[%s3132_s2 + $0xc] sm:$0x3] }
 0x37b   :  { %2119 = vrcp.f32 %v579_v17 }
 0x37d   :  { %v597_v63 = vpop.permute.xlu1 %596 }
 0x380   :  { %v2118_v18 = vpop.eup %2117 }
 0x381   :  { %v485_v19 = vadd.f32 1.0, %v2118_v18  ;;  %v2120_v20 = vpop.eup %2119  ;;  %v173_v18 = vld [vmem:[%s3133_s3 + $0xe] sm:$0x3] }
 0x382   :  { %v581_v21 = vmul.f32 %v2120_v20, %v579_v17  ;;  %vm586_vm13 = vweird.f32 %v2120_v20  ;;  %v103_v17 = vld [vmem:[%s3132_s2 + $0xa] sm:$0x3] }
 0x383   :  { %2121 = vrcp.f32 %v485_v19  ;;  %v497_v28 = vand.u32 2147483648, %v485_v19  ;;  %v495_v30 = vand.u32 2147483647, %v485_v19  ;;  %vm491_vm10 = vweird.f32 %v485_v19  ;;  %vm587_vm15 = vmor %vm585_vm14, %vm586_vm13 }
 0x384   :  { %v582_v26 = vsub.f32 1.0, %v581_v21 }
 0x385   :  { %v498_v47 = vor.u32 1.1754944e-38, %v497_v28  ;;  %vm496_vm12 = vcmp.eq.f32.partialorder %v495_v30, 8.507059e+37 }
 0x386   :  { %v583_v31 = vmul.f32 %v2120_v20, %v582_v26 }
 0x388   :  { %v584_v51 = vadd.f32 %v2120_v20, %v583_v31 }
 0x389   :  { %v2122_v23 = vpop.eup %2121 }
 0x38a   :  { %v487_v25 = vmul.f32 %v2122_v23, %v485_v19  ;;  %vm492_vm9 = vweird.f32 %v2122_v23  ;;  %v588_v59 = vsel %vm587_vm15, %v2120_v20, %v584_v51  ;;  %v503_v19 = vpop.permute.xlu2 %502 }
 0x38b   :  { %vm493_vm11 = vmor %vm491_vm10, %vm492_vm9  ;;  %v593_v2 = vsel %vm590_vm4, %v592_v0, %v588_v59  ;;  %v505_v20 = vadd.f32 %v503_v19, %v2662_v1 }
 0x38c   :  { %v488_v27 = vsub.f32 1.0, %v487_v25  ;;  %v599_v3 = vmul.f32 %v597_v63, %v593_v2  ;;  %v606_v57 = vsub.f32 1.0, %v593_v2 }
 0x38d   :  { %v2045_v21 = vmul.f32 -1.442695, %v505_v20 }
 0x38e   :  { %v489_v29 = vmul.f32 %v2122_v23, %v488_v27 }
 0x390   :  { %v490_v32 = vadd.f32 %v2122_v23, %v489_v29 }
 0x392   :  { %v494_v48 = vsel %vm493_vm11, %v2122_v23, %v490_v32 }
 0x393   :  { %v499_v50 = vsel %vm496_vm12, %v498_v47, %v494_v48 }
 0x394   :  { %v528_v52 = vmul.f32 %v526_v49, %v499_v50 }
 0x396   :  { %530 = vrot.lane.b32.xlu0 %v528_v52, %s2344_s20 }
 0x39e   :  { %601 = vrot.lane.b32.xlu0 %v599_v3, %s2344_s20 }
 0x408   :  { %v531_v4 = vpop.permute.xlu0 %530 }
 0x409   :  { %v533_v9 = vadd.f32 %v531_v4, %v2662_v1  ;;  %v102_v4 = vld [vmem:[%s3132_s2 + $0x8] sm:$0x3] }
 0x40b   :  { %2123 = vtanh.f32 %v533_v9 }
 0x410   :  { %v602_v11 = vpop.permute.xlu0 %601 }
 0x411   :  { %v2124_v12 = vpop.eup %2123  ;;  %v604_v13 = vadd.f32 %v602_v11, %v551_v8  ;;  %v171_v8 = vld [vmem:[%s3133_s3 + $0xa] sm:$0x3] }
 0x412   :  { %537 = vrot.lane.b32.xlu1 %v2124_v12, %s2345_s22  ;;  %v87_v12 = vld [vmem:[%s3131_s1 + $0xa] sm:$0x3] }
 0x413   :  { %2125 = vtanh.f32 %v604_v13 }
 0x414   :  { %2127 = vpow2.f32 %v2045_v21  ;;  %v78_v21 = vld [vmem:[%s3130_s0 + $0x8] sm:$0x3] }
 0x419   :  { %v2126_v14 = vpop.eup %2125 }
 0x41a   :  { %612 = vrot.lane.b32.xlu1 %v2640_v58, %s2343_s21  ;;  %608 = vrot.lane.b32.xlu0 %v2126_v14, %s2345_s22  ;;  %v170_v58 = vld [vmem:[%s3133_s3 + $0x8] sm:$0x3]  ;;  %v2128_v23 = vpop.eup %2127 }
 0x41b   :  { %v509_v25 = vadd.f32 1.0, %v2128_v23  ;;  %v86_v23 = vld [vmem:[%s3131_s1 + $0x8] sm:$0x3] }
 0x41d   :  { %2129 = vrcp.f32 %v509_v25  ;;  %v521_v31 = vand.u32 2147483648, %v509_v25  ;;  %vm515_vm6 = vweird.f32 %v509_v25  ;;  %v519_v32 = vand.u32 2147483647, %v509_v25 }
 0x41f   :  { %v522_v48 = vor.u32 1.1754944e-38, %v521_v31  ;;  %vm520_vm9 = vcmp.eq.f32.partialorder %v519_v32, 8.507059e+37 }
 0x422   :  { %139 = vperm.xlu1 %2103, %v104_v15   ;;  %134 = vperm.xlu0 %2102, %v103_v17  }
 0x423   :  { %v2130_v26 = vpop.eup %2129 }
 0x424   :  { %v511_v27 = vmul.f32 %v2130_v26, %v509_v25  ;;  %vm516_vm5 = vweird.f32 %v2130_v26 }
 0x425   :  { %vm517_vm7 = vmor %vm515_vm6, %vm516_vm5 }
 0x426   :  { %v512_v28 = vsub.f32 1.0, %v511_v27 }
 0x428   :  { %v513_v29 = vmul.f32 %v2130_v26, %v512_v28 }
 0x42a   :  { %202 = vperm.xlu1 %2103, %v171_v8   ;;  %197 = vperm.xlu0 %2102, %v170_v58   ;;  %v514_v30 = vadd.f32 %v2130_v26, %v513_v29 }
 0x42c   :  { %v518_v47 = vsel %vm517_vm7, %v2130_v26, %v514_v30  ;;  %v94_v26 = vadd.f32 %v86_v23, %v78_v21 }
 0x42d   :  { %v523_v49 = vsel %vm520_vm9, %v522_v48, %v518_v47  ;;  %v81_v47 = vld [vmem:[%s3130_s0 + $0xe] sm:$0x3] }
 0x42e   :  { %v535_v1 = vsub.f32 1.0, %v523_v49  ;;  %v541_v52 = vmul.f32 %v523_v49, %v2627_v55  ;;  %v79_v55 = vld [vmem:[%s3130_s0 + $0xa] sm:$0x3]  ;;  %v89_v48 = vld [vmem:[%s3131_s1 + $0xe] sm:$0x3] }
 0x42f   :  { %v95_v14 = vadd.f32 %v87_v12, %v79_v55 }
 0x432   :  { %212 = vperm.xlu0 %2102, %v173_v18   ;;  %v172_v18 = vld [vmem:[%s3133_s3 + $0xc] sm:$0x3] }
 0x484   :  { %v538_v50 = vpop.permute.xlu1 %537 }
 0x485   :  { %v540_v51 = vmul.f32 %v538_v50, %v535_v1  ;;  %v97_v1 = vadd.f32 %v89_v48, %v81_v47 }
 0x487   :  { %v542_v56 = vadd.f32 %v541_v52, %v540_v51 }
 0x489   :  { %544 = vrot.lane.b32.xlu2 %v542_v56, %s2345_s22  ;;  %v80_v56 = vld [vmem:[%s3130_s0 + $0xc] sm:$0x3] }
 0x48c   :  { %v613_v59 = vpop.permute.xlu1 %612  ;;  %v609_v63 = vpop.permute.xlu0 %608 }
 0x48d   :  { %v615_v0 = vmul.f32 %v613_v59, %v593_v2  ;;  %v611_v3 = vmul.f32 %v609_v63, %v606_v57  ;;  %v105_v2 = vld [vmem:[%s3132_s2 + $0xe] sm:$0x3]  ;;  %v88_v57 = vld [vmem:[%s3131_s1 + $0xc] sm:$0x3] }
 0x48f   :  { %v616_v9 = vadd.f32 %v615_v0, %v611_v3  ;;  %v96_v0 = vadd.f32 %v88_v57, %v80_v56 }
 0x491   :  { %129 = vperm.xlu2 %2104, %v102_v4   ;;  %618 = vrot.lane.b32.xlu1 %v616_v9, %s2345_s22 }
 0x494   :  { %v140_v11 = vpop.permute.xlu1 %139  ;;  %v135_v13 = vpop.permute.xlu0 %134 }
 0x495   :  { %v155_v15 = vmul.f32 %v2498_v24, %v135_v13  ;;  %v156_v3 = vmul.f32 %v2498_v24, %v140_v11 }
 0x497   :  { %v163_v8 = vadd.f32 %v155_v15, %v95_v14  ;;  %v164_v55 = vadd.f32 %v156_v3, %v96_v0 }
 0x499   :  { %144 = vperm.xlu2 %2104, %v105_v2  }
 0x49c   :  { %v203_v17 = vpop.permute.xlu1 %202  ;;  %v198_v25 = vpop.permute.xlu0 %197 }
 0x49d   :  { %v223_v58 = vmul.f32 %v2493_v22, %v203_v17  ;;  %v222_v31 = vmul.f32 %v2493_v22, %v198_v25 }
 0x49f   :  { %v231_v19 = vadd.f32 %v223_v58, %v163_v8 }
 0x4a1   :  { %258 = vst [vmem:[#allocation1 + $0x21] ss:$4 sm:$0xff] %v231_v19  ;;  %207 = vperm.xlu2 %2104, %v172_v18  }
 0x4a4   :  { %v213_v50 = vpop.permute.xlu0 %212 }
 0x4a5   :  { %v225_v59 = vmul.f32 %v2493_v22, %v213_v50 }
 0x4e3   :  { %v545_v20 = vpop.permute.xlu2 %544 }
 0x4e4   :  { %547 = vst.msk [vmem:[#allocation2 + $0x2] sm:$0x3] %vm338_vm0, %v545_v20 }
 0x4e5   :  { %548 = vst.msk [vmem:[#allocation4] sm:$0x3] %vm338_vm0, %v545_v20  ;;  %v746_v20 = vld [vmem:[#allocation3 + $0x4] sm:$0x3] }
 0x4eb   :  { %v130_v27 = vpop.permute.xlu2 %129  ;;  %v622_v28 = vld [vmem:[#allocation2 + $0x2] sm:$0x3] }
 0x4ec   :  { %v1914_v29 = vld [vmem:[#allocation4] sm:$0x3]  ;;  %v154_v30 = vmul.f32 %v2498_v24, %v130_v27  ;;  %624 = vrot.lane.b32.xlu2 %v622_v28, %s2343_s21 }
 0x4ed   :  { %1936 = vst [vmem:[#allocation1] ss:$4 sm:$0xff] %v1914_v29 }
 0x4ee   :  { %v162_v32 = vadd.f32 %v154_v30, %v94_v26 }
 0x4f0   :  { %v230_v49 = vadd.f32 %v222_v31, %v162_v32 }
 0x4f2   :  { %256 = vst [vmem:[#allocation1 + $0x20] ss:$4 sm:$0xff] %v230_v49 }
 0x4f3   :  { %v145_v51 = vpop.permute.xlu2 %144 }
 0x4f4   :  { %v157_v52 = vmul.f32 %v2498_v24, %v145_v51 }
 0x4f6   :  { %v165_v63 = vadd.f32 %v157_v52, %v97_v1 }
 0x4f8   :  { %v233_v4 = vadd.f32 %v225_v59, %v165_v63 }
 0x4fa   :  { %262 = vst [vmem:[#allocation1 + $0x23] ss:$4 sm:$0xff] %v233_v4 }
 0x4fb   :  { %v208_v9 = vpop.permute.xlu2 %207 }
 0x4fc   :  { %v224_v12 = vmul.f32 %v2493_v22, %v208_v9 }
 0x4fe   :  { %v232_v13 = vadd.f32 %v224_v12, %v164_v55 }
 0x500   :  { %260 = vst [vmem:[#allocation1 + $0x22] ss:$4 sm:$0xff] %v232_v13 }
 0x503   :  { %v619_v2 = vpop.permute.xlu1 %618 }
 0x504   :  { %621 = vst.msk [vmem:[#allocation2] sm:$0x3] %vm338_vm0, %v619_v2 }
 0x507   :  { %v264_v14 = vld.sshfl [vmem:[#allocation1 + $0x20] sm:$0xff pattern:$0x73625140] }
 0x508   :  { %2038 = vmatmul.msk.f32.gmra.mxu0 %vm265_vm2, %v264_v14 }
 0x50b   :  { %v2744_v15 = vld [vmem:[#allocation2] sm:$0x3] }
 0x50c   :  { %2052 = vmatmul.msk.f32.vlgmr.msrb.gmra.mxu2 %vm348_vm1, %v2744_v15 }
 0x50d   :  { %1049 = vmatpush.msrb.mxu2 %v2544_v34 }
 0x50f   :  { %1050 = vmatpush.msrb.mxu2 %v2550_v36 }
 0x511   :  { %1051 = vmatpush.msrb.mxu2 %v2554_v38 }
 0x513   :  { %1052 = vmatpush.msrb.mxu2 %v2562_v40 }
 0x515   :  { %1053 = vmatpush.msrb.mxu2 %v2570_v42 }
 0x517   :  { %1054 = vmatpush.msrb.mxu2 %v2578_v44 }
 0x519   :  { %1055 = vmatpush.msrb.mxu2 %v2586_v46 }
 0x51b   :  { %1056 = vmatpush.msrb.mxu2 %v2601_v54 }
 0x546   :  { %v2756_v22 = vpop.permute.xlu2 %624 }
 0x547   :  { %v627_v24 = vsel %vm348_vm1, %v619_v2, %v2756_v22 }
 0x548   :  { %2048 = vmatmul.msk.f32.vlgmr.msrb.gmra.mxu0 %vm433_vm8, %v627_v24  ;;  %2049 = vmatmul.msk.f32.vlgmr.msra.gmra.mxu1 %vm433_vm8, %v627_v24 }
 0x549   :  { %1347 = vmatpush.msra.mxu1 %v2432_v5  ;;  %1224 = vmatpush.msrb.mxu0 %v2542_v33 }
 0x54b   :  { %1348 = vmatpush.msra.mxu1 %v2438_v6  ;;  %1225 = vmatpush.msrb.mxu0 %v2546_v35 }
 0x54d   :  { %1349 = vmatpush.msra.mxu1 %v2443_v7  ;;  %1226 = vmatpush.msrb.mxu0 %v2552_v37 }
 0x54f   :  { %1350 = vmatpush.msra.mxu1 %v2456_v10  ;;  %1227 = vmatpush.msrb.mxu0 %v2560_v39 }
 0x551   :  { %1228 = vmatpush.msrb.mxu0 %v2568_v41 }
 0x553   :  { %1229 = vmatpush.msrb.mxu0 %v2576_v43 }
 0x555   :  { %1230 = vmatpush.msrb.mxu0 %v2584_v45 }
 0x557   :  { %1231 = vmatpush.msrb.mxu0 %v2599_v53 }
 0x585   :  { %v290_v5 = vpop.f32.mrf.mxu0 }
 0x586   :  { %v291_v6 = vadd.f32 %v290_v5, %v2477_v16 }
 0x588   :  { %v298_v11 = vrot.slane %v291_v6, 2  ;;  %v299_v17 = vrot.slane %v291_v6, 4  ;;  %v300_v7 = vrot.slane %v291_v6, 6  ;;  %312 = vst.msk [vmem:[#allocation3 + $0x8] sm:$0x3] %vm307_vm3, %v291_v6 }
 0x58a   :  { %313 = vst.msk [vmem:[#allocation3 + $0xa] sm:$0x3] %vm307_vm3, %v298_v11 }
 0x58b   :  { %314 = vst.msk [vmem:[#allocation3 + $0xc] sm:$0x3] %vm307_vm3, %v299_v17 }
 0x58c   :  { %315 = vst.msk [vmem:[#allocation3 + $0xe] sm:$0x3] %vm307_vm3, %v300_v7 }
 0x58f   :  { %v767_v16 = vpop.f32.mrf.mxu2 }
 0x590   :  { %v768_v19 = vadd.f32 %v767_v16, %v2527_v61 }
 0x592   :  { %v770_v21 = vadd.f32 %v768_v19, %v746_v20 }
 0x594   :  { %v2053_v23 = vmul.f32 -1.442695, %v770_v21 }
 0x596   :  { %2131 = vpow2.f32 %v2053_v23 }
 0x59c   :  { %v2132_v27 = vpop.eup %2131 }
 0x59d   :  { %v774_v29 = vadd.f32 1.0, %v2132_v27 }
 0x59f   :  { %v786_v12 = vand.u32 2147483648, %v774_v29  ;;  %vm780_vm14 = vweird.f32 %v774_v29  ;;  %v784_v13 = vand.u32 2147483647, %v774_v29 }
 0x5a1   :  { %v787_v14 = vor.u32 1.1754944e-38, %v786_v12  ;;  %vm785_vm4 = vcmp.eq.f32.partialorder %v784_v13, 8.507059e+37 }
 0x5c5   :  { %v648_v10 = vpop.f32.mrf.mxu0  ;;  %v668_v8 = vpop.f32.mrf.mxu1 }
 0x5c6   :  { %v2780_v58 = vadd.f32 %v648_v10, %v2657_v60  ;;  %v669_v18 = vadd.f32 %v668_v8, %v2659_v62 }
 0x5c8   :  { %719 = vrot.lane.b32.xlu1 %v669_v18, %s2345_s22  ;;  %672 = vrot.lane.b32.xlu0 %v2780_v58, %s2343_s21 }
 0x5d0   :  { %696 = vrot.lane.b32.xlu1 %v669_v18, %s2343_s21  ;;  %791 = vrot.lane.b32.xlu0 %v768_v19, %s2344_s20 }
 0x63a   :  { %v673_v25 = vpop.permute.xlu0 %672  ;;  %v720_v3 = vpop.permute.xlu1 %719 }
 0x63b   :  { %v675_v26 = vadd.f32 %v673_v25, %v2780_v58 }
 0x63d   :  { %v2050_v28 = vmul.f32 -1.442695, %v675_v26 }
 0x63f   :  { %2133 = vpow2.f32 %v2050_v28 }
 0x640   :  { %2135 = vrcp.f32 %v774_v29 }
 0x642   :  { %v792_v24 = vpop.permute.xlu0 %791  ;;  %v697_v16 = vpop.permute.xlu1 %696 }
 0x643   :  { %v699_v19 = vadd.f32 %v697_v16, %v2780_v58 }
 0x645   :  { %v2134_v30 = vpop.eup %2133  ;;  %v2051_v21 = vmul.f32 -1.442695, %v699_v19 }
 0x646   :  { %v679_v31 = vadd.f32 1.0, %v2134_v30  ;;  %v2136_v32 = vpop.eup %2135 }
 0x647   :  { %v776_v47 = vmul.f32 %v2136_v32, %v774_v29  ;;  %vm781_vm13 = vweird.f32 %v2136_v32 }
 0x648   :  { %2137 = vrcp.f32 %v679_v31  ;;  %v691_v51 = vand.u32 2147483648, %v679_v31  ;;  %v689_v56 = vand.u32 2147483647, %v679_v31  ;;  %vm685_vm10 = vweird.f32 %v679_v31  ;;  %vm782_vm15 = vmor %vm780_vm14, %vm781_vm13 }
 0x649   :  { %v777_v1 = vsub.f32 1.0, %v776_v47 }
 0x64a   :  { %v692_v63 = vor.u32 1.1754944e-38, %v691_v51  ;;  %vm690_vm12 = vcmp.eq.f32.partialorder %v689_v56, 8.507059e+37 }
 0x64b   :  { %v778_v57 = vmul.f32 %v2136_v32, %v777_v1 }
 0x64d   :  { %v779_v9 = vadd.f32 %v2136_v32, %v778_v57 }
 0x64e   :  { %v2138_v48 = vpop.eup %2137 }
 0x64f   :  { %v681_v49 = vmul.f32 %v2138_v48, %v679_v31  ;;  %vm686_vm3 = vweird.f32 %v2138_v48  ;;  %v783_v2 = vsel %vm782_vm15, %v2136_v32, %v779_v9 }
 0x650   :  { %vm687_vm11 = vmor %vm685_vm10, %vm686_vm3  ;;  %v788_v5 = vsel %vm785_vm4, %v787_v14, %v783_v2 }
 0x651   :  { %v682_v50 = vsub.f32 1.0, %v681_v49  ;;  %v794_v6 = vmul.f32 %v792_v24, %v788_v5 }
 0x653   :  { %v683_v52 = vmul.f32 %v2138_v48, %v682_v50 }
 0x655   :  { %v684_v59 = vadd.f32 %v2138_v48, %v683_v52  ;;  %v801_v52 = vsub.f32 1.0, %v788_v5 }
 0x657   :  { %v688_v0 = vsel %vm687_vm11, %v2138_v48, %v684_v59 }
 0x658   :  { %v693_v4 = vsel %vm690_vm12, %v692_v63, %v688_v0 }
 0x659   :  { %v722_v55 = vmul.f32 %v720_v3, %v693_v4 }
 0x65b   :  { %724 = vrot.lane.b32.xlu2 %v722_v55, %s2344_s20 }
 0x663   :  { %796 = vrot.lane.b32.xlu2 %v794_v6, %s2344_s20 }
 0x6b5   :  { %v725_v11 = vpop.permute.xlu2 %724 }
 0x6b6   :  { %v727_v17 = vadd.f32 %v725_v11, %v2780_v58 }
 0x6b8   :  { %2139 = vtanh.f32 %v727_v17 }
 0x6bd   :  { %v797_v7 = vpop.permute.xlu2 %796 }
 0x6be   :  { %v2140_v10 = vpop.eup %2139  ;;  %v799_v8 = vadd.f32 %v797_v7, %v746_v20 }
 0x6bf   :  { %731 = vrot.lane.b32.xlu0 %v2140_v10, %s2345_s22 }
 0x6c0   :  { %2141 = vtanh.f32 %v799_v8 }
 0x6c1   :  { %2143 = vpow2.f32 %v2051_v21 }
 0x6c6   :  { %v2142_v18 = vpop.eup %2141 }
 0x6c7   :  { %807 = vrot.lane.b32.xlu0 %v2744_v15, %s2343_s21  ;;  %803 = vrot.lane.b32.xlu2 %v2142_v18, %s2345_s22  ;;  %v2144_v23 = vpop.eup %2143 }
 0x6c8   :  { %v703_v25 = vadd.f32 1.0, %v2144_v23 }
 0x6ca   :  { %2145 = vrcp.f32 %v703_v25  ;;  %v715_v30 = vand.u32 2147483648, %v703_v25  ;;  %vm709_vm6 = vweird.f32 %v703_v25  ;;  %v713_v31 = vand.u32 2147483647, %v703_v25 }
 0x6cc   :  { %v716_v32 = vor.u32 1.1754944e-38, %v715_v30  ;;  %vm714_vm9 = vcmp.eq.f32.partialorder %v713_v31, 8.507059e+37 }
 0x6d0   :  { %v2146_v26 = vpop.eup %2145 }
 0x6d1   :  { %v705_v27 = vmul.f32 %v2146_v26, %v703_v25  ;;  %vm710_vm5 = vweird.f32 %v2146_v26 }
 0x6d2   :  { %vm711_vm7 = vmor %vm709_vm6, %vm710_vm5 }
 0x6d3   :  { %v706_v20 = vsub.f32 1.0, %v705_v27 }
 0x6d5   :  { %v707_v28 = vmul.f32 %v2146_v26, %v706_v20 }
 0x6d7   :  { %v708_v29 = vadd.f32 %v2146_v26, %v707_v28 }
 0x6d9   :  { %v712_v15 = vsel %vm711_vm7, %v2146_v26, %v708_v29 }
 0x6da   :  { %v717_v47 = vsel %vm714_vm9, %v716_v32, %v712_v15 }
 0x6db   :  { %v729_v58 = vsub.f32 1.0, %v717_v47  ;;  %v735_v1 = vmul.f32 %v717_v47, %v2756_v22 }
 0x721   :  { %v804_v51 = vpop.permute.xlu2 %803 }
 0x722   :  { %v806_v57 = vmul.f32 %v804_v51, %v801_v52 }
 0x731   :  { %v732_v48 = vpop.permute.xlu0 %731 }
 0x732   :  { %v734_v49 = vmul.f32 %v732_v48, %v729_v58 }
 0x734   :  { %v736_v50 = vadd.f32 %v735_v1, %v734_v49 }
 0x736   :  { %738 = vrot.lane.b32.xlu1 %v736_v50, %s2345_s22 }
 0x739   :  { %v808_v56 = vpop.permute.xlu0 %807 }
 0x73a   :  { %v810_v59 = vmul.f32 %v808_v56, %v788_v5 }
 0x73c   :  { %v811_v63 = vadd.f32 %v810_v59, %v806_v57 }
 0x73e   :  { %813 = vrot.lane.b32.xlu1 %v811_v63, %s2345_s22 }
 0x7a8   :  { %v739_v0 = vpop.permute.xlu1 %738 }
 0x7a9   :  { %741 = vst.msk [vmem:[#allocation2 + $0x2] sm:$0x3] %vm338_vm0, %v739_v0 }
 0x7aa   :  { %743 = vst.msk [vmem:[#allocation4 + $0x2] sm:$0x3] %vm338_vm0, %v739_v0 }
 0x7b0   :  { %v814_v3 = vpop.permute.xlu1 %813  ;;  %v817_v4 = vld [vmem:[#allocation2 + $0x2] sm:$0x3] }
 0x7b1   :  { %v1915_v9 = vld [vmem:[#allocation4 + $0x2] sm:$0x3]  ;;  %816 = vst.msk [vmem:[#allocation2] sm:$0x3] %vm338_vm0, %v814_v3  ;;  %819 = vrot.lane.b32.xlu2 %v817_v4, %s2343_s21 }
 0x7b2   :  { %1938 = vst [vmem:[#allocation1 + $0x1] ss:$4 sm:$0xff] %v1915_v9 }
 0x7b8   :  { %v2805_v22 = vld [vmem:[#allocation2] sm:$0x3] }
 0x7b9   :  { %2058 = vmatmul.msk.f32.vlgmr.msra.gmra.mxu2 %vm348_vm1, %v2805_v22 }
 0x7ba   :  { %1419 = vmatpush.msra.mxu2 %v2542_v33 }
 0x7bc   :  { %1420 = vmatpush.msra.mxu2 %v2546_v35 }
 0x7be   :  { %1421 = vmatpush.msra.mxu2 %v2552_v37 }
 0x7c0   :  { %1422 = vmatpush.msra.mxu2 %v2560_v39  ;;  %v941_v39 = vld [vmem:[#allocation3 + $0x6] sm:$0x3] }
 0x7c2   :  { %1423 = vmatpush.msra.mxu2 %v2568_v41 }
 0x7c4   :  { %1424 = vmatpush.msra.mxu2 %v2576_v43 }
 0x7c6   :  { %1425 = vmatpush.msra.mxu2 %v2584_v45 }
 0x7c8   :  { %1426 = vmatpush.msra.mxu2 %v2599_v53 }
 0x80b   :  { %v2817_v55 = vpop.permute.xlu2 %819 }
 0x80c   :  { %v822_v12 = vsel %vm348_vm1, %v814_v3, %v2817_v55 }
 0x80d   :  { %2054 = vmatmul.msk.f32.vlgmr.msrb.gmra.mxu3 %vm433_vm8, %v822_v12  ;;  %2055 = vmatmul.msk.f32.vlgmr.msra.gmra.mxu0 %vm433_vm8, %v822_v12 }
 0x80e   :  { %1244 = vmatpush.msrb.mxu3 %v2544_v34  ;;  %1439 = vmatpush.msra.mxu0 %v2544_v34 }
 0x810   :  { %1245 = vmatpush.msrb.mxu3 %v2550_v36  ;;  %1440 = vmatpush.msra.mxu0 %v2550_v36 }
 0x812   :  { %1246 = vmatpush.msrb.mxu3 %v2554_v38  ;;  %1441 = vmatpush.msra.mxu0 %v2554_v38 }
 0x814   :  { %1247 = vmatpush.msrb.mxu3 %v2562_v40  ;;  %1442 = vmatpush.msra.mxu0 %v2562_v40 }
 0x816   :  { %1248 = vmatpush.msrb.mxu3 %v2570_v42  ;;  %1443 = vmatpush.msra.mxu0 %v2570_v42 }
 0x818   :  { %1249 = vmatpush.msrb.mxu3 %v2578_v44  ;;  %1444 = vmatpush.msra.mxu0 %v2578_v44 }
 0x81a   :  { %1250 = vmatpush.msrb.mxu3 %v2586_v46  ;;  %1445 = vmatpush.msra.mxu0 %v2586_v46 }
 0x81c   :  { %1251 = vmatpush.msrb.mxu3 %v2601_v54  ;;  %1446 = vmatpush.msra.mxu0 %v2601_v54 }
 0x83c   :  { %v962_v37 = vpop.f32.mrf.mxu2 }
 0x83d   :  { %v963_v38 = vadd.f32 %v962_v37, %v2527_v61 }
 0x83f   :  { %v965_v40 = vadd.f32 %v963_v38, %v941_v39 }
 0x841   :  { %v2059_v41 = vmul.f32 -1.442695, %v965_v40 }
 0x843   :  { %2147 = vpow2.f32 %v2059_v41 }
 0x849   :  { %v2148_v44 = vpop.eup %2147 }
 0x84a   :  { %v969_v46 = vadd.f32 1.0, %v2148_v44 }
 0x84c   :  { %v981_v26 = vand.u32 2147483648, %v969_v46  ;;  %vm975_vm14 = vweird.f32 %v969_v46  ;;  %v979_v27 = vand.u32 2147483647, %v969_v46 }
 0x84e   :  { %v982_v29 = vor.u32 1.1754944e-38, %v981_v26  ;;  %vm980_vm4 = vcmp.eq.f32.partialorder %v979_v27, 8.507059e+37 }
 0x88a   :  { %v863_v33 = vpop.f32.mrf.mxu0 }
 0x88b   :  { %v864_v34 = vadd.f32 %v863_v33, %v2659_v62 }
 0x88d   :  { %914 = vrot.lane.b32.xlu1 %v864_v34, %s2345_s22 }
 0x890   :  { %v843_v35 = vpop.f32.mrf.mxu3 }
 0x891   :  { %v2842_v36 = vadd.f32 %v843_v35, %v2657_v60 }
 0x893   :  { %867 = vrot.lane.b32.xlu0 %v2842_v36, %s2343_s21 }
 0x895   :  { %891 = vrot.lane.b32.xlu1 %v864_v34, %s2343_s21 }
 0x89b   :  { %986 = vrot.lane.b32.xlu0 %v963_v38, %s2344_s20 }
 0x8ff   :  { %v915_v19 = vpop.permute.xlu1 %914 }
 0x905   :  { %v868_v42 = vpop.permute.xlu0 %867 }
 0x906   :  { %v870_v43 = vadd.f32 %v868_v42, %v2842_v36 }
 0x907   :  { %v892_v1 = vpop.permute.xlu1 %891 }
 0x908   :  { %v2056_v45 = vmul.f32 -1.442695, %v870_v43  ;;  %v894_v50 = vadd.f32 %v892_v1, %v2842_v36 }
 0x90a   :  { %2149 = vpow2.f32 %v2056_v45  ;;  %v2057_v51 = vmul.f32 -1.442695, %v894_v50 }
 0x90b   :  { %2151 = vrcp.f32 %v969_v46 }
 0x90d   :  { %v987_v28 = vpop.permute.xlu0 %986 }
 0x910   :  { %v2150_v53 = vpop.eup %2149 }
 0x911   :  { %v874_v54 = vadd.f32 1.0, %v2150_v53  ;;  %v2152_v13 = vpop.eup %2151 }
 0x912   :  { %v971_v2 = vmul.f32 %v2152_v13, %v969_v46  ;;  %vm976_vm13 = vweird.f32 %v2152_v13 }
 0x913   :  { %2153 = vrcp.f32 %v874_v54  ;;  %v886_v11 = vand.u32 2147483648, %v874_v54  ;;  %v884_v7 = vand.u32 2147483647, %v874_v54  ;;  %vm880_vm10 = vweird.f32 %v874_v54  ;;  %vm977_vm15 = vmor %vm975_vm14, %vm976_vm13 }
 0x914   :  { %v972_v5 = vsub.f32 1.0, %v971_v2  ;;  %v2872_v2 = vld [vmem:[#allocation8 + $0x60] sm:$0xff] }
 0x915   :  { %v887_v18 = vor.u32 1.1754944e-38, %v886_v11  ;;  %vm885_vm12 = vcmp.eq.f32.partialorder %v884_v7, 8.507059e+37  ;;  %v2887_v11 = vld [vmem:[#allocation8 + $0x10] sm:$0xff] }
 0x916   :  { %v973_v10 = vmul.f32 %v2152_v13, %v972_v5  ;;  %v2881_v5 = vld [vmem:[#allocation8 + $0x30] sm:$0xff] }
 0x918   :  { %v974_v23 = vadd.f32 %v2152_v13, %v973_v10 }
 0x919   :  { %v2154_v14 = vpop.eup %2153 }
 0x91a   :  { %v876_v24 = vmul.f32 %v2154_v14, %v874_v54  ;;  %vm881_vm3 = vweird.f32 %v2154_v14  ;;  %v978_v20 = vsel %vm977_vm15, %v2152_v13, %v974_v23  ;;  %v2869_v13 = vld [vmem:[#allocation8 + $0x70] sm:$0xff] }
 0x91b   :  { %vm882_vm11 = vmor %vm880_vm10, %vm881_vm3  ;;  %v983_v30 = vsel %vm980_vm4, %v982_v29, %v978_v20 }
 0x91c   :  { %v877_v6 = vsub.f32 1.0, %v876_v24  ;;  %v989_v31 = vmul.f32 %v987_v28, %v983_v30  ;;  %v996_v40 = vsub.f32 1.0, %v983_v30  ;;  %v2878_v24 = vld [vmem:[#allocation8 + $0x40] sm:$0xff]  ;;  %v1136_v28 = vld [vmem:[#allocation3 + $0x8] sm:$0x3] }
 0x91e   :  { %v878_v17 = vmul.f32 %v2154_v14, %v877_v6  ;;  %v2884_v6 = vld [vmem:[#allocation8 + $0x20] sm:$0xff] }
 0x920   :  { %v879_v8 = vadd.f32 %v2154_v14, %v878_v17  ;;  %v2890_v17 = vld [vmem:[#allocation8] sm:$0xff] }
 0x922   :  { %v883_v16 = vsel %vm882_vm11, %v2154_v14, %v879_v8  ;;  %v2875_v14 = vld [vmem:[#allocation8 + $0x50] sm:$0xff]  ;;  %v2245_v8 = vld [vmem:[%s3137_s7 + $0x18] sm:$0xff] }
 0x923   :  { %v888_v21 = vsel %vm885_vm12, %v887_v18, %v883_v16  ;;  %v2246_v18 = vld [vmem:[%s3137_s7 + $0x10] sm:$0xff]  ;;  %v2247_v16 = vld [vmem:[%s3137_s7 + $0x8] sm:$0xff] }
 0x924   :  { %v917_v25 = vmul.f32 %v915_v19, %v888_v21  ;;  %v2248_v19 = vld [vmem:[%s3137_s7] sm:$0xff] }
 0x926   :  { %919 = vrot.lane.b32.xlu2 %v917_v25, %s2344_s20 }
 0x92e   :  { %991 = vrot.lane.b32.xlu2 %v989_v31, %s2344_s20 }
 0x980   :  { %v920_v15 = vpop.permute.xlu2 %919 }
 0x981   :  { %v922_v32 = vadd.f32 %v920_v15, %v2842_v36 }
 0x983   :  { %2155 = vtanh.f32 %v922_v32 }
 0x988   :  { %v992_v47 = vpop.permute.xlu2 %991 }
 0x989   :  { %v2156_v58 = vpop.eup %2155  ;;  %v994_v48 = vadd.f32 %v992_v47, %v941_v39 }
 0x98a   :  { %926 = vrot.lane.b32.xlu0 %v2156_v58, %s2345_s22 }
 0x98b   :  { %2157 = vtanh.f32 %v994_v48 }
 0x98c   :  { %2159 = vpow2.f32 %v2057_v51 }
 0x991   :  { %v2158_v49 = vpop.eup %2157 }
 0x992   :  { %1002 = vrot.lane.b32.xlu0 %v2805_v22, %s2343_s21  ;;  %998 = vrot.lane.b32.xlu2 %v2158_v49, %s2345_s22  ;;  %v2160_v52 = vpop.eup %2159 }
 0x993   :  { %v898_v56 = vadd.f32 1.0, %v2160_v52 }
 0x995   :  { %2161 = vrcp.f32 %v898_v56  ;;  %v910_v4 = vand.u32 2147483648, %v898_v56  ;;  %vm904_vm6 = vweird.f32 %v898_v56  ;;  %v908_v9 = vand.u32 2147483647, %v898_v56 }
 0x997   :  { %v911_v12 = vor.u32 1.1754944e-38, %v910_v4  ;;  %vm909_vm9 = vcmp.eq.f32.partialorder %v908_v9, 8.507059e+37 }
 0x99b   :  { %v2162_v57 = vpop.eup %2161 }
 0x99c   :  { %v900_v59 = vmul.f32 %v2162_v57, %v898_v56  ;;  %vm905_vm5 = vweird.f32 %v2162_v57 }
 0x99d   :  { %vm906_vm7 = vmor %vm904_vm6, %vm905_vm5 }
 0x99e   :  { %v901_v63 = vsub.f32 1.0, %v900_v59 }
 0x9a0   :  { %v902_v0 = vmul.f32 %v2162_v57, %v901_v63 }
 0x9a2   :  { %v903_v3 = vadd.f32 %v2162_v57, %v902_v0 }
 0x9a4   :  { %v907_v22 = vsel %vm906_vm7, %v2162_v57, %v903_v3 }
 0x9a5   :  { %v912_v33 = vsel %vm909_vm9, %v911_v12, %v907_v22 }
 0x9a6   :  { %v924_v34 = vsub.f32 1.0, %v912_v33  ;;  %v930_v36 = vmul.f32 %v912_v33, %v2817_v55 }
 0x9ec   :  { %v999_v39 = vpop.permute.xlu2 %998 }
 0x9ed   :  { %v1001_v42 = vmul.f32 %v999_v39, %v996_v40 }
 0x9fc   :  { %v927_v35 = vpop.permute.xlu0 %926 }
 0x9fd   :  { %v929_v37 = vmul.f32 %v927_v35, %v924_v34 }
 0x9ff   :  { %v931_v38 = vadd.f32 %v930_v36, %v929_v37 }
 0xa01   :  { %933 = vrot.lane.b32.xlu1 %v931_v38, %s2345_s22 }
 0xa04   :  { %v1003_v41 = vpop.permute.xlu0 %1002 }
 0xa05   :  { %v1005_v43 = vmul.f32 %v1003_v41, %v983_v30 }
 0xa07   :  { %v1006_v44 = vadd.f32 %v1005_v43, %v1001_v42 }
 0xa09   :  { %1008 = vrot.lane.b32.xlu1 %v1006_v44, %s2345_s22 }
 0xa73   :  { %v934_v45 = vpop.permute.xlu1 %933 }
 0xa74   :  { %936 = vst.msk [vmem:[#allocation2 + $0x2] sm:$0x3] %vm338_vm0, %v934_v45 }
 0xa75   :  { %938 = vst.msk [vmem:[#allocation4 + $0x4] sm:$0x3] %vm338_vm0, %v934_v45 }
 0xa7b   :  { %v1009_v46 = vpop.permute.xlu1 %1008  ;;  %v1012_v53 = vld [vmem:[#allocation2 + $0x2] sm:$0x3] }
 0xa7c   :  { %v1916_v55 = vld [vmem:[#allocation4 + $0x4] sm:$0x3]  ;;  %1011 = vst.msk [vmem:[#allocation2] sm:$0x3] %vm338_vm0, %v1009_v46  ;;  %1014 = vrot.lane.b32.xlu2 %v1012_v53, %s2343_s21 }
 0xa7d   :  { %1940 = vst [vmem:[#allocation1 + $0x2] ss:$4 sm:$0xff] %v1916_v55 }
 0xa83   :  { %v2865_v54 = vld [vmem:[#allocation2] sm:$0x3] }
 0xa84   :  { %2064 = vmatmul.msk.f32.vlgmr.msra.gmra.mxu3 %vm348_vm1, %v2865_v54 }
 0xa85   :  { %1614 = vmatpush.msra.mxu3 %v2869_v13 }
 0xa87   :  { %1615 = vmatpush.msra.mxu3 %v2872_v2 }
 0xa89   :  { %1616 = vmatpush.msra.mxu3 %v2875_v14 }
 0xa8b   :  { %1617 = vmatpush.msra.mxu3 %v2878_v24 }
 0xa8d   :  { %1618 = vmatpush.msra.mxu3 %v2881_v5 }
 0xa8f   :  { %1619 = vmatpush.msra.mxu3 %v2884_v6 }
 0xa91   :  { %1620 = vmatpush.msra.mxu3 %v2887_v11 }
 0xa93   :  { %1621 = vmatpush.msra.mxu3 %v2890_v17 }
 0xad6   :  { %v2893_v7 = vpop.permute.xlu2 %1014 }
 0xad7   :  { %v1017_v10 = vsel %vm348_vm1, %v1009_v46, %v2893_v7 }
 0xad8   :  { %2060 = vmatmul.msk.f32.vlgmr.msrb.gmra.mxu1 %vm433_vm8, %v1017_v10  ;;  %2061 = vmatmul.msk.f32.vlgmr.msrb.gmra.mxu2 %vm433_vm8, %v1017_v10 }
 0xad9   :  { %1542 = vmatpush.msrb.mxu1 %v2245_v8  ;;  %1737 = vmatpush.msrb.mxu2 %v2245_v8 }
 0xadb   :  { %1543 = vmatpush.msrb.mxu1 %v2246_v18  ;;  %1738 = vmatpush.msrb.mxu2 %v2246_v18 }
 0xadd   :  { %1544 = vmatpush.msrb.mxu1 %v2247_v16  ;;  %1739 = vmatpush.msrb.mxu2 %v2247_v16 }
 0xadf   :  { %1545 = vmatpush.msrb.mxu1 %v2248_v19  ;;  %1740 = vmatpush.msrb.mxu2 %v2248_v19 }
 0xb07   :  { %v1157_v25 = vpop.f32.mrf.mxu3 }
 0xb08   :  { %v1158_v20 = vadd.f32 %v1157_v25, %v2527_v61 }
 0xb0a   :  { %v1160_v29 = vadd.f32 %v1158_v20, %v1136_v28 }
 0xb0c   :  { %v2065_v30 = vmul.f32 -1.442695, %v1160_v29 }
 0xb0e   :  { %2163 = vpow2.f32 %v2065_v30 }
 0xb14   :  { %v2164_v32 = vpop.eup %2163 }
 0xb15   :  { %v1164_v58 = vadd.f32 1.0, %v2164_v32 }
 0xb17   :  { %v1176_v36 = vand.u32 2147483648, %v1164_v58  ;;  %vm1170_vm14 = vweird.f32 %v1164_v58  ;;  %v1174_v37 = vand.u32 2147483647, %v1164_v58 }
 0xb19   :  { %v1177_v40 = vor.u32 1.1754944e-38, %v1176_v36  ;;  %vm1175_vm4 = vcmp.eq.f32.partialorder %v1174_v37, 8.507059e+37 }
 0xb55   :  { %v1038_v21 = vpop.f32.mrf.mxu1 }
 0xb56   :  { %v2912_v23 = vadd.f32 %v1038_v21, %v2657_v60 }
 0xb58   :  { %1062 = vrot.lane.b32.xlu0 %v2912_v23, %s2343_s21 }
 0xb5b   :  { %v1058_v26 = vpop.f32.mrf.mxu2 }
 0xb5c   :  { %v1059_v27 = vadd.f32 %v1058_v26, %v2659_v62 }
 0xb5e   :  { %1109 = vrot.lane.b32.xlu1 %v1059_v27, %s2345_s22 }
 0xb60   :  { %1181 = vrot.lane.b32.xlu0 %v1158_v20, %s2344_s20 }
 0xb66   :  { %1086 = vrot.lane.b32.xlu1 %v1059_v27, %s2343_s21 }
 0xbca   :  { %v1063_v31 = vpop.permute.xlu0 %1062 }
 0xbcb   :  { %v1065_v15 = vadd.f32 %v1063_v31, %v2912_v23 }
 0xbcd   :  { %v2062_v47 = vmul.f32 -1.442695, %v1065_v15 }
 0xbcf   :  { %2165 = vpow2.f32 %v2062_v47 }
 0xbd0   :  { %2167 = vrcp.f32 %v1164_v58  ;;  %v1110_v12 = vpop.permute.xlu1 %1109 }
 0xbd2   :  { %v1182_v39 = vpop.permute.xlu0 %1181 }
 0xbd5   :  { %v2166_v48 = vpop.eup %2165 }
 0xbd6   :  { %v1069_v49 = vadd.f32 1.0, %v2166_v48  ;;  %v2168_v1 = vpop.eup %2167 }
 0xbd7   :  { %v1166_v50 = vmul.f32 %v2168_v1, %v1164_v58  ;;  %vm1171_vm13 = vweird.f32 %v2168_v1 }
 0xbd8   :  { %2169 = vrcp.f32 %v1069_v49  ;;  %v1081_v59 = vand.u32 2147483648, %v1069_v49  ;;  %v1079_v0 = vand.u32 2147483647, %v1069_v49  ;;  %vm1075_vm10 = vweird.f32 %v1069_v49  ;;  %vm1172_vm15 = vmor %vm1170_vm14, %vm1171_vm13  ;;  %v1087_v10 = vpop.permute.xlu1 %1086 }
 0xbd9   :  { %v1167_v57 = vsub.f32 1.0, %v1166_v50  ;;  %v1089_v8 = vadd.f32 %v1087_v10, %v2912_v23 }
 0xbda   :  { %v1082_v9 = vor.u32 1.1754944e-38, %v1081_v59  ;;  %vm1080_vm12 = vcmp.eq.f32.partialorder %v1079_v0, 8.507059e+37  ;;  %v2941_v0 = vld [vmem:[#allocation8 + $0x78] sm:$0xff] }
 0xbdb   :  { %v1168_v4 = vmul.f32 %v2168_v1, %v1167_v57  ;;  %v2063_v18 = vmul.f32 -1.442695, %v1089_v8 }
 0xbdd   :  { %v1169_v35 = vadd.f32 %v2168_v1, %v1168_v4  ;;  %v2947_v4 = vld [vmem:[#allocation8 + $0x58] sm:$0xff] }
 0xbde   :  { %v2170_v51 = vpop.eup %2169 }
 0xbdf   :  { %v1071_v52 = vmul.f32 %v2170_v51, %v1069_v49  ;;  %vm1076_vm3 = vweird.f32 %v2170_v51  ;;  %v1173_v38 = vsel %vm1172_vm15, %v2168_v1, %v1169_v35 }
 0xbe0   :  { %vm1077_vm11 = vmor %vm1075_vm10, %vm1076_vm3  ;;  %v1178_v41 = vsel %vm1175_vm4, %v1177_v40, %v1173_v38 }
 0xbe1   :  { %v1072_v56 = vsub.f32 1.0, %v1071_v52  ;;  %v1184_v42 = vmul.f32 %v1182_v39, %v1178_v41  ;;  %v1191_v49 = vsub.f32 1.0, %v1178_v41 }
 0xbe3   :  { %v1073_v63 = vmul.f32 %v2170_v51, %v1072_v56 }
 0xbe5   :  { %v1074_v3 = vadd.f32 %v2170_v51, %v1073_v63 }
 0xbe7   :  { %v1078_v22 = vsel %vm1077_vm11, %v2170_v51, %v1074_v3  ;;  %v2944_v3 = vld [vmem:[#allocation8 + $0x68] sm:$0xff] }
 0xbe8   :  { %v1083_v33 = vsel %vm1080_vm12, %v1082_v9, %v1078_v22  ;;  %v2950_v9 = vld [vmem:[#allocation8 + $0x48] sm:$0xff]  ;;  %v2953_v22 = vld [vmem:[#allocation8 + $0x38] sm:$0xff] }
 0xbe9   :  { %v1112_v34 = vmul.f32 %v1110_v12, %v1083_v33  ;;  %v2956_v12 = vld [vmem:[#allocation8 + $0x28] sm:$0xff]  ;;  %v2959_v33 = vld [vmem:[#allocation8 + $0x18] sm:$0xff] }
 0xbeb   :  { %1114 = vrot.lane.b32.xlu2 %v1112_v34, %s2344_s20  ;;  %v2962_v34 = vld [vmem:[#allocation8 + $0x8] sm:$0xff] }
 0xbf3   :  { %1186 = vrot.lane.b32.xlu2 %v1184_v42, %s2344_s20 }
 0xc45   :  { %v1115_v43 = vpop.permute.xlu2 %1114 }
 0xc46   :  { %v1117_v44 = vadd.f32 %v1115_v43, %v2912_v23 }
 0xc48   :  { %2171 = vtanh.f32 %v1117_v44 }
 0xc4d   :  { %v1187_v45 = vpop.permute.xlu2 %1186 }
 0xc4e   :  { %v2172_v46 = vpop.eup %2171  ;;  %v1189_v53 = vadd.f32 %v1187_v45, %v1136_v28 }
 0xc4f   :  { %1121 = vrot.lane.b32.xlu0 %v2172_v46, %s2345_s22 }
 0xc50   :  { %2173 = vtanh.f32 %v1189_v53 }
 0xc51   :  { %2175 = vpow2.f32 %v2063_v18 }
 0xc56   :  { %v2174_v55 = vpop.eup %2173 }
 0xc57   :  { %1197 = vrot.lane.b32.xlu0 %v2865_v54, %s2343_s21  ;;  %1193 = vrot.lane.b32.xlu2 %v2174_v55, %s2345_s22  ;;  %v2176_v16 = vpop.eup %2175 }
 0xc58   :  { %v1093_v19 = vadd.f32 1.0, %v2176_v16 }
 0xc5a   :  { %2177 = vrcp.f32 %v1093_v19  ;;  %v1105_v28 = vand.u32 2147483648, %v1093_v19  ;;  %vm1099_vm6 = vweird.f32 %v1093_v19  ;;  %v1103_v29 = vand.u32 2147483647, %v1093_v19 }
 0xc5c   :  { %v1106_v30 = vor.u32 1.1754944e-38, %v1105_v28  ;;  %vm1104_vm9 = vcmp.eq.f32.partialorder %v1103_v29, 8.507059e+37 }
 0xc60   :  { %v2178_v21 = vpop.eup %2177 }
 0xc61   :  { %v1095_v25 = vmul.f32 %v2178_v21, %v1093_v19  ;;  %vm1100_vm5 = vweird.f32 %v2178_v21 }
 0xc62   :  { %vm1101_vm7 = vmor %vm1099_vm6, %vm1100_vm5 }
 0xc63   :  { %v1096_v26 = vsub.f32 1.0, %v1095_v25 }
 0xc65   :  { %v1097_v27 = vmul.f32 %v2178_v21, %v1096_v26 }
 0xc67   :  { %v1098_v20 = vadd.f32 %v2178_v21, %v1097_v27 }
 0xc69   :  { %v1102_v54 = vsel %vm1101_vm7, %v2178_v21, %v1098_v20 }
 0xc6a   :  { %v1107_v31 = vsel %vm1104_vm9, %v1106_v30, %v1102_v54 }
 0xc6b   :  { %v1119_v23 = vsub.f32 1.0, %v1107_v31  ;;  %v1125_v47 = vmul.f32 %v1107_v31, %v2893_v7 }
 0xcb1   :  { %v1194_v48 = vpop.permute.xlu2 %1193 }
 0xcb2   :  { %v1196_v50 = vmul.f32 %v1194_v48, %v1191_v49 }
 0xcc1   :  { %v1122_v15 = vpop.permute.xlu0 %1121 }
 0xcc2   :  { %v1124_v32 = vmul.f32 %v1122_v15, %v1119_v23 }
 0xcc4   :  { %v1126_v58 = vadd.f32 %v1125_v47, %v1124_v32 }
 0xcc6   :  { %1128 = vrot.lane.b32.xlu1 %v1126_v58, %s2345_s22 }
 0xcc9   :  { %v1198_v1 = vpop.permute.xlu0 %1197 }
 0xcca   :  { %v1200_v51 = vmul.f32 %v1198_v1, %v1178_v41 }
 0xccc   :  { %v1201_v52 = vadd.f32 %v1200_v51, %v1196_v50 }
 0xcce   :  { %1203 = vrot.lane.b32.xlu1 %v1201_v52, %s2345_s22 }
 0xd38   :  { %v1129_v56 = vpop.permute.xlu1 %1128 }
 0xd39   :  { %1131 = vst.msk [vmem:[#allocation2 + $0x2] sm:$0x3] %vm338_vm0, %v1129_v56 }
 0xd3a   :  { %1133 = vst.msk [vmem:[#allocation4 + $0x6] sm:$0x3] %vm338_vm0, %v1129_v56 }
 0xd40   :  { %v1204_v57 = vpop.permute.xlu1 %1203  ;;  %v1207_v59 = vld [vmem:[#allocation2 + $0x2] sm:$0x3] }
 0xd41   :  { %v1917_v63 = vld [vmem:[#allocation4 + $0x6] sm:$0x3]  ;;  %1206 = vst.msk [vmem:[#allocation2] sm:$0x3] %vm338_vm0, %v1204_v57  ;;  %1209 = vrot.lane.b32.xlu2 %v1207_v59, %s2343_s21 }
 0xd42   :  { %1942 = vst [vmem:[#allocation1 + $0x3] ss:$4 sm:$0xff] %v1917_v63 }
 0xd48   :  { %v2937_v7 = vld [vmem:[#allocation2] sm:$0x3] }
 0xd49   :  { %2070 = vmatmul.msk.f32.vlgmr.msra.gmra.mxu1 %vm348_vm1, %v2937_v7 }
 0xd4a   :  { %1634 = vmatpush.msra.mxu1 %v2941_v0 }
 0xd4c   :  { %1635 = vmatpush.msra.mxu1 %v2944_v3 }
 0xd4e   :  { %1636 = vmatpush.msra.mxu1 %v2947_v4 }
 0xd50   :  { %1637 = vmatpush.msra.mxu1 %v2950_v9 }
 0xd52   :  { %1638 = vmatpush.msra.mxu1 %v2953_v22 }
 0xd54   :  { %1639 = vmatpush.msra.mxu1 %v2956_v12 }
 0xd56   :  { %1640 = vmatpush.msra.mxu1 %v2959_v33 }
 0xd58   :  { %1641 = vmatpush.msra.mxu1 %v2962_v34 }
 0xd9b   :  { %v2965_v35 = vpop.permute.xlu2 %1209 }
 0xd9c   :  { %v1212_v36 = vsel %vm348_vm1, %v1204_v57, %v2965_v35 }
 0xd9d   :  { %2066 = vmatmul.msk.f32.vlgmr.msrb.gmra.mxu0 %vm433_vm8, %v1212_v36  ;;  %2067 = vmatmul.msk.f32.vlgmr.msrb.gmra.mxu3 %vm433_vm8, %v1212_v36 }
 0xd9e   :  { %1809 = vmatpush.msrb.mxu0 %v2869_v13 }
 0xda0   :  { %1810 = vmatpush.msrb.mxu0 %v2872_v2 }
 0xda2   :  { %1811 = vmatpush.msrb.mxu0 %v2875_v14 }
 0xda4   :  { %1812 = vmatpush.msrb.mxu0 %v2878_v24 }
 0xda6   :  { %1813 = vmatpush.msrb.mxu0 %v2881_v5  ;;  %v1331_v5 = vld [vmem:[#allocation3 + $0xa] sm:$0x3] }
 0xda8   :  { %1814 = vmatpush.msrb.mxu0 %v2884_v6 }
 0xdaa   :  { %1815 = vmatpush.msrb.mxu0 %v2887_v11 }
 0xdac   :  { %1816 = vmatpush.msrb.mxu0 %v2890_v17 }
 0xdc6   :  { %v1352_v13 = vpop.f32.mrf.mxu1 }
 0xdc7   :  { %v1353_v24 = vadd.f32 %v1352_v13, %v2527_v61 }
 0xdc9   :  { %v1355_v6 = vadd.f32 %v1353_v24, %v1331_v5 }
 0xdcb   :  { %v2071_v11 = vmul.f32 -1.442695, %v1355_v6 }
 0xdcd   :  { %2179 = vpow2.f32 %v2071_v11 }
 0xdd3   :  { %v2180_v40 = vpop.eup %2179 }
 0xdd4   :  { %v1359_v42 = vadd.f32 1.0, %v2180_v40 }
 0xdd6   :  { %v1371_v30 = vand.u32 2147483648, %v1359_v42  ;;  %vm1365_vm14 = vweird.f32 %v1359_v42  ;;  %v1369_v31 = vand.u32 2147483647, %v1359_v42 }
 0xdd8   :  { %v1372_v32 = vor.u32 1.1754944e-38, %v1371_v30  ;;  %vm1370_vm4 = vcmp.eq.f32.partialorder %v1369_v31, 8.507059e+37 }
 0xe1a   :  { %v1233_v37 = vpop.f32.mrf.mxu0 }
 0xe1b   :  { %v2980_v38 = vadd.f32 %v1233_v37, %v2657_v60 }
 0xe1d   :  { %1257 = vrot.lane.b32.xlu0 %v2980_v38, %s2343_s21 }
 0xe20   :  { %v1253_v2 = vpop.f32.mrf.mxu3 }
 0xe21   :  { %v1254_v14 = vadd.f32 %v1253_v2, %v2659_v62 }
 0xe23   :  { %1304 = vrot.lane.b32.xlu1 %v1254_v14, %s2345_s22 }
 0xe25   :  { %1376 = vrot.lane.b32.xlu0 %v1353_v24, %s2344_s20 }
 0xe2b   :  { %1281 = vrot.lane.b32.xlu1 %v1254_v14, %s2343_s21 }
 0xe8f   :  { %v1258_v17 = vpop.permute.xlu0 %1257 }
 0xe90   :  { %v1260_v39 = vadd.f32 %v1258_v17, %v2980_v38 }
 0xe92   :  { %v2068_v41 = vmul.f32 -1.442695, %v1260_v39 }
 0xe94   :  { %2181 = vpow2.f32 %v2068_v41 }
 0xe95   :  { %2183 = vrcp.f32 %v1359_v42  ;;  %v1305_v20 = vpop.permute.xlu1 %1304 }
 0xe97   :  { %v1377_v15 = vpop.permute.xlu0 %1376 }
 0xe9a   :  { %v2182_v43 = vpop.eup %2181 }
 0xe9b   :  { %v1264_v44 = vadd.f32 1.0, %v2182_v43  ;;  %v2184_v45 = vpop.eup %2183 }
 0xe9c   :  { %v1361_v46 = vmul.f32 %v2184_v45, %v1359_v42  ;;  %vm1366_vm13 = vweird.f32 %v2184_v45 }
 0xe9d   :  { %2185 = vrcp.f32 %v1264_v44  ;;  %v1276_v18 = vand.u32 2147483648, %v1264_v44  ;;  %v1274_v19 = vand.u32 2147483647, %v1264_v44  ;;  %vm1270_vm10 = vweird.f32 %v1264_v44  ;;  %vm1367_vm15 = vmor %vm1365_vm14, %vm1366_vm13  ;;  %v1282_v56 = vpop.permute.xlu1 %1281 }
 0xe9e   :  { %v1362_v8 = vsub.f32 1.0, %v1361_v46  ;;  %v1284_v57 = vadd.f32 %v1282_v56, %v2980_v38 }
 0xe9f   :  { %v1277_v26 = vor.u32 1.1754944e-38, %v1276_v18  ;;  %vm1275_vm12 = vcmp.eq.f32.partialorder %v1274_v19, 8.507059e+37 }
 0xea0   :  { %v1363_v25 = vmul.f32 %v2184_v45, %v1362_v8  ;;  %v2069_v59 = vmul.f32 -1.442695, %v1284_v57 }
 0xea2   :  { %v1364_v54 = vadd.f32 %v2184_v45, %v1363_v25 }
 0xea3   :  { %v2186_v53 = vpop.eup %2185 }
 0xea4   :  { %v1266_v55 = vmul.f32 %v2186_v53, %v1264_v44  ;;  %vm1271_vm3 = vweird.f32 %v2186_v53  ;;  %v1368_v23 = vsel %vm1367_vm15, %v2184_v45, %v1364_v54 }
 0xea5   :  { %vm1272_vm11 = vmor %vm1270_vm10, %vm1271_vm3  ;;  %v1373_v47 = vsel %vm1370_vm4, %v1372_v32, %v1368_v23 }
 0xea6   :  { %v1267_v10 = vsub.f32 1.0, %v1266_v55  ;;  %v1379_v58 = vmul.f32 %v1377_v15, %v1373_v47  ;;  %v1386_v44 = vsub.f32 1.0, %v1373_v47 }
 0xea8   :  { %v1268_v16 = vmul.f32 %v2186_v53, %v1267_v10 }
 0xeaa   :  { %v1269_v21 = vadd.f32 %v2186_v53, %v1268_v16 }
 0xeac   :  { %v1273_v27 = vsel %vm1272_vm11, %v2186_v53, %v1269_v21 }
 0xead   :  { %v1278_v28 = vsel %vm1275_vm12, %v1277_v26, %v1273_v27 }
 0xeae   :  { %v1307_v29 = vmul.f32 %v1305_v20, %v1278_v28 }
 0xeb0   :  { %1309 = vrot.lane.b32.xlu2 %v1307_v29, %s2344_s20 }
 0xeb8   :  { %1381 = vrot.lane.b32.xlu2 %v1379_v58, %s2344_s20 }
 0xf0a   :  { %v1310_v48 = vpop.permute.xlu2 %1309 }
 0xf0b   :  { %v1312_v49 = vadd.f32 %v1310_v48, %v2980_v38 }
 0xf0d   :  { %2187 = vtanh.f32 %v1312_v49 }
 0xf12   :  { %v1382_v1 = vpop.permute.xlu2 %1381 }
 0xf13   :  { %v2188_v50 = vpop.eup %2187  ;;  %v1384_v51 = vadd.f32 %v1382_v1, %v1331_v5 }
 0xf14   :  { %1316 = vrot.lane.b32.xlu0 %v2188_v50, %s2345_s22 }
 0xf15   :  { %2189 = vtanh.f32 %v1384_v51 }
 0xf16   :  { %2191 = vpow2.f32 %v2069_v59 }
 0xf1b   :  { %v2190_v52 = vpop.eup %2189 }
 0xf1c   :  { %1392 = vrot.lane.b32.xlu0 %v2937_v7, %s2343_s21  ;;  %1388 = vrot.lane.b32.xlu2 %v2190_v52, %s2345_s22  ;;  %v2192_v63 = vpop.eup %2191 }
 0xf1d   :  { %v1288_v36 = vadd.f32 1.0, %v2192_v63 }
 0xf1f   :  { %2193 = vrcp.f32 %v1288_v36  ;;  %v1300_v5 = vand.u32 2147483648, %v1288_v36  ;;  %vm1294_vm6 = vweird.f32 %v1288_v36  ;;  %v1298_v6 = vand.u32 2147483647, %v1288_v36 }
 0xf21   :  { %v1301_v11 = vor.u32 1.1754944e-38, %v1300_v5  ;;  %vm1299_vm9 = vcmp.eq.f32.partialorder %v1298_v6, 8.507059e+37 }
 0xf25   :  { %v2194_v37 = vpop.eup %2193 }
 0xf26   :  { %v1290_v13 = vmul.f32 %v2194_v37, %v1288_v36  ;;  %vm1295_vm5 = vweird.f32 %v2194_v37 }
 0xf27   :  { %vm1296_vm7 = vmor %vm1294_vm6, %vm1295_vm5 }
 0xf28   :  { %v1291_v2 = vsub.f32 1.0, %v1290_v13 }
 0xf2a   :  { %v1292_v14 = vmul.f32 %v2194_v37, %v1291_v2 }
 0xf2c   :  { %v1293_v24 = vadd.f32 %v2194_v37, %v1292_v14 }
 0xf2e   :  { %v1297_v7 = vsel %vm1296_vm7, %v2194_v37, %v1293_v24 }
 0xf2f   :  { %v1302_v17 = vsel %vm1299_vm9, %v1301_v11, %v1297_v7 }
 0xf30   :  { %v1314_v38 = vsub.f32 1.0, %v1302_v17  ;;  %v1320_v41 = vmul.f32 %v1302_v17, %v2965_v35 }
 0xf76   :  { %v1389_v43 = vpop.permute.xlu2 %1388 }
 0xf77   :  { %v1391_v46 = vmul.f32 %v1389_v43, %v1386_v44 }
 0xf86   :  { %v1317_v39 = vpop.permute.xlu0 %1316 }
 0xf87   :  { %v1319_v40 = vmul.f32 %v1317_v39, %v1314_v38 }
 0xf89   :  { %v1321_v42 = vadd.f32 %v1320_v41, %v1319_v40 }
 0xf8b   :  { %1323 = vrot.lane.b32.xlu1 %v1321_v42, %s2345_s22 }
 0xf8e   :  { %v1393_v45 = vpop.permute.xlu0 %1392 }
 0xf8f   :  { %v1395_v53 = vmul.f32 %v1393_v45, %v1373_v47 }
 0xf91   :  { %v1396_v55 = vadd.f32 %v1395_v53, %v1391_v46 }
 0xf93   :  { %1398 = vrot.lane.b32.xlu1 %v1396_v55, %s2345_s22 }
 0xffd   :  { %v1324_v10 = vpop.permute.xlu1 %1323 }
 0xffe   :  { %1326 = vst.msk [vmem:[#allocation2 + $0x2] sm:$0x3] %vm338_vm0, %v1324_v10 }
 0xfff   :  { %1328 = vst.msk [vmem:[#allocation4 + $0x8] sm:$0x3] %vm338_vm0, %v1324_v10 }
0x1005   :  { %v1399_v8 = vpop.permute.xlu1 %1398  ;;  %v1402_v18 = vld [vmem:[#allocation2 + $0x2] sm:$0x3] }
0x1006   :  { %v1918_v16 = vld [vmem:[#allocation4 + $0x8] sm:$0x3]  ;;  %1401 = vst.msk [vmem:[#allocation2] sm:$0x3] %vm338_vm0, %v1399_v8  ;;  %1404 = vrot.lane.b32.xlu2 %v1402_v18, %s2343_s21 }
0x1007   :  { %1944 = vst [vmem:[#allocation1 + $0x20] ss:$4 sm:$0xff] %v1918_v16 }
0x100d   :  { %v3005_v35 = vld [vmem:[#allocation2] sm:$0x3] }
0x100e   :  { %2076 = vmatmul.msk.f32.vlgmr.msrb.gmra.mxu1 %vm348_vm1, %v3005_v35 }
0x1060   :  { %v3009_v19 = vpop.permute.xlu2 %1404 }
0x1061   :  { %v1407_v21 = vsel %vm348_vm1, %v1399_v8, %v3009_v19 }
0x1062   :  { %2072 = vmatmul.msk.f32.vlgmr.msra.gmra.mxu2 %vm433_vm8, %v1407_v21  ;;  %2073 = vmatmul.msk.f32.vlgmr.msra.gmra.mxu0 %vm433_vm8, %v1407_v21 }
0x1063   :  { %1829 = vmatpush.msra.mxu2 %v2941_v0 }
0x1065   :  { %1830 = vmatpush.msra.mxu2 %v2944_v3 }
0x1067   :  { %1831 = vmatpush.msra.mxu2 %v2947_v4 }
0x1069   :  { %1832 = vmatpush.msra.mxu2 %v2950_v9 }
0x106b   :  { %1833 = vmatpush.msra.mxu2 %v2953_v22  ;;  %v1526_v22 = vld [vmem:[#allocation3 + $0xc] sm:$0x3] }
0x106d   :  { %1834 = vmatpush.msra.mxu2 %v2956_v12 }
0x106f   :  { %1835 = vmatpush.msra.mxu2 %v2959_v33 }
0x1071   :  { %1836 = vmatpush.msra.mxu2 %v2962_v34 }
0x108b   :  { %v1547_v4 = vpop.f32.mrf.mxu1 }
0x108c   :  { %v1548_v9 = vadd.f32 %v1547_v4, %v2527_v61 }
0x108e   :  { %v1550_v12 = vadd.f32 %v1548_v9, %v1526_v22 }
0x1090   :  { %v2077_v33 = vmul.f32 -1.442695, %v1550_v12 }
0x1092   :  { %2195 = vpow2.f32 %v2077_v33 }
0x1098   :  { %v2196_v20 = vpop.eup %2195 }
0x1099   :  { %v1554_v29 = vadd.f32 1.0, %v2196_v20 }
0x109b   :  { %v1566_v37 = vand.u32 2147483648, %v1554_v29  ;;  %vm1560_vm14 = vweird.f32 %v1554_v29  ;;  %v1564_v13 = vand.u32 2147483647, %v1554_v29 }
0x109d   :  { %v1567_v14 = vor.u32 1.1754944e-38, %v1566_v37  ;;  %vm1565_vm4 = vcmp.eq.f32.partialorder %v1564_v13, 8.507059e+37 }
0x10df   :  { %v1448_v25 = vpop.f32.mrf.mxu0 }
0x10e0   :  { %v1449_v26 = vadd.f32 %v1448_v25, %v2659_v62 }
0x10e2   :  { %1499 = vrot.lane.b32.xlu1 %v1449_v26, %s2345_s22 }
0x10e5   :  { %v1428_v0 = vpop.f32.mrf.mxu2 }
0x10e6   :  { %v3026_v3 = vadd.f32 %v1428_v0, %v2657_v60 }
0x10e8   :  { %1452 = vrot.lane.b32.xlu0 %v3026_v3, %s2343_s21 }
0x10ea   :  { %1476 = vrot.lane.b32.xlu1 %v1449_v26, %s2343_s21 }
0x10f0   :  { %1571 = vrot.lane.b32.xlu0 %v1548_v9, %s2344_s20 }
0x1154   :  { %v1500_v57 = vpop.permute.xlu1 %1499 }
0x115a   :  { %v1453_v34 = vpop.permute.xlu0 %1452 }
0x115b   :  { %v1455_v27 = vadd.f32 %v1453_v34, %v3026_v3 }
0x115c   :  { %v1477_v41 = vpop.permute.xlu1 %1476 }
0x115d   :  { %v2074_v28 = vmul.f32 -1.442695, %v1455_v27  ;;  %v1479_v42 = vadd.f32 %v1477_v41, %v3026_v3 }
0x115f   :  { %2197 = vpow2.f32 %v2074_v28  ;;  %v2075_v43 = vmul.f32 -1.442695, %v1479_v42 }
0x1160   :  { %2199 = vrcp.f32 %v1554_v29 }
0x1162   :  { %v1572_v24 = vpop.permute.xlu0 %1571 }
0x1165   :  { %v2198_v54 = vpop.eup %2197 }
0x1166   :  { %v1459_v30 = vadd.f32 1.0, %v2198_v54  ;;  %v2200_v31 = vpop.eup %2199 }
0x1167   :  { %v1556_v23 = vmul.f32 %v2200_v31, %v1554_v29  ;;  %vm1561_vm13 = vweird.f32 %v2200_v31 }
0x1168   :  { %2201 = vrcp.f32 %v1459_v30  ;;  %v1471_v48 = vand.u32 2147483648, %v1459_v30  ;;  %v1469_v1 = vand.u32 2147483647, %v1459_v30  ;;  %vm1465_vm10 = vweird.f32 %v1459_v30  ;;  %vm1562_vm15 = vmor %vm1560_vm14, %vm1561_vm13 }
0x1169   :  { %v1557_v47 = vsub.f32 1.0, %v1556_v23  ;;  %v1924_v23 = vld [vmem:[%s3140_s10 + $0x10] sm:$0xff] }
0x116a   :  { %v1472_v52 = vor.u32 1.1754944e-38, %v1471_v48  ;;  %vm1470_vm12 = vcmp.eq.f32.partialorder %v1469_v1, 8.507059e+37  ;;  %v1951_v48 = vld.sshfl [vmem:[#allocation1] sm:$0xff pattern:$0x73625140] }
0x116b   :  { %v1558_v50 = vmul.f32 %v2200_v31, %v1557_v47 }
0x116d   :  { %v1559_v63 = vadd.f32 %v2200_v31, %v1558_v50 }
0x116e   :  { %v2202_v15 = vpop.eup %2201 }
0x116f   :  { %v1461_v32 = vmul.f32 %v2202_v15, %v1459_v30  ;;  %vm1466_vm3 = vweird.f32 %v2202_v15  ;;  %v1563_v2 = vsel %vm1562_vm15, %v2200_v31, %v1559_v63  ;;  %v1925_v31 = vld [vmem:[%s3140_s10 + $0x18] sm:$0xff] }
0x1170   :  { %vm1467_vm11 = vmor %vm1465_vm10, %vm1466_vm3  ;;  %v1568_v5 = vsel %vm1565_vm4, %v1567_v14, %v1563_v2  ;;  %1969 = vmatpush.msrb.mxu3 %v1925_v31 }
0x1171   :  { %v1462_v58 = vsub.f32 1.0, %v1461_v32  ;;  %v1574_v6 = vmul.f32 %v1572_v24, %v1568_v5  ;;  %v1581_v12 = vsub.f32 1.0, %v1568_v5  ;;  %v1922_v32 = vld [vmem:[%s3140_s10] sm:$0xff] }
0x1172   :  { %1970 = vmatpush.msrb.mxu3 %v1924_v23 }
0x1173   :  { %v1463_v49 = vmul.f32 %v2202_v15, %v1462_v58 }
0x1175   :  { %v1464_v51 = vadd.f32 %v2202_v15, %v1463_v49 }
0x1177   :  { %v1468_v56 = vsel %vm1467_vm11, %v2202_v15, %v1464_v51  ;;  %v1923_v15 = vld [vmem:[%s3140_s10 + $0x8] sm:$0xff] }
0x1178   :  { %v1473_v59 = vsel %vm1470_vm12, %v1472_v52, %v1468_v56  ;;  %1971 = vmatpush.msrb.mxu3 %v1923_v15 }
0x1179   :  { %v1502_v36 = vmul.f32 %v1500_v57, %v1473_v59  ;;  %v1721_v57 = vld [vmem:[#allocation3 + $0xe] sm:$0x3] }
0x117a   :  { %1972 = vmatpush.msrb.mxu3 %v1922_v32 }
0x117b   :  { %1504 = vrot.lane.b32.xlu2 %v1502_v36, %s2344_s20 }
0x1183   :  { %1576 = vrot.lane.b32.xlu2 %v1574_v6, %s2344_s20 }
0x11d5   :  { %v1505_v7 = vpop.permute.xlu2 %1504 }
0x11d6   :  { %v1507_v11 = vadd.f32 %v1505_v7, %v3026_v3 }
0x11d8   :  { %2203 = vtanh.f32 %v1507_v11 }
0x11dd   :  { %v1577_v17 = vpop.permute.xlu2 %1576 }
0x11de   :  { %v2204_v38 = vpop.eup %2203  ;;  %v1579_v39 = vadd.f32 %v1577_v17, %v1526_v22 }
0x11df   :  { %1511 = vrot.lane.b32.xlu0 %v2204_v38, %s2345_s22 }
0x11e0   :  { %2205 = vtanh.f32 %v1579_v39 }
0x11e1   :  { %2207 = vpow2.f32 %v2075_v43 }
0x11e6   :  { %v2206_v40 = vpop.eup %2205 }
0x11e7   :  { %1587 = vrot.lane.b32.xlu0 %v3005_v35, %s2343_s21  ;;  %1583 = vrot.lane.b32.xlu2 %v2206_v40, %s2345_s22  ;;  %v2208_v44 = vpop.eup %2207 }
0x11e8   :  { %v1483_v45 = vadd.f32 1.0, %v2208_v44 }
0x11ea   :  { %2209 = vrcp.f32 %v1483_v45  ;;  %v1495_v18 = vand.u32 2147483648, %v1483_v45  ;;  %vm1489_vm6 = vweird.f32 %v1483_v45  ;;  %v1493_v16 = vand.u32 2147483647, %v1483_v45 }
0x11ec   :  { %v1496_v21 = vor.u32 1.1754944e-38, %v1495_v18  ;;  %vm1494_vm9 = vcmp.eq.f32.partialorder %v1493_v16, 8.507059e+37 }
0x11f0   :  { %v2210_v46 = vpop.eup %2209 }
0x11f1   :  { %v1485_v53 = vmul.f32 %v2210_v46, %v1483_v45  ;;  %vm1490_vm5 = vweird.f32 %v2210_v46 }
0x11f2   :  { %vm1491_vm7 = vmor %vm1489_vm6, %vm1490_vm5 }
0x11f3   :  { %v1486_v55 = vsub.f32 1.0, %v1485_v53 }
0x11f5   :  { %v1487_v10 = vmul.f32 %v2210_v46, %v1486_v55 }
0x11f7   :  { %v1488_v8 = vadd.f32 %v2210_v46, %v1487_v10 }
0x11f9   :  { %v1492_v35 = vsel %vm1491_vm7, %v2210_v46, %v1488_v8 }
0x11fa   :  { %v1497_v25 = vsel %vm1494_vm9, %v1496_v21, %v1492_v35 }
0x11fb   :  { %v1509_v26 = vsub.f32 1.0, %v1497_v25  ;;  %v1515_v4 = vmul.f32 %v1497_v25, %v3009_v19 }
0x1241   :  { %v1584_v22 = vpop.permute.xlu2 %1583 }
0x1242   :  { %v1586_v34 = vmul.f32 %v1584_v22, %v1581_v12 }
0x1251   :  { %v1512_v0 = vpop.permute.xlu0 %1511 }
0x1252   :  { %v1514_v3 = vmul.f32 %v1512_v0, %v1509_v26 }
0x1254   :  { %v1516_v9 = vadd.f32 %v1515_v4, %v1514_v3 }
0x1256   :  { %1518 = vrot.lane.b32.xlu1 %v1516_v9, %s2345_s22 }
0x1259   :  { %v1588_v33 = vpop.permute.xlu0 %1587 }
0x125a   :  { %v1590_v27 = vmul.f32 %v1588_v33, %v1568_v5 }
0x125c   :  { %v1591_v20 = vadd.f32 %v1590_v27, %v1586_v34 }
0x125e   :  { %1593 = vrot.lane.b32.xlu1 %v1591_v20, %s2345_s22 }
0x12c8   :  { %v1519_v28 = vpop.permute.xlu1 %1518 }
0x12c9   :  { %1521 = vst.msk [vmem:[#allocation2 + $0x2] sm:$0x3] %vm338_vm0, %v1519_v28 }
0x12ca   :  { %1523 = vst.msk [vmem:[#allocation4 + $0xa] sm:$0x3] %vm338_vm0, %v1519_v28 }
0x12d0   :  { %v1594_v29 = vpop.permute.xlu1 %1593  ;;  %v1597_v54 = vld [vmem:[#allocation2 + $0x2] sm:$0x3] }
0x12d1   :  { %v1919_v30 = vld [vmem:[#allocation4 + $0xa] sm:$0x3]  ;;  %1596 = vst.msk [vmem:[#allocation2] sm:$0x3] %vm338_vm0, %v1594_v29  ;;  %1599 = vrot.lane.b32.xlu2 %v1597_v54, %s2343_s21 }
0x12d2   :  { %1946 = vst [vmem:[#allocation1 + $0x21] ss:$4 sm:$0xff] %v1919_v30 }
0x12d8   :  { %v3049_v19 = vld [vmem:[#allocation2] sm:$0x3] }
0x12d9   :  { %2082 = vmatmul.msk.f32.vlgmr.msrb.gmra.mxu2 %vm348_vm1, %v3049_v19 }
0x132b   :  { %v3065_v47 = vpop.permute.xlu2 %1599 }
0x132c   :  { %v1602_v58 = vsel %vm348_vm1, %v1594_v29, %v3065_v47 }
0x132d   :  { %2078 = vmatmul.msk.f32.vlgmr.msra.gmra.mxu3 %vm433_vm8, %v1602_v58  ;;  %2079 = vmatmul.msk.f32.vlgmr.msra.gmra.mxu1 %vm433_vm8, %v1602_v58 }
0x1335   :  { %2088 = vmatmul.msk.f32.vlgmr.msrb.gmra.mxu3 %vm348_vm1, %v1951_v48 }
0x135c   :  { %v1742_v52 = vpop.f32.mrf.mxu2 }
0x135d   :  { %v1743_v56 = vadd.f32 %v1742_v52, %v2527_v61 }
0x135f   :  { %v1745_v59 = vadd.f32 %v1743_v56, %v1721_v57 }
0x1361   :  { %v2083_v63 = vmul.f32 -1.442695, %v1745_v59 }
0x1363   :  { %2211 = vpow2.f32 %v2083_v63 }
0x1369   :  { %v2212_v13 = vpop.eup %2211 }
0x136a   :  { %v1749_v14 = vadd.f32 1.0, %v2212_v13 }
0x136c   :  { %v1761_v8 = vand.u32 2147483648, %v1749_v14  ;;  %vm1755_vm14 = vweird.f32 %v1749_v14  ;;  %v1759_v18 = vand.u32 2147483647, %v1749_v14 }
0x136e   :  { %v1762_v21 = vor.u32 1.1754944e-38, %v1761_v8  ;;  %vm1760_vm4 = vcmp.eq.f32.partialorder %v1759_v18, 8.507059e+37 }
0x13aa   :  { %v1643_v49 = vpop.f32.mrf.mxu1 }
0x13ab   :  { %v1644_v1 = vadd.f32 %v1643_v49, %v2659_v62 }
0x13ad   :  { %1694 = vrot.lane.b32.xlu1 %v1644_v1, %s2345_s22 }
0x13b0   :  { %v1623_v50 = vpop.f32.mrf.mxu3 }
0x13b1   :  { %v3075_v51 = vadd.f32 %v1623_v50, %v2657_v60 }
0x13b3   :  { %1647 = vrot.lane.b32.xlu0 %v3075_v51, %s2343_s21 }
0x13b5   :  { %1671 = vrot.lane.b32.xlu1 %v1644_v1, %s2343_s21 }
0x13bb   :  { %1766 = vrot.lane.b32.xlu0 %v1743_v56, %s2344_s20 }
0x141f   :  { %v1695_v46 = vpop.permute.xlu1 %1694 }
0x1425   :  { %v1648_v36 = vpop.permute.xlu0 %1647 }
0x1426   :  { %v1650_v37 = vadd.f32 %v1648_v36, %v3075_v51 }
0x1427   :  { %v1672_v33 = vpop.permute.xlu1 %1671 }
0x1428   :  { %v2080_v2 = vmul.f32 -1.442695, %v1650_v37  ;;  %v1674_v34 = vadd.f32 %v1672_v33, %v3075_v51 }
0x142a   :  { %2213 = vpow2.f32 %v2080_v2  ;;  %v2081_v27 = vmul.f32 -1.442695, %v1674_v34 }
0x142b   :  { %2215 = vrcp.f32 %v1749_v14 }
0x142d   :  { %v1767_v35 = vpop.permute.xlu0 %1766 }
0x1430   :  { %v2214_v24 = vpop.eup %2213 }
0x1431   :  { %v1654_v5 = vadd.f32 1.0, %v2214_v24  ;;  %v2216_v6 = vpop.eup %2215 }
0x1432   :  { %v1751_v7 = vmul.f32 %v2216_v6, %v1749_v14  ;;  %vm1756_vm13 = vweird.f32 %v2216_v6 }
0x1433   :  { %2217 = vrcp.f32 %v1654_v5  ;;  %v1666_v39 = vand.u32 2147483648, %v1654_v5  ;;  %v1664_v41 = vand.u32 2147483647, %v1654_v5  ;;  %vm1660_vm10 = vweird.f32 %v1654_v5  ;;  %vm1757_vm15 = vmor %vm1755_vm14, %vm1756_vm13 }
0x1434   :  { %v1752_v17 = vsub.f32 1.0, %v1751_v7 }
0x1435   :  { %v1667_v44 = vor.u32 1.1754944e-38, %v1666_v39  ;;  %vm1665_vm12 = vcmp.eq.f32.partialorder %v1664_v41, 8.507059e+37 }
0x1436   :  { %v1753_v42 = vmul.f32 %v2216_v6, %v1752_v17  ;;  %v1992_v17 = vld [vmem:[%s3141_s11 + $0x2] sm:$0x1] }
0x1438   :  { %v1754_v55 = vadd.f32 %v2216_v6, %v1753_v42 }
0x1439   :  { %v2218_v61 = vpop.eup %2217 }
0x143a   :  { %v1656_v11 = vmul.f32 %v2218_v61, %v1654_v5  ;;  %vm1661_vm3 = vweird.f32 %v2218_v61  ;;  %v1758_v16 = vsel %vm1757_vm15, %v2216_v6, %v1754_v55 }
0x143b   :  { %vm1662_vm11 = vmor %vm1660_vm10, %vm1661_vm3  ;;  %v1763_v25 = vsel %vm1760_vm4, %v1762_v21, %v1758_v16 }
0x143c   :  { %v1657_v38 = vsub.f32 1.0, %v1656_v11  ;;  %v1769_v26 = vmul.f32 %v1767_v35, %v1763_v25 }
0x143e   :  { %v1658_v40 = vmul.f32 %v2218_v61, %v1657_v38 }
0x1440   :  { %v1659_v43 = vadd.f32 %v2218_v61, %v1658_v40 }
0x1442   :  { %v1663_v45 = vsel %vm1662_vm11, %v2218_v61, %v1659_v43 }
0x1443   :  { %v1668_v53 = vsel %vm1665_vm12, %v1667_v44, %v1663_v45 }
0x1444   :  { %v1697_v10 = vmul.f32 %v1695_v46, %v1668_v53 }
0x1446   :  { %1699 = vrot.lane.b32.xlu2 %v1697_v10, %s2344_s20 }
0x144e   :  { %1771 = vrot.lane.b32.xlu2 %v1769_v26, %s2344_s20  ;;  %v2107_v26 = vld [vmem:[%s3141_s11] ss:$0 sm:$0xff] }
0x14a0   :  { %v1700_v0 = vpop.permute.xlu2 %1699 }
0x14a1   :  { %v1702_v3 = vadd.f32 %v1700_v0, %v3075_v51  ;;  %v1974_v0 = vpop.f32.mrf.mxu3 }
0x14a3   :  { %2219 = vtanh.f32 %v1702_v3  ;;  %v1975_v3 = vadd.f32 %v2107_v26, %v1974_v0 }
0x14a8   :  { %v1772_v4 = vpop.permute.xlu2 %1771 }
0x14a9   :  { %v2220_v9 = vpop.eup %2219  ;;  %v1774_v22 = vadd.f32 %v1772_v4, %v1721_v57  ;;  %v1776_v57 = vsub.f32 1.0, %v1763_v25  ;;  %v1980_v4 = vmax.f32 %v1975_v3, 0.0 }
0x14aa   :  { %1706 = vrot.lane.b32.xlu0 %v2220_v9, %s2345_s22  ;;  %v2108_v9 = vld [vmem:[%s3141_s11 + $0x1] ss:$0 sm:$0xff]  ;;  %s2346_s11 = smov [#allocation10]  }
0x14ab   :  { %2221 = vtanh.f32 %v1774_v22  ;;  %v1984_v22 = vmul.f32 %v2108_v9, %v1980_v4 }
0x14ac   :  { %2223 = vpow2.f32 %v2081_v27 }
0x14b1   :  { %v2222_v12 = vpop.eup %2221 }
0x14b2   :  { %1782 = vrot.lane.b32.xlu0 %v3049_v19, %s2343_s21  ;;  %1778 = vrot.lane.b32.xlu2 %v2222_v12, %s2345_s22  ;;  %v2224_v20 = vpop.eup %2223  ;;  %v1986_v12 = vsel %vm265_vm2, %v1984_v22, 0.0 }
0x14b3   :  { %v1678_v28 = vadd.f32 1.0, %v2224_v20 }
0x14b5   :  { %2225 = vrcp.f32 %v1678_v28  ;;  %v1690_v15 = vand.u32 2147483648, %v1678_v28  ;;  %vm1684_vm6 = vweird.f32 %v1678_v28  ;;  %v1688_v32 = vand.u32 2147483647, %v1678_v28 }
0x14b7   :  { %v1691_v58 = vor.u32 1.1754944e-38, %v1690_v15  ;;  %vm1689_vm9 = vcmp.eq.f32.partialorder %v1688_v32, 8.507059e+37 }
0x14bb   :  { %v2226_v29 = vpop.eup %2225 }
0x14bc   :  { %v1680_v54 = vmul.f32 %v2226_v29, %v1678_v28  ;;  %vm1685_vm5 = vweird.f32 %v2226_v29 }
0x14bd   :  { %vm1686_vm7 = vmor %vm1684_vm6, %vm1685_vm5 }
0x14be   :  { %v1681_v30 = vsub.f32 1.0, %v1680_v54 }
0x14c0   :  { %v1682_v31 = vmul.f32 %v2226_v29, %v1681_v30 }
0x14c2   :  { %v1683_v23 = vadd.f32 %v2226_v29, %v1682_v31 }
0x14c4   :  { %v1687_v19 = vsel %vm1686_vm7, %v2226_v29, %v1683_v23 }
0x14c5   :  { %v1692_v48 = vsel %vm1689_vm9, %v1691_v58, %v1687_v19 }
0x14c6   :  { %v1704_v49 = vsub.f32 1.0, %v1692_v48  ;;  %v1710_v50 = vmul.f32 %v1692_v48, %v3065_v47 }
0x150c   :  { %v1779_v56 = vpop.permute.xlu2 %1778 }
0x150d   :  { %v1781_v63 = vmul.f32 %v1779_v56, %v1776_v57 }
0x151c   :  { %v1707_v1 = vpop.permute.xlu0 %1706 }
0x151d   :  { %v1709_v51 = vmul.f32 %v1707_v1, %v1704_v49 }
0x151f   :  { %v1711_v52 = vadd.f32 %v1710_v50, %v1709_v51 }
0x1521   :  { %1713 = vrot.lane.b32.xlu1 %v1711_v52, %s2345_s22 }
0x1524   :  { %v1783_v59 = vpop.permute.xlu0 %1782 }
0x1525   :  { %v1785_v36 = vmul.f32 %v1783_v59, %v1763_v25 }
0x1527   :  { %v1786_v37 = vadd.f32 %v1785_v36, %v1781_v63 }
0x1529   :  { %1788 = vrot.lane.b32.xlu1 %v1786_v37, %s2345_s22 }
0x1593   :  { %v1714_v13 = vpop.permute.xlu1 %1713 }
0x1594   :  { %1716 = vst.msk [vmem:[#allocation2 + $0x2] sm:$0x3] %vm338_vm0, %v1714_v13 }
0x1595   :  { %1718 = vst.msk [vmem:[#allocation4 + $0xc] sm:$0x3] %vm338_vm0, %v1714_v13 }
0x159b   :  { %v1789_v2 = vpop.permute.xlu1 %1788  ;;  %v1792_v14 = vld [vmem:[#allocation2 + $0x2] sm:$0x3] }
0x159c   :  { %v1920_v47 = vld [vmem:[#allocation4 + $0xc] sm:$0x3]  ;;  %1791 = vst.msk [vmem:[#allocation2] sm:$0x3] %vm338_vm0, %v1789_v2  ;;  %1794 = vrot.lane.b32.xlu2 %v1792_v14, %s2343_s21 }
0x159d   :  { %1948 = vst [vmem:[#allocation1 + $0x22] ss:$4 sm:$0xff] %v1920_v47 }
0x15f6   :  { %v3098_v24 = vpop.permute.xlu2 %1794 }
0x15f7   :  { %v1797_v5 = vsel %vm348_vm1, %v1789_v2, %v3098_v24 }
0x15f8   :  { %2084 = vmatmul.msk.f32.vlgmr.msrb.gmra.mxu0 %vm433_vm8, %v1797_v5  ;;  %2085 = vmatmul.msk.f32.vlgmr.msra.gmra.mxu2 %vm433_vm8, %v1797_v5 }
0x1675   :  { %v1818_v6 = vpop.f32.mrf.mxu0 }
0x1676   :  { %v1819_v7 = vadd.f32 %v1818_v6, %v2657_v60 }
0x1678   :  { %1842 = vrot.lane.b32.xlu0 %v1819_v7, %s2343_s21 }
0x167b   :  { %v1838_v61 = vpop.f32.mrf.mxu2 }
0x167c   :  { %v1839_v11 = vadd.f32 %v1838_v61, %v2659_v62  ;;  %v2009_v61 = vlaneseq }
0x167e   :  { %1889 = vrot.lane.b32.xlu1 %v1839_v11, %s2345_s22 }
0x1680   :  { %1866 = vrot.lane.b32.xlu0 %v1839_v11, %s2343_s21 }
0x1688   :  { %1995 = vperm.xlu0 %2102, %v1992_v17   ;;  %v2010_v17 = vand.u32 127, %v2009_v61 }
0x16ea   :  { %v1843_v38 = vpop.permute.xlu0 %1842 }
0x16eb   :  { %v1845_v39 = vadd.f32 %v1843_v38, %v1819_v7  ;;  %v2012_v38 = vadd.s32 4294967288, %v2010_v17 }
0x16ed   :  { %v2086_v40 = vmul.f32 -1.442695, %v1845_v39 }
0x16ef   :  { %2227 = vpow2.f32 %v2086_v40 }
0x16f0   :  { %v1890_v8 = vpop.permute.xlu1 %1889 }
0x16f2   :  { %v1867_v33 = vpop.permute.xlu0 %1866 }
0x16f3   :  { %v1869_v34 = vadd.f32 %v1867_v33, %v1819_v7 }
0x16f5   :  { %v2228_v41 = vpop.eup %2227  ;;  %v2087_v27 = vmul.f32 -1.442695, %v1869_v34 }
0x16f6   :  { %v1849_v60 = vadd.f32 1.0, %v2228_v41 }
0x16f8   :  { %2229 = vrcp.f32 %v1849_v60  ;;  %v1861_v62 = vand.u32 2147483648, %v1849_v60  ;;  %v1859_v46 = vand.u32 2147483647, %v1849_v60  ;;  %vm1855_vm3 = vweird.f32 %v1849_v60 }
0x16fa   :  { %v1862_v55 = vor.u32 1.1754944e-38, %v1861_v62  ;;  %vm1860_vm11 = vcmp.eq.f32.partialorder %v1859_v46, 8.507059e+37  ;;  %v1996_v56 = vpop.permute.xlu0 %1995 }
0x16fb   :  { %v1997_v57 = vperm.slane %v1996_v56, 0 }
0x16fe   :  { %v2230_v42 = vpop.eup %2229 }
0x16ff   :  { %v1851_v43 = vmul.f32 %v2230_v42, %v1849_v60  ;;  %vm1856_vm8 = vweird.f32 %v2230_v42 }
0x1700   :  { %vm1857_vm10 = vmor %vm1855_vm3, %vm1856_vm8 }
0x1701   :  { %v1852_v44 = vsub.f32 1.0, %v1851_v43 }
0x1703   :  { %v1853_v45 = vmul.f32 %v2230_v42, %v1852_v44 }
0x1705   :  { %v1854_v53 = vadd.f32 %v2230_v42, %v1853_v45 }
0x1707   :  { %v1858_v10 = vsel %vm1857_vm10, %v2230_v42, %v1854_v53 }
0x1708   :  { %v1863_v18 = vsel %vm1860_vm11, %v1862_v55, %v1858_v10 }
0x1709   :  { %v1892_v16 = vmul.f32 %v1890_v8, %v1863_v18 }
0x170b   :  { %1894 = vrot.lane.b32.xlu2 %v1892_v16, %s2344_s20  ;;  %s2024_s20 = sshll.u32 %s2346_s11, 4  ;;  %s2025_s20 = int_to_ptr.vmem [resolvable:$true] %s2024_s20 }
0x1765   :  { %v1895_v35 = vpop.permute.xlu2 %1894 }
0x1766   :  { %v1897_v21 = vadd.f32 %v1895_v35, %v1819_v7 }
0x1768   :  { %2231 = vtanh.f32 %v1897_v21 }
0x1769   :  { %2233 = vpow2.f32 %v2087_v27 }
0x176e   :  { %v2232_v25 = vpop.eup %2231 }
0x176f   :  { %1901 = vrot.lane.b32.xlu1 %v2232_v25, %s2345_s22  ;;  %v2234_v20 = vpop.eup %2233 }
0x1770   :  { %v1873_v28 = vadd.f32 1.0, %v2234_v20 }
0x1772   :  { %2235 = vrcp.f32 %v1873_v28  ;;  %v1885_v15 = vand.u32 2147483648, %v1873_v28  ;;  %vm1879_vm13 = vweird.f32 %v1873_v28  ;;  %v1883_v32 = vand.u32 2147483647, %v1873_v28 }
0x1774   :  { %v1886_v58 = vor.u32 1.1754944e-38, %v1885_v15  ;;  %vm1884_vm15 = vcmp.eq.f32.partialorder %v1883_v32, 8.507059e+37 }
0x1778   :  { %v2236_v29 = vpop.eup %2235 }
0x1779   :  { %v1875_v54 = vmul.f32 %v2236_v29, %v1873_v28  ;;  %vm1880_vm12 = vweird.f32 %v2236_v29 }
0x177a   :  { %vm1881_vm14 = vmor %vm1879_vm13, %vm1880_vm12 }
0x177b   :  { %v1876_v30 = vsub.f32 1.0, %v1875_v54 }
0x177d   :  { %v1877_v31 = vmul.f32 %v2236_v29, %v1876_v30 }
0x177f   :  { %v1878_v23 = vadd.f32 %v2236_v29, %v1877_v31 }
0x1781   :  { %v1882_v19 = vsel %vm1881_vm14, %v2236_v29, %v1878_v23 }
0x1782   :  { %v1887_v48 = vsel %vm1884_vm15, %v1886_v58, %v1882_v19 }
0x1783   :  { %v1899_v49 = vsub.f32 1.0, %v1887_v48  ;;  %v1905_v51 = vmul.f32 %v1887_v48, %v3098_v24 }
0x1799   :  { %1987 = vadd.xlane.f32.xlu1 %v1986_v12 }
0x17e1   :  { %v1902_v1 = vpop.permute.xlu1 %1901 }
0x17e2   :  { %v1904_v50 = vmul.f32 %v1902_v1, %v1899_v49 }
0x17e4   :  { %v1906_v52 = vadd.f32 %v1905_v51, %v1904_v50 }
0x17e6   :  { %1908 = vrot.lane.b32.xlu2 %v1906_v52, %s2345_s22 }
0x180c   :  { %v1988_v59 = vpop.xlane.xlu1 %1987 }
0x180d   :  { %v1999_v63 = vadd.f32 %v1997_v57, %v1988_v59 }
0x180f   :  { %2004 = vperm.xlu0 %2102, %v1999_v63  }
0x1840   :  { %v1909_v36 = vpop.permute.xlu2 %1908 }
0x1841   :  { %1911 = vst.msk [vmem:[#allocation2 + $0x2] sm:$0x3] %vm338_vm0, %v1909_v36 }
0x1842   :  { %1913 = vst.msk [vmem:[#allocation4 + $0xe] sm:$0x3] %vm338_vm0, %v1909_v36  ;;  %vm2014_vm0 = vcmask 130112  }
0x1849   :  { %v1921_v37 = vld [vmem:[#allocation4 + $0xe] sm:$0x3] }
0x184a   :  { %1950 = vst [vmem:[#allocation1 + $0x23] ss:$4 sm:$0xff] %v1921_v37 }
0x1851   :  { %v1952_v13 = vld.sshfl [vmem:[#allocation1 + $0x20] sm:$0xff pattern:$0x73625140] }
0x1852   :  { %2089 = vmatmul.msk.f32.gmra.mxu3 %vm348_vm1, %v1952_v13  ;;  %vm2017_vm1 = vcmask 122880  }
0x1881   :  { %v2005_v11 = vpop.permute.xlu0 %2004 }
0x1882   :  { %v2011_v40 = vperm.slane %v2005_v11, %v2010_v17 }
0x18d5   :  { %v1977_v2 = vpop.f32.mrf.mxu3 }
0x18d6   :  { %v1978_v14 = vadd.f32 %v2107_v26, %v1977_v2 }
0x18d8   :  { %v1981_v47 = vmax.f32 %v1978_v14, 0.0 }
0x18da   :  { %v1985_v24 = vmul.f32 %v2108_v9, %v1981_v47 }
0x18dc   :  { %v1989_v5 = vsel %vm265_vm2, %v1985_v24, 0.0 }
0x18dd   :  { %1990 = vadd.xlane.f32.xlu2 %v1989_v5 }
0x1950   :  { %v1991_v6 = vpop.xlane.xlu2 %1990 }
0x1951   :  { %v2000_v7 = vadd.f32 %v1997_v57, %v1991_v6 }
0x1953   :  { %2007 = vperm.xlu0 %2102, %v2000_v7  }
0x19c5   :  { %v2008_v39 = vpop.permute.xlu0 %2007 }
0x19c6   :  { %v2013_v41 = vperm.slane %v2008_v39, %v2012_v38 }
0x19c8   :  { %v2015_v60 = vsel %vm2014_vm0, %v2013_v41, %v2011_v40 }
0x19c9   :  { %2018 = vst.msk [vmem:[#allocation10] sm:$0x1] %vm2017_vm1, %v2015_v60 }
0x19ca   :  { %2029 = dma.vmem_to_hbm [thread:$0]  %s2025_s20, 16, %s2027_s30, [#allocation7]  }
0x19cb   :  { %2333 = dma.done.wait [#allocation7], 16  }
0x19cc   :  { %2334 = vsyncadd [#allocation7], 4294967280 }
0x19cd   :  { %2034 = vsyncpa [#allocation6], 1 }
0x19ce   :  { %2035 = vsyncpa [#allocation9], 1 }
0x19cf   :  { %2036 = vsyncpa [#allocation7], 1 }

</bundles_post_ra>
